<compile_context>
chip_gen: v6e
topology: v6e:2x2x1
jax: 0.10.0
libtpu: 0.0.40
codegen_flags: <defaults>
</compile_context>

<pallas_src>
import functools

import jax
import jax.numpy as jnp
from jax.experimental import pallas as pl
from jax.experimental.pallas import tpu as pltpu

_LANE = 128
_SUBLANE_BF16 = 16
_BN_EPS = 1e-5                      # nn.BatchNorm2d default (module uses defaults)
_VMEM_LIMIT = 48 * 1024 * 1024      # < 64 MiB physical on v7x, far under v5e/v6e


def _round_up(x, m):
    return (x + m - 1) // m * m


def _cdiv(a, b):
    return (a + b - 1) // b


# ----------------------------------------------------------------------------
# Pallas kernels
# ----------------------------------------------------------------------------
def _mm_bias_relu6_kernel(p_ref, w_ref, b_ref, o_ref):
    # p: (TM, K) bf16 patches, w: (K, Co) bf16 (BN scale folded),
    # b: (1, Co) f32 folded bias, o: (TM, Co) bf16/f32.
    acc = jnp.dot(p_ref[...], w_ref[...], preferred_element_type=jnp.float32)
    o_ref[...] = jnp.clip(acc + b_ref[...], 0.0, 6.0).astype(o_ref.dtype)


def _conv_taps_kernel(x_ref, w_ref, b_ref, o_ref, *, taps, inner, rows):
    # In-kernel tap accumulation for a 7-tap factorized conv whose taps run
    # along the OUTER spatial axis of a flattened per-image slab:
    #   x: (rows + (taps-1)*inner, Cp) bf16 (halo included, resident in VMEM)
    #   w: (taps, Cp, Co) bf16, b: (1, Co) f32, o: (rows, Co).
    acc = jnp.dot(x_ref[pl.ds(0, rows), :], w_ref[0],
                  preferred_element_type=jnp.float32)
    for t in range(1, taps):
        acc = acc + jnp.dot(x_ref[pl.ds(t * inner, rows), :], w_ref[t],
                            preferred_element_type=jnp.float32)
    o_ref[...] = jnp.clip(acc + b_ref[...], 0.0, 6.0).astype(o_ref.dtype)


def _maxpool3x3s2_kernel(r0_ref, r1_ref, r2_ref, o_ref, *, wo):
    # r{0,1,2}: (W, Cp) input rows 2*ho+{0,1,2}; the 9 taps are built in-kernel
    # with stride-2 sublane reads (no HBM tap stack).  o: (Wo, Cp).
    m = r0_ref[pl.ds(0, wo, stride=2), :]
    for k, r_ref in enumerate((r0_ref, r1_ref, r2_ref)):
        for j in range(3):
            if k == 0 and j == 0:
                continue
            m = jnp.maximum(m, r_ref[pl.ds(j, wo, stride=2), :])
    o_ref[...] = m


# ----------------------------------------------------------------------------
# Fused matmul + BN-bias + ReLU6 wrapper (stem 1x1 and 3x3 stride-2 convs)
# ----------------------------------------------------------------------------
def _mm_bias_relu6(P, W_mat, bias, out_dtype):
    """clip(P @ W + bias, 0, 6) as an M-tiled, pipelined Pallas matmul.

    P: (M, K) bf16, K already lane-dense (multiple of 128, no re-pad pass).
    W_mat: (K, Co) bf16 with BN scale folded, Co a multiple of 128.
    bias: (Co,) f32.  Returns (M, Co) in `out_dtype`.
    """
    M, K = P.shape
    Co = W_mat.shape[1]
    # >= 2 grid steps when possible (both v7x TensorCores busy), <= 512 rows
    # per step (amortizes the ~0.35us/step overhead), sublane-aligned tiles.
    TM = min(512, _round_up(max(_cdiv(M, 2), _SUBLANE_BF16), _SUBLANE_BF16))
    grid_m = _cdiv(M, TM)
    b2d = bias.astype(jnp.float32).reshape(1, Co)
    return pl.pallas_call(
        _mm_bias_relu6_kernel,
        out_shape=jax.ShapeDtypeStruct((M, Co), out_dtype),
        grid=(grid_m,),
        in_specs=[
            pl.BlockSpec((TM, K), lambda m: (m, 0)),     # P tile (pipelined)
            pl.BlockSpec((K, Co), lambda m: (0, 0)),     # W resident
            pl.BlockSpec((1, Co), lambda m: (0, 0)),     # bias resident
        ],
        out_specs=pl.BlockSpec((TM, Co), lambda m: (m, 0)),
        compiler_params=pltpu.CompilerParams(
            dimension_semantics=("parallel",),
            vmem_limit_bytes=_VMEM_LIMIT,
        ),
    )(P, W_mat, b2d)


# ----------------------------------------------------------------------------
# Parameter folding helpers (BN eval-mode affine folded into conv weights)
# ----------------------------------------------------------------------------
def _fold_bn(p):
    scale = p["gamma"] / jnp.sqrt(p["var"] + _BN_EPS)
    bias = scale * (p["b"] - p["mean"]) + p["beta"]
    return scale, bias


def _stem_1x1_fused(x_p, p1, p2, slot):
    """Fused 1x1 stems of branch1/branch2: ONE matmul over the shared input.

    Each branch gets its own `slot`-lane group of the 2*slot-wide output so the
    split needs no re-padding (and 2*slot = 256 fills the v6e/v7x MXU width).
    """
    N, H, W, Cin_p = x_p.shape

    def cols(p):
        scale, bias = _fold_bn(p)
        w = p["w"][:, :, 0, 0]                               # (Cout, Cin)
        wm = (w * scale[:, None]).T                          # (Cin, Cout)
        wm = jnp.pad(wm, ((0, Cin_p - wm.shape[0]), (0, slot - wm.shape[1])))
        bb = jnp.pad(bias, (0, slot - bias.shape[0]))
        return wm, bb

    w1, b1 = cols(p1)
    w2, b2 = cols(p2)
    W_mat = jnp.concatenate([w1, w2], axis=1).astype(jnp.bfloat16)
    bias = jnp.concatenate([b1, b2], axis=0)
    P = x_p.reshape(N * H * W, Cin_p)
    out = _mm_bias_relu6(P, W_mat, bias, jnp.bfloat16)
    out = out.reshape(N, H, W, 2 * slot)
    return out[..., :slot], out[..., slot:]


def _taps_from_1d_conv(p, cin_p, axis):
    """torch weight (Cout, Cin, kh, kw) -> (7, cin_p, Co_p) bf16 taps + bias.

    axis=2 -> 7x1 (taps along H), axis=3 -> 1x7 (taps along W).
    """
    scale, bias = _fold_bn(p)
    w = p["w"] * scale[:, None, None, None]                  # fold BN scale
    Cout, Cin = w.shape[:2]
    Co_p = _round_up(Cout, _LANE)
    if axis == 2:
        taps = jnp.transpose(w[:, :, :, 0], (2, 1, 0))       # (7, Cin, Cout)
    else:
        taps = jnp.transpose(w[:, :, 0, :], (2, 1, 0))       # (7, Cin, Cout)
    taps = jnp.pad(taps, ((0, 0), (0, cin_p - Cin), (0, Co_p - Cout)))
    bias = jnp.pad(bias, (0, Co_p - Cout))
    return taps.astype(jnp.bfloat16), bias.astype(jnp.float32), Cout, Co_p


# ----------------------------------------------------------------------------
# Conv / pool wrappers
# ----------------------------------------------------------------------------
def _conv7_outer(x_p, w_taps, bias, out_dtype):
    """7-tap factorized conv with the taps along axis A of x_p=(N, A, B, Cp).

    One grid step per image; the kernel accumulates 7 shifted matmuls over a
    flattened (A+6)*B halo slab resident in VMEM, so there is no im2col
    duplication in HBM (only a (A+6)/A sized pad pass).
    """
    N, A, B, Cp = x_p.shape
    Co = w_taps.shape[-1]
    xa = jnp.pad(x_p, ((0, 0), (3, 3), (0, 0), (0, 0)))
    xa = xa.reshape(N, (A + 6) * B, Cp)
    rows = A * B
    kernel = functools.partial(_conv_taps_kernel, taps=7, inner=B, rows=rows)
    out = pl.pallas_call(
        kernel,
        out_shape=jax.ShapeDtypeStruct((N, rows, Co), out_dtype),
        grid=(N,),
        in_specs=[
            pl.BlockSpec((None, (A + 6) * B, Cp), lambda n: (n, 0, 0)),
            pl.BlockSpec((7, Cp, Co), lambda n: (0, 0, 0)),   # taps resident
            pl.BlockSpec((1, Co), lambda n: (0, 0)),          # bias resident
        ],
        out_specs=pl.BlockSpec((None, rows, Co), lambda n: (n, 0, 0)),
        compiler_params=pltpu.CompilerParams(
            dimension_semantics=("parallel",),
            vmem_limit_bytes=_VMEM_LIMIT,
        ),
    )(xa, w_taps, bias.reshape(1, Co))
    return out.reshape(N, A, B, Co)


def _conv3x3_s2(x_p, p, out_dtype):
    """3x3 stride-2 Conv+BN+ReLU6: im2col on the subsampled grid + one matmul.

    K = 9*Cp is lane-dense by construction (channel-padded activation) and M
    is never padded (cdiv grid handles the ragged edge).
    """
    # TODO(synk): the overlapping stride-2 halo windows are not expressible
    # with Blocked index_maps; keep the ~9/4x im2col here (output grid is 4x
    # subsampled) and move it in-kernel via manual DMA only if it ever
    # dominates a profile.
    N, H, W, Cp = x_p.shape
    Ho = (H - 3) // 2 + 1
    Wo = (W - 3) // 2 + 1
    cols = [x_p[:, i:i + 2 * Ho:2, j:j + 2 * Wo:2, :]
            for i in range(3) for j in range(3)]
    P = jnp.concatenate(cols, axis=-1).reshape(N * Ho * Wo, 9 * Cp)

    scale, bias = _fold_bn(p)
    Cout, Cin = p["w"].shape[:2]
    Co_p = _round_up(Cout, _LANE)
    w = jnp.transpose(p["w"], (2, 3, 1, 0)) * scale[None, None, None, :]
    w = jnp.pad(w, ((0, 0), (0, 0), (0, Cp - Cin), (0, Co_p - Cout)))
    W_mat = w.reshape(9 * Cp, Co_p).astype(jnp.bfloat16)
    bias = jnp.pad(bias, (0, Co_p - Cout))

    out = _mm_bias_relu6(P, W_mat, bias, out_dtype)
    return out.reshape(N, Ho, Wo, Co_p), Cout


def _maxpool3x3_s2(x_p):
    """MaxPool2d(3, stride=2) on a channel-padded f32 NHWC tensor."""
    N, H, W, Cp = x_p.shape
    Ho = (H - 3) // 2 + 1
    Wo = (W - 3) // 2 + 1
    kernel = functools.partial(_maxpool3x3s2_kernel, wo=Wo)
    out = pl.pallas_call(
        kernel,
        out_shape=jax.ShapeDtypeStruct((N, Ho, Wo, Cp), x_p.dtype),
        grid=(N, Ho),
        in_specs=[
            pl.BlockSpec((None, None, W, Cp),
                         lambda n, ho, _k=k: (n, 2 * ho + _k, 0, 0))
            for k in range(3)
        ],
        out_specs=pl.BlockSpec((None, None, Wo, Cp),
                               lambda n, ho: (n, ho, 0, 0)),
        compiler_params=pltpu.CompilerParams(
            dimension_semantics=("parallel", "parallel"),
            vmem_limit_bytes=_VMEM_LIMIT,
        ),
    )(x_p, x_p, x_p)
    return out


# ----------------------------------------------------------------------------
# Module: InceptionV3ModuleE
# ----------------------------------------------------------------------------
def _init_conv_bn(key, cin, cout, kh, kw):
    k1, k2, k3, k4 = jax.random.split(key, 4)
    return {
        "w": 0.1 * jax.random.normal(k1, (cout, cin, kh, kw), jnp.float32),
        "b": 0.05 * jax.random.normal(k2, (cout,), jnp.float32),
        "gamma": 1.0 + 0.1 * jax.random.normal(k3, (cout,), jnp.float32),
        "beta": 0.05 * jax.random.normal(k4, (cout,), jnp.float32),
        "mean": 0.01 * jnp.arange(cout, dtype=jnp.float32),
        "var": 1.0 + 0.01 * jnp.arange(cout, dtype=jnp.float32),
    }


def init_inception_e_params(key, in_channels, r1, o1, r2, o2):
    ks = jax.random.split(key, 6)
    return {
        "b1_1x1": _init_conv_bn(ks[0], in_channels, r1, 1, 1),
        "b1_3x3": _init_conv_bn(ks[1], r1, o1, 3, 3),
        "b2_1x1": _init_conv_bn(ks[2], in_channels, r2, 1, 1),
        "b2_1x7": _init_conv_bn(ks[3], r2, r2, 1, 7),
        "b2_7x1": _init_conv_bn(ks[4], r2, r2, 7, 1),
        "b2_3x3": _init_conv_bn(ks[5], r2, o2, 3, 3),
    }


def inception_v3_module_e(x_nchw, params):
    # NOTE: BatchNorm uses eval-mode (running-stat) semantics folded into the
    # conv affine; activations flow lane-padded bf16 between the fused kernels
    # and are un-padded only once at the final concat.
    x = jnp.transpose(x_nchw, (0, 2, 3, 1))                  # NCHW -> NHWC
    N, H, W, Cin = x.shape
    Cin_p = _round_up(Cin, _LANE)

    x_bf = jnp.pad(x.astype(jnp.bfloat16),
                   ((0, 0),) * 3 + ((0, Cin_p - Cin),))      # conv branches
    x_f32 = jnp.pad(x, ((0, 0),) * 3 + ((0, Cin_p - Cin),))  # pool branch (f32)

    r1 = params["b1_1x1"]["w"].shape[0]
    r2 = params["b2_1x1"]["w"].shape[0]
    slot = _round_up(max(r1, r2), _LANE)

    # fused 1x1 stems of branch1/branch2
    b1, b2 = _stem_1x1_fused(x_bf, params["b1_1x1"], params["b2_1x1"], slot)

    # branch1: 1x1 -> 3x3 stride-2 (final output in f32)
    out1, o1 = _conv3x3_s2(b1, params["b1_3x3"], jnp.float32)

    # branch2: 1x1 -> 1x7 (pad 0,3) -> 7x1 (pad 3,0) -> 3x3 stride-2
    # TODO(synk): the 1x7 -> 7x1 pair could be fused into one kernel that keeps
    # the intermediate row strip in VMEM; kept separate (one HBM round trip).
    taps17, bias17, _, cop17 = _taps_from_1d_conv(params["b2_1x7"], slot, axis=3)
    taps71, bias71, _, _ = _taps_from_1d_conv(params["b2_7x1"], cop17, axis=2)
    t = jnp.transpose(b2, (0, 2, 1, 3))                  # W-outer for 1x7 taps
    t = _conv7_outer(t, taps17, bias17, jnp.bfloat16)
    t = jnp.transpose(t, (0, 2, 1, 3))                   # back to H-outer
    t = _conv7_outer(t, taps71, bias71, jnp.bfloat16)    # 7x1 taps along H
    out2, o2 = _conv3x3_s2(t, params["b2_3x3"], jnp.float32)

    # branch3: MaxPool2d(3, stride=2), kept in f32 like the input
    out3 = _maxpool3x3_s2(x_f32)

    out = jnp.concatenate([out1[..., :o1], out2[..., :o2], out3[..., :Cin]],
                          axis=-1)                       # == torch.cat(dim=1)
    return jnp.transpose(out, (0, 3, 1, 2))              # NHWC -> NCHW


if __name__ == "__main__":
    key = jax.random.PRNGKey(0)
    kx, kp = jax.random.split(key)

    # small shapes: batch=2, in_channels=16, spatial=16x16
    in_channels, r1, o1, r2, o2 = 16, 8, 12, 8, 12
    x = jax.random.normal(kx, (2, in_channels, 16, 16), jnp.float32)
    params = init_inception_e_params(kp, in_channels, r1, o1, r2, o2)

    fwd = jax.jit(inception_v3_module_e)
    out = fwd(x, params)
    jax.block_until_ready(out)

    # (16 - 3) // 2 + 1 = 7 ; channels = o1 + o2 + in_channels = 40
    assert out.shape == (2, o1 + o2 + in_channels, 7, 7), out.shape
    assert out.dtype == jnp.float32
    print("KERNEL_OK")
</pallas_src>

<mosaic_0001>
module attributes {stable_mosaic.version = 11 : i64} {
  func.func @_maxpool3x3s2_kernel(%arg0: i32, %arg1: i32, %arg2: memref<1x1x16x128xf32, #tpu.memory_space<vmem>>, %arg3: memref<1x1x16x128xf32, #tpu.memory_space<vmem>>, %arg4: memref<1x1x16x128xf32, #tpu.memory_space<vmem>>, %arg5: memref<1x1x7x128xf32, #tpu.memory_space<vmem>>) attributes {dimension_semantics = [#tpu.dimension_semantics<parallel>, #tpu.dimension_semantics<parallel>], iteration_bounds = array<i64: 2, 7>, scalar_prefetch = 0 : i64, scratch_operands = 0 : i64, tpu.core_type = #tpu.core_type<tc>, window_params = [{transform_indices = @transform_0, window_bounds = array<i64: 1, 1, 16, 128>}, {transform_indices = @transform_1, window_bounds = array<i64: 1, 1, 16, 128>}, {transform_indices = @transform_2, window_bounds = array<i64: 1, 1, 16, 128>}, {transform_indices = @transform_3, window_bounds = array<i64: 1, 1, 7, 128>}]} {
    %c0 = arith.constant 0 : index
    %c0_0 = arith.constant 0 : index
    %c0_1 = arith.constant 0 : index
    %c0_2 = arith.constant 0 : index
    %0 = tpu.strided_load %arg2[%c0, %c0_0, %c0_1, %c0_2] {strides = array<i32: 1, 1, 2, 1>} : memref<1x1x16x128xf32, #tpu.memory_space<vmem>>, vector<1x1x7x128xf32>
    %1 = vector.shape_cast %0 : vector<1x1x7x128xf32> to vector<7x128xf32>
    %c0_3 = arith.constant 0 : index
    %c0_4 = arith.constant 0 : index
    %c1 = arith.constant 1 : index
    %c0_5 = arith.constant 0 : index
    %2 = tpu.strided_load %arg2[%c0_3, %c0_4, %c1, %c0_5] {strides = array<i32: 1, 1, 2, 1>} : memref<1x1x16x128xf32, #tpu.memory_space<vmem>>, vector<1x1x7x128xf32>
    %3 = vector.shape_cast %2 : vector<1x1x7x128xf32> to vector<7x128xf32>
    %4 = arith.maximumf %1, %3 : vector<7x128xf32>
    %c0_6 = arith.constant 0 : index
    %c0_7 = arith.constant 0 : index
    %c2 = arith.constant 2 : index
    %c0_8 = arith.constant 0 : index
    %5 = tpu.strided_load %arg2[%c0_6, %c0_7, %c2, %c0_8] {strides = array<i32: 1, 1, 2, 1>} : memref<1x1x16x128xf32, #tpu.memory_space<vmem>>, vector<1x1x7x128xf32>
    %6 = vector.shape_cast %5 : vector<1x1x7x128xf32> to vector<7x128xf32>
    %7 = arith.maximumf %4, %6 : vector<7x128xf32>
    %c0_9 = arith.constant 0 : index
    %c0_10 = arith.constant 0 : index
    %c0_11 = arith.constant 0 : index
    %c0_12 = arith.constant 0 : index
    %8 = tpu.strided_load %arg3[%c0_9, %c0_10, %c0_11, %c0_12] {strides = array<i32: 1, 1, 2, 1>} : memref<1x1x16x128xf32, #tpu.memory_space<vmem>>, vector<1x1x7x128xf32>
    %9 = vector.shape_cast %8 : vector<1x1x7x128xf32> to vector<7x128xf32>
    %10 = arith.maximumf %7, %9 : vector<7x128xf32>
    %c0_13 = arith.constant 0 : index
    %c0_14 = arith.constant 0 : index
    %c1_15 = arith.constant 1 : index
    %c0_16 = arith.constant 0 : index
    %11 = tpu.strided_load %arg3[%c0_13, %c0_14, %c1_15, %c0_16] {strides = array<i32: 1, 1, 2, 1>} : memref<1x1x16x128xf32, #tpu.memory_space<vmem>>, vector<1x1x7x128xf32>
    %12 = vector.shape_cast %11 : vector<1x1x7x128xf32> to vector<7x128xf32>
    %13 = arith.maximumf %10, %12 : vector<7x128xf32>
    %c0_17 = arith.constant 0 : index
    %c0_18 = arith.constant 0 : index
    %c2_19 = arith.constant 2 : index
    %c0_20 = arith.constant 0 : index
    %14 = tpu.strided_load %arg3[%c0_17, %c0_18, %c2_19, %c0_20] {strides = array<i32: 1, 1, 2, 1>} : memref<1x1x16x128xf32, #tpu.memory_space<vmem>>, vector<1x1x7x128xf32>
    %15 = vector.shape_cast %14 : vector<1x1x7x128xf32> to vector<7x128xf32>
    %16 = arith.maximumf %13, %15 : vector<7x128xf32>
    %c0_21 = arith.constant 0 : index
    %c0_22 = arith.constant 0 : index
    %c0_23 = arith.constant 0 : index
    %c0_24 = arith.constant 0 : index
    %17 = tpu.strided_load %arg4[%c0_21, %c0_22, %c0_23, %c0_24] {strides = array<i32: 1, 1, 2, 1>} : memref<1x1x16x128xf32, #tpu.memory_space<vmem>>, vector<1x1x7x128xf32>
    %18 = vector.shape_cast %17 : vector<1x1x7x128xf32> to vector<7x128xf32>
    %19 = arith.maximumf %16, %18 : vector<7x128xf32>
    %c0_25 = arith.constant 0 : index
    %c0_26 = arith.constant 0 : index
    %c1_27 = arith.constant 1 : index
    %c0_28 = arith.constant 0 : index
    %20 = tpu.strided_load %arg4[%c0_25, %c0_26, %c1_27, %c0_28] {strides = array<i32: 1, 1, 2, 1>} : memref<1x1x16x128xf32, #tpu.memory_space<vmem>>, vector<1x1x7x128xf32>
    %21 = vector.shape_cast %20 : vector<1x1x7x128xf32> to vector<7x128xf32>
    %22 = arith.maximumf %19, %21 : vector<7x128xf32>
    %c0_29 = arith.constant 0 : index
    %c0_30 = arith.constant 0 : index
    %c2_31 = arith.constant 2 : index
    %c0_32 = arith.constant 0 : index
    %23 = tpu.strided_load %arg4[%c0_29, %c0_30, %c2_31, %c0_32] {strides = array<i32: 1, 1, 2, 1>} : memref<1x1x16x128xf32, #tpu.memory_space<vmem>>, vector<1x1x7x128xf32>
    %24 = vector.shape_cast %23 : vector<1x1x7x128xf32> to vector<7x128xf32>
    %25 = arith.maximumf %22, %24 : vector<7x128xf32>
    %c0_33 = arith.constant 0 : index
    %c0_34 = arith.constant 0 : index
    %c0_35 = arith.constant 0 : index
    %c0_36 = arith.constant 0 : index
    %26 = vector.load %arg5[%c0_33, %c0_34, %c0_35, %c0_36] : memref<1x1x7x128xf32, #tpu.memory_space<vmem>>, vector<1x1x7x128xf32>
    %27 = vector.shape_cast %26 : vector<1x1x7x128xf32> to vector<7x128xf32>
    %28 = vector.shape_cast %25 : vector<7x128xf32> to vector<1x1x7x128xf32>
    tpu.vector_store %arg5[%c0_33, %c0_34, %c0_35, %c0_36], %28 {strides = array<i32>} : memref<1x1x7x128xf32, #tpu.memory_space<vmem>>, vector<1x1x7x128xf32>,
    return
  }
  func.func @transform_0(%arg0: i32, %arg1: i32) -> (i32, i32, i32, i32) {
    %c2_i32 = arith.constant 2 : i32
    %0 = arith.muli %c2_i32, %arg1 : i32
    %c0_i32 = arith.constant 0 : i32
    %1 = arith.addi %0, %c0_i32 : i32
    %c0_i32_0 = arith.constant 0 : i32
    %c0_i32_1 = arith.constant 0 : i32
    %c0_i32_2 = arith.constant 0 : i32
    return %arg0, %1, %c0_i32_0, %c0_i32_1 : i32, i32, i32, i32
  }
  func.func @transform_1(%arg0: i32, %arg1: i32) -> (i32, i32, i32, i32) {
    %c2_i32 = arith.constant 2 : i32
    %0 = arith.muli %c2_i32, %arg1 : i32
    %c1_i32 = arith.constant 1 : i32
    %1 = arith.addi %0, %c1_i32 : i32
    %c0_i32 = arith.constant 0 : i32
    %c0_i32_0 = arith.constant 0 : i32
    %c0_i32_1 = arith.constant 0 : i32
    return %arg0, %1, %c0_i32, %c0_i32_0 : i32, i32, i32, i32
  }
  func.func @transform_2(%arg0: i32, %arg1: i32) -> (i32, i32, i32, i32) {
    %c2_i32 = arith.constant 2 : i32
    %0 = arith.muli %c2_i32, %arg1 : i32
    %c2_i32_0 = arith.constant 2 : i32
    %1 = arith.addi %0, %c2_i32_0 : i32
    %c0_i32 = arith.constant 0 : i32
    %c0_i32_1 = arith.constant 0 : i32
    %c0_i32_2 = arith.constant 0 : i32
    return %arg0, %1, %c0_i32, %c0_i32_1 : i32, i32, i32, i32
  }
  func.func @transform_3(%arg0: i32, %arg1: i32) -> (i32, i32, i32, i32) {
    %c0_i32 = arith.constant 0 : i32
    %c0_i32_0 = arith.constant 0 : i32
    %c0_i32_1 = arith.constant 0 : i32
    return %arg0, %arg1, %c0_i32, %c0_i32_0 : i32, i32, i32, i32
  }
}

module attributes {stable_mosaic.version = 11 : i64} {
  func.func @_mm_bias_relu6_kernel(%arg0: i32, %arg1: memref<256x128xbf16, #tpu.memory_space<vmem>>, %arg2: memref<128x256xbf16, #tpu.memory_space<vmem>>, %arg3: memref<1x256xf32, #tpu.memory_space<vmem>>, %arg4: memref<256x256xbf16, #tpu.memory_space<vmem>>) attributes {dimension_semantics = [#tpu.dimension_semantics<parallel>], iteration_bounds = array<i64: 2>, scalar_prefetch = 0 : i64, scratch_operands = 0 : i64, tpu.core_type = #tpu.core_type<tc>, window_params = [{transform_indices = @transform_0, window_bounds = array<i64: 256, 128>}, {pipeline_mode = #tpu.pipeline_mode<synchronous>, transform_indices = @transform_1, window_bounds = array<i64: 128, 256>}, {pipeline_mode = #tpu.pipeline_mode<synchronous>, transform_indices = @transform_2, window_bounds = array<i64: 1, 256>}, {transform_indices = @transform_3, window_bounds = array<i64: 256, 256>}]} {
    %c0 = arith.constant 0 : index
    %c0_0 = arith.constant 0 : index
    %0 = vector.load %arg1[%c0, %c0_0] : memref<256x128xbf16, #tpu.memory_space<vmem>>, vector<256x128xbf16>
    %c0_1 = arith.constant 0 : index
    %c0_2 = arith.constant 0 : index
    %1 = vector.load %arg2[%c0_1, %c0_2] : memref<128x256xbf16, #tpu.memory_space<vmem>>, vector<128x256xbf16>
    %cst = arith.constant dense<0.000000e+00> : vector<256x256xf32>
    %2 = tpu.matmul %0, %1, %cst {dimension_numbers = #tpu.dot_dimension_numbers<[1], [0], [0], [1], [0, 0, 1, 1], [], []>} : vector<256x128xbf16>, vector<128x256xbf16>, vector<256x256xf32> -> vector<256x256xf32>
    %c0_3 = arith.constant 0 : index
    %c0_4 = arith.constant 0 : index
    %3 = vector.load %arg3[%c0_3, %c0_4] : memref<1x256xf32, #tpu.memory_space<vmem>>, vector<1x256xf32>
    %4 = vector.broadcast %3 : vector<1x256xf32> to vector<256x256xf32>
    %5 = arith.addf %2, %4 : vector<256x256xf32>
    %cst_5 = arith.constant 0.000000e+00 : f32
    %cst_6 = arith.constant 6.000000e+00 : f32
    %6 = vector.broadcast %cst_5 : f32 to vector<256x256xf32>
    %7 = arith.maximumf %6, %5 : vector<256x256xf32>
    %8 = vector.broadcast %cst_6 : f32 to vector<256x256xf32>
    %9 = arith.minimumf %8, %7 : vector<256x256xf32>
    %10 = arith.truncf %9 : vector<256x256xf32> to vector<256x256xbf16>
    %c0_7 = arith.constant 0 : index
    %c0_8 = arith.constant 0 : index
    %11 = vector.load %arg4[%c0_7, %c0_8] : memref<256x256xbf16, #tpu.memory_space<vmem>>, vector<256x256xbf16>
    tpu.vector_store %arg4[%c0_7, %c0_8], %10 {strides = array<i32>} : memref<256x256xbf16, #tpu.memory_space<vmem>>, vector<256x256xbf16>,
    return
  }
  func.func @transform_0(%arg0: i32) -> (i32, i32) {
    %c0_i32 = arith.constant 0 : i32
    %c0_i32_0 = arith.constant 0 : i32
    return %arg0, %c0_i32 : i32, i32
  }
  func.func @transform_1(%arg0: i32) -> (i32, i32) {
    %c0_i32 = arith.constant 0 : i32
    %c0_i32_0 = arith.constant 0 : i32
    %c0_i32_1 = arith.constant 0 : i32
    return %c0_i32, %c0_i32_0 : i32, i32
  }
  func.func @transform_2(%arg0: i32) -> (i32, i32) {
    %c0_i32 = arith.constant 0 : i32
    %c0_i32_0 = arith.constant 0 : i32
    %c0_i32_1 = arith.constant 0 : i32
    return %c0_i32, %c0_i32_0 : i32, i32
  }
  func.func @transform_3(%arg0: i32) -> (i32, i32) {
    %c0_i32 = arith.constant 0 : i32
    %c0_i32_0 = arith.constant 0 : i32
    return %arg0, %c0_i32 : i32, i32
  }
}

module attributes {stable_mosaic.version = 11 : i64} {
  func.func @_conv_taps_kernel(%arg0: i32, %arg1: memref<1x352x128xbf16, #tpu.memory_space<vmem>>, %arg2: memref<7x128x128xbf16, #tpu.memory_space<vmem>>, %arg3: memref<1x128xf32, #tpu.memory_space<vmem>>, %arg4: memref<1x256x128xbf16, #tpu.memory_space<vmem>>) attributes {dimension_semantics = [#tpu.dimension_semantics<parallel>], iteration_bounds = array<i64: 2>, scalar_prefetch = 0 : i64, scratch_operands = 0 : i64, tpu.core_type = #tpu.core_type<tc>, window_params = [{transform_indices = @transform_0, window_bounds = array<i64: 1, 352, 128>}, {pipeline_mode = #tpu.pipeline_mode<synchronous>, transform_indices = @transform_1, window_bounds = array<i64: 7, 128, 128>}, {pipeline_mode = #tpu.pipeline_mode<synchronous>, transform_indices = @transform_2, window_bounds = array<i64: 1, 128>}, {transform_indices = @transform_3, window_bounds = array<i64: 1, 256, 128>}]} {
    %c0 = arith.constant 0 : index
    %c0_0 = arith.constant 0 : index
    %c0_1 = arith.constant 0 : index
    %0 = vector.load %arg1[%c0, %c0_0, %c0_1] : memref<1x352x128xbf16, #tpu.memory_space<vmem>>, vector<1x256x128xbf16>
    %1 = vector.shape_cast %0 : vector<1x256x128xbf16> to vector<256x128xbf16>
    %c0_2 = arith.constant 0 : index
    %c0_3 = arith.constant 0 : index
    %c0_4 = arith.constant 0 : index
    %2 = vector.load %arg2[%c0_2, %c0_3, %c0_4] : memref<7x128x128xbf16, #tpu.memory_space<vmem>>, vector<1x128x128xbf16>
    %3 = vector.shape_cast %2 : vector<1x128x128xbf16> to vector<128x128xbf16>
    %cst = arith.constant dense<0.000000e+00> : vector<256x128xf32>
    %4 = tpu.matmul %1, %3, %cst {dimension_numbers = #tpu.dot_dimension_numbers<[1], [0], [0], [1], [0, 0, 1, 1], [], []>} : vector<256x128xbf16>, vector<128x128xbf16>, vector<256x128xf32> -> vector<256x128xf32>
    %c0_5 = arith.constant 0 : index
    %c16 = arith.constant 16 : index
    %c0_6 = arith.constant 0 : index
    %5 = vector.load %arg1[%c0_5, %c16, %c0_6] : memref<1x352x128xbf16, #tpu.memory_space<vmem>>, vector<1x256x128xbf16>
    %6 = vector.shape_cast %5 : vector<1x256x128xbf16> to vector<256x128xbf16>
    %c1 = arith.constant 1 : index
    %c0_7 = arith.constant 0 : index
    %c0_8 = arith.constant 0 : index
    %7 = vector.load %arg2[%c1, %c0_7, %c0_8] : memref<7x128x128xbf16, #tpu.memory_space<vmem>>, vector<1x128x128xbf16>
    %8 = vector.shape_cast %7 : vector<1x128x128xbf16> to vector<128x128xbf16>
    %cst_9 = arith.constant dense<0.000000e+00> : vector<256x128xf32>
    %9 = tpu.matmul %6, %8, %cst_9 {dimension_numbers = #tpu.dot_dimension_numbers<[1], [0], [0], [1], [0, 0, 1, 1], [], []>} : vector<256x128xbf16>, vector<128x128xbf16>, vector<256x128xf32> -> vector<256x128xf32>
    %10 = arith.addf %4, %9 : vector<256x128xf32>
    %c0_10 = arith.constant 0 : index
    %c32 = arith.constant 32 : index
    %c0_11 = arith.constant 0 : index
    %11 = vector.load %arg1[%c0_10, %c32, %c0_11] : memref<1x352x128xbf16, #tpu.memory_space<vmem>>, vector<1x256x128xbf16>
    %12 = vector.shape_cast %11 : vector<1x256x128xbf16> to vector<256x128xbf16>
    %c2 = arith.constant 2 : index
    %c0_12 = arith.constant 0 : index
    %c0_13 = arith.constant 0 : index
    %13 = vector.load %arg2[%c2, %c0_12, %c0_13] : memref<7x128x128xbf16, #tpu.memory_space<vmem>>, vector<1x128x128xbf16>
    %14 = vector.shape_cast %13 : vector<1x128x128xbf16> to vector<128x128xbf16>
    %cst_14 = arith.constant dense<0.000000e+00> : vector<256x128xf32>
    %15 = tpu.matmul %12, %14, %cst_14 {dimension_numbers = #tpu.dot_dimension_numbers<[1], [0], [0], [1], [0, 0, 1, 1], [], []>} : vector<256x128xbf16>, vector<128x128xbf16>, vector<256x128xf32> -> vector<256x128xf32>
    %16 = arith.addf %10, %15 : vector<256x128xf32>
    %c0_15 = arith.constant 0 : index
    %c48 = arith.constant 48 : index
    %c0_16 = arith.constant 0 : index
    %17 = vector.load %arg1[%c0_15, %c48, %c0_16] : memref<1x352x128xbf16, #tpu.memory_space<vmem>>, vector<1x256x128xbf16>
    %18 = vector.shape_cast %17 : vector<1x256x128xbf16> to vector<256x128xbf16>
    %c3 = arith.constant 3 : index
    %c0_17 = arith.constant 0 : index
    %c0_18 = arith.constant 0 : index
    %19 = vector.load %arg2[%c3, %c0_17, %c0_18] : memref<7x128x128xbf16, #tpu.memory_space<vmem>>, vector<1x128x128xbf16>
    %20 = vector.shape_cast %19 : vector<1x128x128xbf16> to vector<128x128xbf16>
    %cst_19 = arith.constant dense<0.000000e+00> : vector<256x128xf32>
    %21 = tpu.matmul %18, %20, %cst_19 {dimension_numbers = #tpu.dot_dimension_numbers<[1], [0], [0], [1], [0, 0, 1, 1], [], []>} : vector<256x128xbf16>, vector<128x128xbf16>, vector<256x128xf32> -> vector<256x128xf32>
    %22 = arith.addf %16, %21 : vector<256x128xf32>
    %c0_20 = arith.constant 0 : index
    %c64 = arith.constant 64 : index
    %c0_21 = arith.constant 0 : index
    %23 = vector.load %arg1[%c0_20, %c64, %c0_21] : memref<1x352x128xbf16, #tpu.memory_space<vmem>>, vector<1x256x128xbf16>
    %24 = vector.shape_cast %23 : vector<1x256x128xbf16> to vector<256x128xbf16>
    %c4 = arith.constant 4 : index
    %c0_22 = arith.constant 0 : index
    %c0_23 = arith.constant 0 : index
    %25 = vector.load %arg2[%c4, %c0_22, %c0_23] : memref<7x128x128xbf16, #tpu.memory_space<vmem>>, vector<1x128x128xbf16>
    %26 = vector.shape_cast %25 : vector<1x128x128xbf16> to vector<128x128xbf16>
    %cst_24 = arith.constant dense<0.000000e+00> : vector<256x128xf32>
    %27 = tpu.matmul %24, %26, %cst_24 {dimension_numbers = #tpu.dot_dimension_numbers<[1], [0], [0], [1], [0, 0, 1, 1], [], []>} : vector<256x128xbf16>, vector<128x128xbf16>, vector<256x128xf32> -> vector<256x128xf32>
    %28 = arith.addf %22, %27 : vector<256x128xf32>
    %c0_25 = arith.constant 0 : index
    %c80 = arith.constant 80 : index
    %c0_26 = arith.constant 0 : index
    %29 = vector.load %arg1[%c0_25, %c80, %c0_26] : memref<1x352x128xbf16, #tpu.memory_space<vmem>>, vector<1x256x128xbf16>
    %30 = vector.shape_cast %29 : vector<1x256x128xbf16> to vector<256x128xbf16>
    %c5 = arith.constant 5 : index
    %c0_27 = arith.constant 0 : index
    %c0_28 = arith.constant 0 : index
    %31 = vector.load %arg2[%c5, %c0_27, %c0_28] : memref<7x128x128xbf16, #tpu.memory_space<vmem>>, vector<1x128x128xbf16>
    %32 = vector.shape_cast %31 : vector<1x128x128xbf16> to vector<128x128xbf16>
    %cst_29 = arith.constant dense<0.000000e+00> : vector<256x128xf32>
    %33 = tpu.matmul %30, %32, %cst_29 {dimension_numbers = #tpu.dot_dimension_numbers<[1], [0], [0], [1], [0, 0, 1, 1], [], []>} : vector<256x128xbf16>, vector<128x128xbf16>, vector<256x128xf32> -> vector<256x128xf32>
    %34 = arith.addf %28, %33 : vector<256x128xf32>
    %c0_30 = arith.constant 0 : index
    %c96 = arith.constant 96 : index
    %c0_31 = arith.constant 0 : index
    %35 = vector.load %arg1[%c0_30, %c96, %c0_31] : memref<1x352x128xbf16, #tpu.memory_space<vmem>>, vector<1x256x128xbf16>
    %36 = vector.shape_cast %35 : vector<1x256x128xbf16> to vector<256x128xbf16>
    %c6 = arith.constant 6 : index
    %c0_32 = arith.constant 0 : index
    %c0_33 = arith.constant 0 : index
    %37 = vector.load %arg2[%c6, %c0_32, %c0_33] : memref<7x128x128xbf16, #tpu.memory_space<vmem>>, vector<1x128x128xbf16>
    %38 = vector.shape_cast %37 : vector<1x128x128xbf16> to vector<128x128xbf16>
    %cst_34 = arith.constant dense<0.000000e+00> : vector<256x128xf32>
    %39 = tpu.matmul %36, %38, %cst_34 {dimension_numbers = #tpu.dot_dimension_numbers<[1], [0], [0], [1], [0, 0, 1, 1], [], []>} : vector<256x128xbf16>, vector<128x128xbf16>, vector<256x128xf32> -> vector<256x128xf32>
    %40 = arith.addf %34, %39 : vector<256x128xf32>
    %c0_35 = arith.constant 0 : index
    %c0_36 = arith.constant 0 : index
    %41 = vector.load %arg3[%c0_35, %c0_36] : memref<1x128xf32, #tpu.memory_space<vmem>>, vector<1x128xf32>
    %42 = vector.broadcast %41 : vector<1x128xf32> to vector<256x128xf32>
    %43 = arith.addf %40, %42 : vector<256x128xf32>
    %cst_37 = arith.constant 0.000000e+00 : f32
    %cst_38 = arith.constant 6.000000e+00 : f32
    %44 = vector.broadcast %cst_37 : f32 to vector<256x128xf32>
    %45 = arith.maximumf %44, %43 : vector<256x128xf32>
    %46 = vector.broadcast %cst_38 : f32 to vector<256x128xf32>
    %47 = arith.minimumf %46, %45 : vector<256x128xf32>
    %48 = arith.truncf %47 : vector<256x128xf32> to vector<256x128xbf16>
    %c0_39 = arith.constant 0 : index
    %c0_40 = arith.constant 0 : index
    %c0_41 = arith.constant 0 : index
    %49 = vector.load %arg4[%c0_39, %c0_40, %c0_41] : memref<1x256x128xbf16, #tpu.memory_space<vmem>>, vector<1x256x128xbf16>
    %50 = vector.shape_cast %49 : vector<1x256x128xbf16> to vector<256x128xbf16>
    %51 = vector.shape_cast %48 : vector<256x128xbf16> to vector<1x256x128xbf16>
    tpu.vector_store %arg4[%c0_39, %c0_40, %c0_41], %51 {strides = array<i32>} : memref<1x256x128xbf16, #tpu.memory_space<vmem>>, vector<1x256x128xbf16>,
    return
  }
  func.func @transform_0(%arg0: i32) -> (i32, i32, i32) {
    %c0_i32 = arith.constant 0 : i32
    %c0_i32_0 = arith.constant 0 : i32
    %c0_i32_1 = arith.constant 0 : i32
    return %arg0, %c0_i32, %c0_i32_0 : i32, i32, i32
  }
  func.func @transform_1(%arg0: i32) -> (i32, i32, i32) {
    %c0_i32 = arith.constant 0 : i32
    %c0_i32_0 = arith.constant 0 : i32
    %c0_i32_1 = arith.constant 0 : i32
    %c0_i32_2 = arith.constant 0 : i32
    return %c0_i32, %c0_i32_0, %c0_i32_1 : i32, i32, i32
  }
  func.func @transform_2(%arg0: i32) -> (i32, i32) {
    %c0_i32 = arith.constant 0 : i32
    %c0_i32_0 = arith.constant 0 : i32
    %c0_i32_1 = arith.constant 0 : i32
    return %c0_i32, %c0_i32_0 : i32, i32
  }
  func.func @transform_3(%arg0: i32) -> (i32, i32, i32) {
    %c0_i32 = arith.constant 0 : i32
    %c0_i32_0 = arith.constant 0 : i32
    %c0_i32_1 = arith.constant 0 : i32
    return %arg0, %c0_i32, %c0_i32_0 : i32, i32, i32
  }
}

module attributes {stable_mosaic.version = 11 : i64} {
  func.func @_mm_bias_relu6_kernel(%arg0: i32, %arg1: memref<64x1152xbf16, #tpu.memory_space<vmem>>, %arg2: memref<1152x128xbf16, #tpu.memory_space<vmem>>, %arg3: memref<1x128xf32, #tpu.memory_space<vmem>>, %arg4: memref<64x128xf32, #tpu.memory_space<vmem>>) attributes {dimension_semantics = [#tpu.dimension_semantics<parallel>], iteration_bounds = array<i64: 2>, scalar_prefetch = 0 : i64, scratch_operands = 0 : i64, tpu.core_type = #tpu.core_type<tc>, window_params = [{transform_indices = @transform_0, window_bounds = array<i64: 64, 1152>}, {pipeline_mode = #tpu.pipeline_mode<synchronous>, transform_indices = @transform_1, window_bounds = array<i64: 1152, 128>}, {pipeline_mode = #tpu.pipeline_mode<synchronous>, transform_indices = @transform_2, window_bounds = array<i64: 1, 128>}, {transform_indices = @transform_3, window_bounds = array<i64: 64, 128>}]} {
    %c0 = arith.constant 0 : index
    %c0_0 = arith.constant 0 : index
    %0 = vector.load %arg1[%c0, %c0_0] : memref<64x1152xbf16, #tpu.memory_space<vmem>>, vector<64x1152xbf16>
    %c0_1 = arith.constant 0 : index
    %c0_2 = arith.constant 0 : index
    %1 = vector.load %arg2[%c0_1, %c0_2] : memref<1152x128xbf16, #tpu.memory_space<vmem>>, vector<1152x128xbf16>
    %cst = arith.constant dense<0.000000e+00> : vector<64x128xf32>
    %2 = tpu.matmul %0, %1, %cst {dimension_numbers = #tpu.dot_dimension_numbers<[1], [0], [0], [1], [0, 0, 1, 1], [], []>} : vector<64x1152xbf16>, vector<1152x128xbf16>, vector<64x128xf32> -> vector<64x128xf32>
    %c0_3 = arith.constant 0 : index
    %c0_4 = arith.constant 0 : index
    %3 = vector.load %arg3[%c0_3, %c0_4] : memref<1x128xf32, #tpu.memory_space<vmem>>, vector<1x128xf32>
    %4 = vector.broadcast %3 : vector<1x128xf32> to vector<64x128xf32>
    %5 = arith.addf %2, %4 : vector<64x128xf32>
    %cst_5 = arith.constant 0.000000e+00 : f32
    %cst_6 = arith.constant 6.000000e+00 : f32
    %6 = vector.broadcast %cst_5 : f32 to vector<64x128xf32>
    %7 = arith.maximumf %6, %5 : vector<64x128xf32>
    %8 = vector.broadcast %cst_6 : f32 to vector<64x128xf32>
    %9 = arith.minimumf %8, %7 : vector<64x128xf32>
    %c0_7 = arith.constant 0 : index
    %c0_8 = arith.constant 0 : index
    %10 = vector.load %arg4[%c0_7, %c0_8] : memref<64x128xf32, #tpu.memory_space<vmem>>, vector<64x128xf32>
    tpu.vector_store %arg4[%c0_7, %c0_8], %9 {strides = array<i32>} : memref<64x128xf32, #tpu.memory_space<vmem>>, vector<64x128xf32>,
    return
  }
  func.func @transform_0(%arg0: i32) -> (i32, i32) {
    %c0_i32 = arith.constant 0 : i32
    %c0_i32_0 = arith.constant 0 : i32
    return %arg0, %c0_i32 : i32, i32
  }
  func.func @transform_1(%arg0: i32) -> (i32, i32) {
    %c0_i32 = arith.constant 0 : i32
    %c0_i32_0 = arith.constant 0 : i32
    %c0_i32_1 = arith.constant 0 : i32
    return %c0_i32, %c0_i32_0 : i32, i32
  }
  func.func @transform_2(%arg0: i32) -> (i32, i32) {
    %c0_i32 = arith.constant 0 : i32
    %c0_i32_0 = arith.constant 0 : i32
    %c0_i32_1 = arith.constant 0 : i32
    return %c0_i32, %c0_i32_0 : i32, i32
  }
  func.func @transform_3(%arg0: i32) -> (i32, i32) {
    %c0_i32 = arith.constant 0 : i32
    %c0_i32_0 = arith.constant 0 : i32
    return %arg0, %c0_i32 : i32, i32
  }
}

</mosaic_0001>

<bundles_post_ra>
// kernel: inception_v3_module_e.11
= control target key start
LH: loop header
LB: loop body
LE: loop exit
PB: predicated region body
PF: predicated region fallthrough
CT: control target
= control target key end

     0   :  { %s596_s12 = smov 0   ;;  %s598_s13 = smov 0   ;;  %s664_s0 = inlined_call_operand.vmem [shape: f32[2,16,16,128], index: 0, kind: input, shape index: {}, may-alias: {0,1,2}]   ;;  %s665_s1 = inlined_call_operand.vmem [shape: f32[2,16,16,128], index: 1, kind: input, shape index: {}, may-alias: {0,1,2}]   ;;  %s666_s2 = inlined_call_operand.vmem [shape: f32[2,16,16,128], index: 2, kind: input, shape index: {}, may-alias: {0,1,2}]   ;;  %s667_s3 = inlined_call_operand.vmem [shape: f32[2,7,7,128], index: 3, kind: output, shape index: {}]  }
   0x1   :  { %s600_s14 = smov 0   ;;  %s602_s15 = smov 0  }
   0x2   :  { %s604_s16 = smov 0  }
   0x3 LB: > { %s22_s17 = sadd.s32 1, %s566_s14  ;;  %s25_s18 = sadd.s32 1, %s570_s15  ;;  %s574_s16 = sphi %s604_s16, %s13_s16   ;;  %s570_s15 = sphi %s602_s15, %s671_s15   ;;  %s566_s14 = sphi %s600_s14, %s670_s14   ;;  %s562_s13 = sphi %s598_s13, %s669_s13   ;;  %s558_s12 = sphi %s596_s12, %s668_s12  }
   0x4   : > { %p23_p0 = scmp.ge.s32.totalorder %s22_s17, 7  ;;  %p473_p1 = scmp.ge.s32.totalorder %s574_s16, 1 }
   0x5   : > { %p209_p2 = scmp.lt.s32.totalorder %s574_s16, 15 }
   0x6   : > { %s673_s17 = smov (%p23_p0, %s22_s17), 0  ;;  %s675_s18 = smov (!%p23_p0, %s25_s18), %s570_s15 }
   0x7   : > { %p210_p3 = pnand %p473_p1, %p209_p2  ;;  %p27_p4 = scmp.ge.s32.totalorder %s675_s18, 2 }
   0x8   : > { %s474_s19 = sshll.u32 (!%p210_p3), %s558_s12, 1  ;;  %p264_p5 = scmp.lt.s32.totalorder (!%p210_p3), %s562_s13, 1 }
   0x9   : > { %s677_s18 = smov (%p27_p4, %s675_s18), 0  ;;  %213 = sbr.rel (%p210_p3) target bundleno = 39 (0x27), region = 32 }
   0xa   : > { %p266_p6 = scmp.lt.s32.totalorder (!%p210_p3), %s474_s19, 15  ;;  %s275_s20 = sadd.s32 (!%p210_p3), 1, %s474_s19 }
   0xb   : > { %p278_p7 = scmp.lt.s32.totalorder (!%p210_p3), %s275_s20, 15  ;;  %s288_s24 = sadd.s32 (!%p210_p3), 2, %s474_s19 }
   0xc   : > { %p291_p8 = scmp.lt.s32.totalorder (!%p210_p3), %s288_s24, 15  ;;  %p302_p9 = scmp.lt.s32.totalorder (!%p210_p3), %s558_s12, 6 }
   0xe   : > { %s679_s13 = smov (!%p264_p5, %s562_s13), 1  ;;  %s681_s20 = smov (!%p278_p7, %s275_s20), 15 }
   0xf   : > { %s267_s21 = scalar_select %p266_p6, %s474_s19, 15 }
  0x10   : > { %s476_s22 = sshll.u32 %s679_s13, 5  ;;  %s683_s24 = smov (!%p291_p8, %s288_s24), 15 }
  0x11   : > { %s475_s23 = sshll.u32 %s267_s21, 1  ;;  %s479_s30 = sshll.u32 %s681_s20, 1 }
  0x12   : > { %s270_s25 = sadd.s32 %s476_s22, %s475_s23  ;;  %s495_s4 = smul.u32 7, %s679_s13 }
  0x13   : > { %s477_s26 = sshll.u32 %s270_s25, 3  ;;  %s282_s5 = sadd.s32 %s479_s30, %s476_s22 }
  0x14   : > { %s272_s29 = scalar_lea.vmem %s664_s0, %s477_s26  ;;  %s483_s6 = sshll.u32 %s683_s24, 1 }
  0x15   : > { %v308_v0 = vld [vmem:[%s272_s29] ss:$2 sm:$0x7f]  ;;  %v487_v1 = vld [vmem:[%s272_s29 + $0x1] ss:$2 sm:$0x7f]  ;;  %s295_s8 = sadd.s32 %s483_s6, %s476_s22 }
  0x16   : > { %v311_v2 = vmax.f32 %v308_v0, %v487_v1  ;;  %v488_v3 = vld [vmem:[%s272_s29 + $0x2] ss:$2 sm:$0x7f]  ;;  %s481_s7 = sshll.u32 %s282_s5, 3  ;;  %s485_s19 = sshll.u32 %s295_s8, 3 }
  0x17   : > { %s284_s11 = scalar_lea.vmem %s665_s1, %s481_s7  ;;  %s297_s25 = scalar_lea.vmem %s666_s2, %s485_s19 }
  0x18   : > { %v314_v4 = vmax.f32 %v311_v2, %v488_v3  ;;  %v315_v5 = vld [vmem:[%s284_s11] ss:$2 sm:$0x7f]  ;;  %v489_v6 = vld [vmem:[%s284_s11 + $0x1] ss:$2 sm:$0x7f] }
  0x19   : > { %s685_s12 = smov (!%p302_p9, %s558_s12), 6  ;;  %v490_v8 = vld [vmem:[%s284_s11 + $0x2] ss:$2 sm:$0x7f] }
  0x1a   : > { %v316_v7 = vmax.f32 %v314_v4, %v315_v5  ;;  %s305_s13 = sadd.s32 %s495_s4, %s685_s12  ;;  %v323_v10 = vld [vmem:[%s297_s25] ss:$2 sm:$0x7f]  ;;  %v491_v12 = vld [vmem:[%s297_s25 + $0x1] ss:$2 sm:$0x7f] }
  0x1b   : > { %s486_s20 = sshll.u32 %s305_s13, 3  ;;  %v492_v14 = vld [vmem:[%s297_s25 + $0x2] ss:$2 sm:$0x7f] }
  0x1c   : > { %v319_v9 = vmax.f32 %v316_v7, %v489_v6  ;;  %s307_s26 = scalar_lea.vmem %s667_s3, %s486_s20 }
  0x1e   : > { %v322_v11 = vmax.f32 %v319_v9, %v490_v8 }
  0x20   : > { %v324_v13 = vmax.f32 %v322_v11, %v323_v10 }
  0x22   : > { %v327_v15 = vmax.f32 %v324_v13, %v491_v12 }
  0x24   : > { %v330_v16 = vmax.f32 %v327_v15, %v492_v14 }
  0x26   : > { %331 = vst [vmem:[%s307_s26] sm:$0x7f] %v330_v16 }
  0x27 PF: > { %s13_s16 = sadd.s32 1, %s574_s16   ;;  %s668_s12 = smov %s566_s14 }
  0x28   : > { %p10_p10 = scmp.ge.s32.totalorder %s13_s16, 16   ;;  %s669_s13 = smov %s570_s15 }
  0x29   : > { %s670_s14 = smov %s673_s17  ;;  %s671_s15 = smov %s677_s18 }
  0x2a   :  { %12 = sbr.rel (!%p10_p10) target bundleno = 3 (0x3), region = 74 }

// kernel: inception_v3_module_e.6
= control target key start
LH: loop header
LB: loop body
LE: loop exit
PB: predicated region body
PF: predicated region fallthrough
CT: control target
= control target key end

     0   :  { %s1219_s12 = smov 0   ;;  %s1427_s0 = inlined_call_operand.vmem [shape: bf16[512,128], index: 0, kind: input, shape index: {}]   ;;  %s1428_s1 = inlined_call_operand.vmem [shape: bf16[128,256], index: 1, kind: input, shape index: {}]   ;;  %s1429_s2 = inlined_call_operand.vmem [shape: f32[1,256], index: 2, kind: input, shape index: {}]   ;;  %s1430_s3 = inlined_call_operand.vmem [shape: bf16[512,256], index: 3, kind: output, shape index: {}]  }
   0x1 LB: > { %s1016_s13 = sadd.s32 4294967295, %s1196_s12   ;;  %p1020_p0 = scmp.ge.s32.totalorder %s1196_s12, 1  ;;  %s1196_s12 = sphi %s1219_s12, %s13_s12  }
   0x2   : > { %p138_p1 = scmp.lt.s32.totalorder %s1196_s12, 3 }
   0x4   : > { %p139_p2 = pnand %p1020_p0, %p138_p1 }
   0x5   : > { %s1021_s16 = sshll.u32 (!%p139_p2), %s1016_s13, 5 }
   0x6   : > { %142 = sbr.rel (%p139_p2) target bundleno = 309 (0x135), region = 32  ;;  %p164_p3 = scmp.lt.s32.totalorder (!%p139_p2), %s1021_s16, 63 }
   0xb   : > { %v1150_v0 = vld [vmem:[%s1428_s1 + $0x74] ss:$8 sps:$4 sm:$0xff]   ;;  %v1152_v1 = vld [vmem:[%s1428_s1 + $0x70] ss:$8 sps:$4 sm:$0xff]   ;;  %v1198_v2 = vmov 0   ;;  %s1432_s16 = smov (!%p164_p3, %s1021_s16), 63  ;;  %v227_v33 = vlaneseq }
   0xc   : > { %445 = vmatprep.mubr.bf16.mxu0 %v1198_v2  ;;  %525 = vmatprep.mubr.bf16.mxu1 %v1198_v2  ;;  %v1153_v3 = vld [vmem:[%s1428_s1 + $0x64] ss:$8 sps:$4 sm:$0xff]   ;;  %v1155_v4 = vld [vmem:[%s1428_s1 + $0x60] ss:$8 sps:$4 sm:$0xff]   ;;  %v1156_v5 = vld [vmem:[%s1428_s1 + $0x54] ss:$8 sps:$4 sm:$0xff]  }
   0xd   : > { %413 = vmatprep.subr.bf16.mxu0 %v1150_v0  ;;  %1125 = vmatprep.subr.bf16.mxu1 %v1150_v0  ;;  %s1022_s25 = sshll.u32 %s1432_s16, 2  ;;  %v1158_v6 = vld [vmem:[%s1428_s1 + $0x50] ss:$8 sps:$4 sm:$0xff]   ;;  %v1159_v7 = vld [vmem:[%s1428_s1 + $0x44] ss:$8 sps:$4 sm:$0xff]   ;;  %v228_v34 = vshrl.u32 %v227_v33, 7 }
   0xe   : > { %414 = vmatpush1.bf16.msra.mxu0 %v1152_v1  ;;  %1133 = vmatpush1.bf16.msra.mxu1 %v1152_v1  ;;  %s1256_s5 = scalar_lea.vmem %s1427_s0, %s1022_s25  ;;  %v1161_v8 = vld [vmem:[%s1428_s1 + $0x40] ss:$8 sps:$4 sm:$0xff]   ;;  %v1162_v9 = vld [vmem:[%s1428_s1 + $0x34] ss:$8 sps:$4 sm:$0xff]   ;;  %v1164_v10 = vld [vmem:[%s1428_s1 + $0x30] ss:$8 sps:$4 sm:$0xff]  }
   0xf   : > { %415 = vmatprep.subr.bf16.mxu0 %v1153_v3  ;;  %1126 = vmatprep.subr.bf16.mxu1 %v1153_v3  ;;  %v1165_v11 = vld [vmem:[%s1428_s1 + $0x24] ss:$8 sps:$4 sm:$0xff]   ;;  %v1167_v12 = vld [vmem:[%s1428_s1 + $0x20] ss:$8 sps:$4 sm:$0xff]   ;;  %v1168_v13 = vld [vmem:[%s1428_s1 + $0x14] ss:$8 sps:$4 sm:$0xff]  }
  0x10   : > { %v1170_v14 = vld [vmem:[%s1428_s1 + $0x10] ss:$8 sps:$4 sm:$0xff]   ;;  %v1171_v15 = vld [vmem:[%s1428_s1 + $0x4] ss:$8 sps:$4 sm:$0xff]   ;;  %v1173_v16 = vld [vmem:[%s1428_s1] ss:$8 sps:$4 sm:$0xff]  }
  0x11   : > { %v1174_v17 = vld [vmem:[%s1256_s5] sm:$0xff]   ;;  %v1176_v19 = vld [vmem:[%s1256_s5 + $0x8] sm:$0xff]   ;;  %v1178_v21 = vld [vmem:[%s1256_s5 + $0x10] sm:$0xff]   ;;  %v229_v35 = vsub.s32 0, %v228_v34  ;;  %v233_v37 = vsub.s32 1, %v228_v34  ;;  %s1092_s28 = sshll.u32 %s1432_s16, 3 }
  0x12   : > { %416 = vmatpush1.bf16.msra.mxu0 %v1155_v4  ;;  %1134 = vmatpush1.bf16.msra.mxu1 %v1155_v4  ;;  %v1175_v18 = vld [vmem:[%s1256_s5 + $0x40] sm:$0xff]   ;;  %v1177_v20 = vld [vmem:[%s1256_s5 + $0x48] sm:$0xff]   ;;  %v1179_v22 = vld [vmem:[%s1256_s5 + $0x50] sm:$0xff]   ;;  %s1334_s16 = scalar_lea.vmem %s1430_s3, %s1092_s28 }
  0x13   : > { %417 = vmatprep.subr.bf16.mxu0 %v1156_v5  ;;  %1127 = vmatprep.subr.bf16.mxu1 %v1156_v5  ;;  %v1180_v23 = vld [vmem:[%s1256_s5 + $0x18] sm:$0xff]   ;;  %v1182_v25 = vld [vmem:[%s1256_s5 + $0x20] sm:$0xff]   ;;  %v1184_v27 = vld [vmem:[%s1256_s5 + $0x28] sm:$0xff]  }
  0x14   : > { %v1181_v24 = vld [vmem:[%s1256_s5 + $0x58] sm:$0xff]   ;;  %v1183_v26 = vld [vmem:[%s1256_s5 + $0x60] sm:$0xff]   ;;  %v1185_v28 = vld [vmem:[%s1256_s5 + $0x68] sm:$0xff]  }
  0x15   : > { %v1186_v29 = vld [vmem:[%s1256_s5 + $0x30] sm:$0xff]   ;;  %v1188_v31 = vld [vmem:[%s1256_s5 + $0x38] sm:$0xff]   ;;  %v225_v36 = vld [vmem:[%s1429_s2] sm:$0x3] }
  0x16   : > { %418 = vmatpush1.bf16.msra.mxu0 %v1158_v6  ;;  %1135 = vmatpush1.bf16.msra.mxu1 %v1158_v6  ;;  %v1187_v30 = vld [vmem:[%s1256_s5 + $0x70] sm:$0xff]   ;;  %v1189_v32 = vld [vmem:[%s1256_s5 + $0x78] sm:$0xff]   ;;  %v1318_v38 = vrot.slane %v225_v36, %v229_v35  ;;  %v1320_v39 = vrot.slane %v225_v36, %v233_v37 }
  0x17   : > { %419 = vmatprep.subr.bf16.mxu0 %v1159_v7  ;;  %1128 = vmatprep.subr.bf16.mxu1 %v1159_v7 }
  0x1a   : > { %420 = vmatpush1.bf16.msra.mxu0 %v1161_v8  ;;  %1136 = vmatpush1.bf16.msra.mxu1 %v1161_v8 }
  0x1b   : > { %421 = vmatprep.subr.bf16.mxu0 %v1162_v9  ;;  %1129 = vmatprep.subr.bf16.mxu1 %v1162_v9 }
  0x1e   : > { %422 = vmatpush1.bf16.msra.mxu0 %v1164_v10  ;;  %1137 = vmatpush1.bf16.msra.mxu1 %v1164_v10 }
  0x1f   : > { %423 = vmatprep.subr.bf16.mxu0 %v1165_v11  ;;  %1130 = vmatprep.subr.bf16.mxu1 %v1165_v11 }
  0x22   : > { %424 = vmatpush1.bf16.msra.mxu0 %v1167_v12  ;;  %1138 = vmatpush1.bf16.msra.mxu1 %v1167_v12 }
  0x23   : > { %425 = vmatprep.subr.bf16.mxu0 %v1168_v13  ;;  %1131 = vmatprep.subr.bf16.mxu1 %v1168_v13 }
  0x26   : > { %426 = vmatpush1.bf16.msra.mxu0 %v1170_v14  ;;  %1139 = vmatpush1.bf16.msra.mxu1 %v1170_v14 }
  0x27   : > { %427 = vmatprep.subr.bf16.mxu0 %v1171_v15  ;;  %1132 = vmatprep.subr.bf16.mxu1 %v1171_v15 }
  0x2a   : > { %428 = vmatpush1.bf16.msra.mxu0 %v1173_v16  ;;  %1140 = vmatpush1.bf16.msra.mxu1 %v1173_v16 }
  0x2d   : > { %446 = vmatmul.mubr.bf16.vlgmr.msra.gmra.mxu0 %v1174_v17  ;;  %526 = vmatmul.mubr.bf16.vlgmr.msra.gmra.mxu1 %v1175_v18 }
  0x2e   : > { %455 = vmatprep.mubr.bf16.mxu0 %v1198_v2  ;;  %535 = vmatprep.mubr.bf16.mxu1 %v1198_v2 }
  0x35   : > { %456 = vmatmul.mubr.bf16.gmra.mxu0 %v1176_v19  ;;  %536 = vmatmul.mubr.bf16.gmra.mxu1 %v1177_v20 }
  0x36   : > { %465 = vmatprep.mubr.bf16.mxu0 %v1198_v2  ;;  %545 = vmatprep.mubr.bf16.mxu1 %v1198_v2 }
  0x3d   : > { %466 = vmatmul.mubr.bf16.gmra.mxu0 %v1178_v21  ;;  %546 = vmatmul.mubr.bf16.gmra.mxu1 %v1179_v22 }
  0x3e   : > { %475 = vmatprep.mubr.bf16.mxu0 %v1198_v2  ;;  %555 = vmatprep.mubr.bf16.mxu1 %v1198_v2 }
  0x45   : > { %476 = vmatmul.mubr.bf16.gmra.mxu0 %v1180_v23  ;;  %556 = vmatmul.mubr.bf16.gmra.mxu1 %v1181_v24 }
  0x46   : > { %485 = vmatprep.mubr.bf16.mxu0 %v1198_v2  ;;  %565 = vmatprep.mubr.bf16.mxu1 %v1198_v2 }
  0x4d   : > { %486 = vmatmul.mubr.bf16.gmra.mxu0 %v1182_v25  ;;  %566 = vmatmul.mubr.bf16.gmra.mxu1 %v1183_v26 }
  0x4e   : > { %495 = vmatprep.mubr.bf16.mxu0 %v1198_v2  ;;  %575 = vmatprep.mubr.bf16.mxu1 %v1198_v2 }
  0x55   : > { %496 = vmatmul.mubr.bf16.gmra.mxu0 %v1184_v27  ;;  %576 = vmatmul.mubr.bf16.gmra.mxu1 %v1185_v28 }
  0x56   : > { %505 = vmatprep.mubr.bf16.mxu0 %v1198_v2  ;;  %585 = vmatprep.mubr.bf16.mxu1 %v1198_v2 }
  0x5d   : > { %506 = vmatmul.mubr.bf16.gmra.mxu0 %v1186_v29  ;;  %586 = vmatmul.mubr.bf16.gmra.mxu1 %v1187_v30 }
  0x5e   : > { %515 = vmatprep.mubr.bf16.mxu0 %v1198_v2  ;;  %595 = vmatprep.mubr.bf16.mxu1 %v1198_v2 }
  0x65   : > { %516 = vmatmul.mubr.bf16.gmra.mxu0 %v1188_v31  ;;  %596 = vmatmul.mubr.bf16.gmra.mxu1 %v1189_v32 }
  0xed   : > { %v447_v40 = vpop.f32.mrf.mxu0  ;;  %v527_v41 = vpop.f32.mrf.mxu1 }
  0xee   : > { %v448_v42 = vadd.f32 %v447_v40, %v1318_v38  ;;  %v528_v43 = vadd.f32 %v527_v41, %v1318_v38 }
  0xef   : > { %v449_v44 = vpop.f32.mrf.mxu0  ;;  %v529_v45 = vpop.f32.mrf.mxu1 }
  0xf0   : > { %v606_v46 = vmax.f32 %v448_v42, 0.0  ;;  %v638_v47 = vmax.f32 %v528_v43, 0.0  ;;  %v450_v48 = vadd.f32 %v449_v44, %v1320_v39  ;;  %v530_v49 = vadd.f32 %v529_v45, %v1320_v39 }
  0xf1   : > { %v451_v50 = vpop.f32.mrf.mxu0  ;;  %v531_v51 = vpop.f32.mrf.mxu1 }
  0xf2   : > { %v607_v52 = vmax.f32 %v450_v48, 0.0  ;;  %v639_v53 = vmax.f32 %v530_v49, 0.0  ;;  %v670_v54 = vmin.f32 %v606_v46, 6.0  ;;  %v702_v55 = vmin.f32 %v638_v47, 6.0 }
  0xf3   : > { %v452_v56 = vadd.f32 %v451_v50, %v1318_v38  ;;  %v532_v57 = vadd.f32 %v531_v51, %v1318_v38  ;;  %v453_v58 = vpop.f32.mrf.mxu0  ;;  %v533_v59 = vpop.f32.mrf.mxu1 }
  0xf4   : > { %v671_v60 = vmin.f32 %v607_v52, 6.0  ;;  %v703_v61 = vmin.f32 %v639_v53, 6.0  ;;  %v454_v62 = vadd.f32 %v453_v58, %v1320_v39  ;;  %v534_v63 = vadd.f32 %v533_v59, %v1320_v39 }
  0xf5   : > { %v608_v0 = vmax.f32 %v452_v56, 0.0  ;;  %v640_v1 = vmax.f32 %v532_v57, 0.0  ;;  %v457_v2 = vpop.f32.mrf.mxu0  ;;  %v537_v3 = vpop.f32.mrf.mxu1 }
  0xf6   : > { %v1093_v4 = vpack.c.bf16 %v671_v60, %v670_v54  ;;  %v1109_v5 = vpack.c.bf16 %v703_v61, %v702_v55  ;;  %v609_v6 = vmax.f32 %v454_v62, 0.0  ;;  %v641_v7 = vmax.f32 %v534_v63, 0.0 }
  0xf7   : > { %v672_v8 = vmin.f32 %v608_v0, 6.0  ;;  %v704_v9 = vmin.f32 %v640_v1, 6.0  ;;  %v458_v10 = vadd.f32 %v457_v2, %v1318_v38  ;;  %v538_v11 = vadd.f32 %v537_v3, %v1318_v38  ;;  %v459_v12 = vpop.f32.mrf.mxu0  ;;  %v539_v13 = vpop.f32.mrf.mxu1 }
  0xf8   : > { %926 = vst [vmem:[%s1334_s16] sm:$0xff] %v1093_v4  ;;  %942 = vst [vmem:[%s1334_s16 + $0x80] sm:$0xff] %v1109_v5  ;;  %v673_v14 = vmin.f32 %v609_v6, 6.0  ;;  %v705_v15 = vmin.f32 %v641_v7, 6.0  ;;  %v460_v16 = vadd.f32 %v459_v12, %v1320_v39  ;;  %v540_v17 = vadd.f32 %v539_v13, %v1320_v39 }
  0xf9   : > { %v610_v18 = vmax.f32 %v458_v10, 0.0  ;;  %v642_v19 = vmax.f32 %v538_v11, 0.0  ;;  %v461_v20 = vpop.f32.mrf.mxu0  ;;  %v541_v21 = vpop.f32.mrf.mxu1 }
  0xfa   : > { %v1094_v22 = vpack.c.bf16 %v673_v14, %v672_v8  ;;  %v1110_v23 = vpack.c.bf16 %v705_v15, %v704_v9  ;;  %v611_v24 = vmax.f32 %v460_v16, 0.0  ;;  %v643_v25 = vmax.f32 %v540_v17, 0.0 }
  0xfb   : > { %v674_v26 = vmin.f32 %v610_v18, 6.0  ;;  %v706_v27 = vmin.f32 %v642_v19, 6.0  ;;  %v462_v28 = vadd.f32 %v461_v20, %v1318_v38  ;;  %v542_v29 = vadd.f32 %v541_v21, %v1318_v38  ;;  %v463_v30 = vpop.f32.mrf.mxu0  ;;  %v543_v31 = vpop.f32.mrf.mxu1 }
  0xfc   : > { %927 = vst [vmem:[%s1334_s16 + $0x8] sm:$0xff] %v1094_v22  ;;  %943 = vst [vmem:[%s1334_s16 + $0x88] sm:$0xff] %v1110_v23  ;;  %v675_v32 = vmin.f32 %v611_v24, 6.0  ;;  %v707_v33 = vmin.f32 %v643_v25, 6.0  ;;  %v464_v34 = vadd.f32 %v463_v30, %v1320_v39  ;;  %v544_v35 = vadd.f32 %v543_v31, %v1320_v39 }
  0xfd   : > { %v612_v36 = vmax.f32 %v462_v28, 0.0  ;;  %v644_v37 = vmax.f32 %v542_v29, 0.0  ;;  %v467_v40 = vpop.f32.mrf.mxu0  ;;  %v547_v41 = vpop.f32.mrf.mxu1 }
  0xfe   : > { %v1095_v42 = vpack.c.bf16 %v675_v32, %v674_v26  ;;  %v1111_v43 = vpack.c.bf16 %v707_v33, %v706_v27  ;;  %v613_v44 = vmax.f32 %v464_v34, 0.0  ;;  %v645_v45 = vmax.f32 %v544_v35, 0.0 }
  0xff   : > { %v676_v46 = vmin.f32 %v612_v36, 6.0  ;;  %v708_v47 = vmin.f32 %v644_v37, 6.0  ;;  %v468_v48 = vadd.f32 %v467_v40, %v1318_v38  ;;  %v548_v49 = vadd.f32 %v547_v41, %v1318_v38  ;;  %v469_v50 = vpop.f32.mrf.mxu0  ;;  %v549_v51 = vpop.f32.mrf.mxu1 }
 0x100   : > { %928 = vst [vmem:[%s1334_s16 + $0x10] sm:$0xff] %v1095_v42  ;;  %944 = vst [vmem:[%s1334_s16 + $0x90] sm:$0xff] %v1111_v43  ;;  %v677_v52 = vmin.f32 %v613_v44, 6.0  ;;  %v709_v53 = vmin.f32 %v645_v45, 6.0  ;;  %v470_v54 = vadd.f32 %v469_v50, %v1320_v39  ;;  %v550_v55 = vadd.f32 %v549_v51, %v1320_v39 }
 0x101   : > { %v614_v56 = vmax.f32 %v468_v48, 0.0  ;;  %v646_v57 = vmax.f32 %v548_v49, 0.0  ;;  %v471_v58 = vpop.f32.mrf.mxu0  ;;  %v551_v59 = vpop.f32.mrf.mxu1 }
 0x102   : > { %v1096_v60 = vpack.c.bf16 %v677_v52, %v676_v46  ;;  %v1112_v61 = vpack.c.bf16 %v709_v53, %v708_v47  ;;  %v615_v62 = vmax.f32 %v470_v54, 0.0  ;;  %v647_v63 = vmax.f32 %v550_v55, 0.0 }
 0x103   : > { %v678_v0 = vmin.f32 %v614_v56, 6.0  ;;  %v710_v1 = vmin.f32 %v646_v57, 6.0  ;;  %v472_v2 = vadd.f32 %v471_v58, %v1318_v38  ;;  %v552_v3 = vadd.f32 %v551_v59, %v1318_v38  ;;  %v473_v4 = vpop.f32.mrf.mxu0  ;;  %v553_v5 = vpop.f32.mrf.mxu1 }
 0x104   : > { %929 = vst [vmem:[%s1334_s16 + $0x18] sm:$0xff] %v1096_v60  ;;  %945 = vst [vmem:[%s1334_s16 + $0x98] sm:$0xff] %v1112_v61  ;;  %v679_v6 = vmin.f32 %v615_v62, 6.0  ;;  %v711_v7 = vmin.f32 %v647_v63, 6.0  ;;  %v474_v8 = vadd.f32 %v473_v4, %v1320_v39  ;;  %v554_v9 = vadd.f32 %v553_v5, %v1320_v39 }
 0x105   : > { %v616_v10 = vmax.f32 %v472_v2, 0.0  ;;  %v648_v11 = vmax.f32 %v552_v3, 0.0  ;;  %v477_v12 = vpop.f32.mrf.mxu0  ;;  %v557_v13 = vpop.f32.mrf.mxu1 }
 0x106   : > { %v1097_v14 = vpack.c.bf16 %v679_v6, %v678_v0  ;;  %v1113_v15 = vpack.c.bf16 %v711_v7, %v710_v1  ;;  %v617_v16 = vmax.f32 %v474_v8, 0.0  ;;  %v649_v17 = vmax.f32 %v554_v9, 0.0 }
 0x107   : > { %v680_v18 = vmin.f32 %v616_v10, 6.0  ;;  %v712_v19 = vmin.f32 %v648_v11, 6.0  ;;  %v478_v20 = vadd.f32 %v477_v12, %v1318_v38  ;;  %v558_v21 = vadd.f32 %v557_v13, %v1318_v38  ;;  %v479_v22 = vpop.f32.mrf.mxu0  ;;  %v559_v23 = vpop.f32.mrf.mxu1 }
 0x108   : > { %930 = vst [vmem:[%s1334_s16 + $0x20] sm:$0xff] %v1097_v14  ;;  %946 = vst [vmem:[%s1334_s16 + $0xa0] sm:$0xff] %v1113_v15  ;;  %v681_v24 = vmin.f32 %v617_v16, 6.0  ;;  %v713_v25 = vmin.f32 %v649_v17, 6.0  ;;  %v480_v26 = vadd.f32 %v479_v22, %v1320_v39  ;;  %v560_v27 = vadd.f32 %v559_v23, %v1320_v39 }
 0x109   : > { %v618_v28 = vmax.f32 %v478_v20, 0.0  ;;  %v650_v29 = vmax.f32 %v558_v21, 0.0  ;;  %v481_v30 = vpop.f32.mrf.mxu0  ;;  %v561_v31 = vpop.f32.mrf.mxu1 }
 0x10a   : > { %v1098_v32 = vpack.c.bf16 %v681_v24, %v680_v18  ;;  %v1114_v33 = vpack.c.bf16 %v713_v25, %v712_v19  ;;  %v619_v34 = vmax.f32 %v480_v26, 0.0  ;;  %v651_v35 = vmax.f32 %v560_v27, 0.0 }
 0x10b   : > { %v682_v36 = vmin.f32 %v618_v28, 6.0  ;;  %v714_v37 = vmin.f32 %v650_v29, 6.0  ;;  %v482_v40 = vadd.f32 %v481_v30, %v1318_v38  ;;  %v562_v41 = vadd.f32 %v561_v31, %v1318_v38  ;;  %v483_v42 = vpop.f32.mrf.mxu0  ;;  %v563_v43 = vpop.f32.mrf.mxu1 }
 0x10c   : > { %931 = vst [vmem:[%s1334_s16 + $0x28] sm:$0xff] %v1098_v32  ;;  %947 = vst [vmem:[%s1334_s16 + $0xa8] sm:$0xff] %v1114_v33  ;;  %v683_v44 = vmin.f32 %v619_v34, 6.0  ;;  %v715_v45 = vmin.f32 %v651_v35, 6.0  ;;  %v484_v46 = vadd.f32 %v483_v42, %v1320_v39  ;;  %v564_v47 = vadd.f32 %v563_v43, %v1320_v39 }
 0x10d   : > { %v620_v48 = vmax.f32 %v482_v40, 0.0  ;;  %v652_v49 = vmax.f32 %v562_v41, 0.0  ;;  %v487_v50 = vpop.f32.mrf.mxu0  ;;  %v567_v51 = vpop.f32.mrf.mxu1 }
 0x10e   : > { %v1099_v52 = vpack.c.bf16 %v683_v44, %v682_v36  ;;  %v1115_v53 = vpack.c.bf16 %v715_v45, %v714_v37  ;;  %v621_v54 = vmax.f32 %v484_v46, 0.0  ;;  %v653_v55 = vmax.f32 %v564_v47, 0.0 }
 0x10f   : > { %v684_v56 = vmin.f32 %v620_v48, 6.0  ;;  %v716_v57 = vmin.f32 %v652_v49, 6.0  ;;  %v488_v58 = vadd.f32 %v487_v50, %v1318_v38  ;;  %v568_v59 = vadd.f32 %v567_v51, %v1318_v38  ;;  %v489_v60 = vpop.f32.mrf.mxu0  ;;  %v569_v61 = vpop.f32.mrf.mxu1 }
 0x110   : > { %932 = vst [vmem:[%s1334_s16 + $0x30] sm:$0xff] %v1099_v52  ;;  %948 = vst [vmem:[%s1334_s16 + $0xb0] sm:$0xff] %v1115_v53  ;;  %v685_v62 = vmin.f32 %v621_v54, 6.0  ;;  %v717_v63 = vmin.f32 %v653_v55, 6.0  ;;  %v490_v0 = vadd.f32 %v489_v60, %v1320_v39  ;;  %v570_v1 = vadd.f32 %v569_v61, %v1320_v39 }
 0x111   : > { %v622_v2 = vmax.f32 %v488_v58, 0.0  ;;  %v654_v3 = vmax.f32 %v568_v59, 0.0  ;;  %v491_v4 = vpop.f32.mrf.mxu0  ;;  %v571_v5 = vpop.f32.mrf.mxu1 }
 0x112   : > { %v1100_v6 = vpack.c.bf16 %v685_v62, %v684_v56  ;;  %v1116_v7 = vpack.c.bf16 %v717_v63, %v716_v57  ;;  %v623_v8 = vmax.f32 %v490_v0, 0.0  ;;  %v655_v9 = vmax.f32 %v570_v1, 0.0 }
 0x113   : > { %v686_v10 = vmin.f32 %v622_v2, 6.0  ;;  %v718_v11 = vmin.f32 %v654_v3, 6.0  ;;  %v492_v12 = vadd.f32 %v491_v4, %v1318_v38  ;;  %v572_v13 = vadd.f32 %v571_v5, %v1318_v38  ;;  %v493_v14 = vpop.f32.mrf.mxu0  ;;  %v573_v15 = vpop.f32.mrf.mxu1 }
 0x114   : > { %933 = vst [vmem:[%s1334_s16 + $0x38] sm:$0xff] %v1100_v6  ;;  %949 = vst [vmem:[%s1334_s16 + $0xb8] sm:$0xff] %v1116_v7  ;;  %v687_v16 = vmin.f32 %v623_v8, 6.0  ;;  %v719_v17 = vmin.f32 %v655_v9, 6.0  ;;  %v494_v18 = vadd.f32 %v493_v14, %v1320_v39  ;;  %v574_v19 = vadd.f32 %v573_v15, %v1320_v39 }
 0x115   : > { %v624_v20 = vmax.f32 %v492_v12, 0.0  ;;  %v656_v21 = vmax.f32 %v572_v13, 0.0  ;;  %v497_v22 = vpop.f32.mrf.mxu0  ;;  %v577_v23 = vpop.f32.mrf.mxu1 }
 0x116   : > { %v1101_v24 = vpack.c.bf16 %v687_v16, %v686_v10  ;;  %v1117_v25 = vpack.c.bf16 %v719_v17, %v718_v11  ;;  %v625_v26 = vmax.f32 %v494_v18, 0.0  ;;  %v657_v27 = vmax.f32 %v574_v19, 0.0 }
 0x117   : > { %v688_v28 = vmin.f32 %v624_v20, 6.0  ;;  %v720_v29 = vmin.f32 %v656_v21, 6.0  ;;  %v498_v30 = vadd.f32 %v497_v22, %v1318_v38  ;;  %v578_v31 = vadd.f32 %v577_v23, %v1318_v38  ;;  %v499_v32 = vpop.f32.mrf.mxu0  ;;  %v579_v33 = vpop.f32.mrf.mxu1 }
 0x118   : > { %934 = vst [vmem:[%s1334_s16 + $0x40] sm:$0xff] %v1101_v24  ;;  %950 = vst [vmem:[%s1334_s16 + $0xc0] sm:$0xff] %v1117_v25  ;;  %v689_v34 = vmin.f32 %v625_v26, 6.0  ;;  %v721_v35 = vmin.f32 %v657_v27, 6.0  ;;  %v500_v36 = vadd.f32 %v499_v32, %v1320_v39  ;;  %v580_v37 = vadd.f32 %v579_v33, %v1320_v39 }
 0x119   : > { %v626_v40 = vmax.f32 %v498_v30, 0.0  ;;  %v658_v41 = vmax.f32 %v578_v31, 0.0  ;;  %v501_v42 = vpop.f32.mrf.mxu0  ;;  %v581_v43 = vpop.f32.mrf.mxu1 }
 0x11a   : > { %v1102_v44 = vpack.c.bf16 %v689_v34, %v688_v28  ;;  %v1118_v45 = vpack.c.bf16 %v721_v35, %v720_v29  ;;  %v627_v46 = vmax.f32 %v500_v36, 0.0  ;;  %v659_v47 = vmax.f32 %v580_v37, 0.0 }
 0x11b   : > { %v690_v48 = vmin.f32 %v626_v40, 6.0  ;;  %v722_v49 = vmin.f32 %v658_v41, 6.0  ;;  %v502_v50 = vadd.f32 %v501_v42, %v1318_v38  ;;  %v582_v51 = vadd.f32 %v581_v43, %v1318_v38  ;;  %v503_v52 = vpop.f32.mrf.mxu0  ;;  %v583_v53 = vpop.f32.mrf.mxu1 }
 0x11c   : > { %935 = vst [vmem:[%s1334_s16 + $0x48] sm:$0xff] %v1102_v44  ;;  %951 = vst [vmem:[%s1334_s16 + $0xc8] sm:$0xff] %v1118_v45  ;;  %v691_v54 = vmin.f32 %v627_v46, 6.0  ;;  %v723_v55 = vmin.f32 %v659_v47, 6.0  ;;  %v504_v56 = vadd.f32 %v503_v52, %v1320_v39  ;;  %v584_v57 = vadd.f32 %v583_v53, %v1320_v39 }
 0x11d   : > { %v628_v58 = vmax.f32 %v502_v50, 0.0  ;;  %v660_v59 = vmax.f32 %v582_v51, 0.0  ;;  %v507_v60 = vpop.f32.mrf.mxu0  ;;  %v587_v61 = vpop.f32.mrf.mxu1 }
 0x11e   : > { %v1103_v62 = vpack.c.bf16 %v691_v54, %v690_v48  ;;  %v1119_v63 = vpack.c.bf16 %v723_v55, %v722_v49  ;;  %v629_v0 = vmax.f32 %v504_v56, 0.0  ;;  %v661_v1 = vmax.f32 %v584_v57, 0.0 }
 0x11f   : > { %v692_v2 = vmin.f32 %v628_v58, 6.0  ;;  %v724_v3 = vmin.f32 %v660_v59, 6.0  ;;  %v508_v4 = vadd.f32 %v507_v60, %v1318_v38  ;;  %v588_v5 = vadd.f32 %v587_v61, %v1318_v38  ;;  %v509_v6 = vpop.f32.mrf.mxu0  ;;  %v589_v7 = vpop.f32.mrf.mxu1 }
 0x120   : > { %936 = vst [vmem:[%s1334_s16 + $0x50] sm:$0xff] %v1103_v62  ;;  %952 = vst [vmem:[%s1334_s16 + $0xd0] sm:$0xff] %v1119_v63  ;;  %v693_v8 = vmin.f32 %v629_v0, 6.0  ;;  %v725_v9 = vmin.f32 %v661_v1, 6.0  ;;  %v510_v10 = vadd.f32 %v509_v6, %v1320_v39  ;;  %v590_v11 = vadd.f32 %v589_v7, %v1320_v39 }
 0x121   : > { %v630_v12 = vmax.f32 %v508_v4, 0.0  ;;  %v662_v13 = vmax.f32 %v588_v5, 0.0  ;;  %v511_v14 = vpop.f32.mrf.mxu0  ;;  %v591_v15 = vpop.f32.mrf.mxu1 }
 0x122   : > { %v1104_v16 = vpack.c.bf16 %v693_v8, %v692_v2  ;;  %v1120_v17 = vpack.c.bf16 %v725_v9, %v724_v3  ;;  %v631_v18 = vmax.f32 %v510_v10, 0.0  ;;  %v663_v19 = vmax.f32 %v590_v11, 0.0 }
 0x123   : > { %v694_v20 = vmin.f32 %v630_v12, 6.0  ;;  %v726_v21 = vmin.f32 %v662_v13, 6.0  ;;  %v512_v22 = vadd.f32 %v511_v14, %v1318_v38  ;;  %v592_v23 = vadd.f32 %v591_v15, %v1318_v38  ;;  %v513_v24 = vpop.f32.mrf.mxu0  ;;  %v593_v25 = vpop.f32.mrf.mxu1 }
 0x124   : > { %937 = vst [vmem:[%s1334_s16 + $0x58] sm:$0xff] %v1104_v16  ;;  %953 = vst [vmem:[%s1334_s16 + $0xd8] sm:$0xff] %v1120_v17  ;;  %v695_v26 = vmin.f32 %v631_v18, 6.0  ;;  %v727_v27 = vmin.f32 %v663_v19, 6.0  ;;  %v514_v28 = vadd.f32 %v513_v24, %v1320_v39  ;;  %v594_v29 = vadd.f32 %v593_v25, %v1320_v39 }
 0x125   : > { %v632_v30 = vmax.f32 %v512_v22, 0.0  ;;  %v664_v31 = vmax.f32 %v592_v23, 0.0  ;;  %v517_v32 = vpop.f32.mrf.mxu0  ;;  %v597_v33 = vpop.f32.mrf.mxu1 }
 0x126   : > { %v1105_v34 = vpack.c.bf16 %v695_v26, %v694_v20  ;;  %v1121_v35 = vpack.c.bf16 %v727_v27, %v726_v21  ;;  %v633_v36 = vmax.f32 %v514_v28, 0.0  ;;  %v665_v37 = vmax.f32 %v594_v29, 0.0 }
 0x127   : > { %v696_v40 = vmin.f32 %v632_v30, 6.0  ;;  %v728_v41 = vmin.f32 %v664_v31, 6.0  ;;  %v518_v42 = vadd.f32 %v517_v32, %v1318_v38  ;;  %v598_v43 = vadd.f32 %v597_v33, %v1318_v38  ;;  %v519_v44 = vpop.f32.mrf.mxu0  ;;  %v599_v45 = vpop.f32.mrf.mxu1 }
 0x128   : > { %938 = vst [vmem:[%s1334_s16 + $0x60] sm:$0xff] %v1105_v34  ;;  %954 = vst [vmem:[%s1334_s16 + $0xe0] sm:$0xff] %v1121_v35  ;;  %v697_v46 = vmin.f32 %v633_v36, 6.0  ;;  %v729_v47 = vmin.f32 %v665_v37, 6.0  ;;  %v520_v48 = vadd.f32 %v519_v44, %v1320_v39  ;;  %v600_v49 = vadd.f32 %v599_v45, %v1320_v39 }
 0x129   : > { %v634_v50 = vmax.f32 %v518_v42, 0.0  ;;  %v666_v51 = vmax.f32 %v598_v43, 0.0  ;;  %v521_v52 = vpop.f32.mrf.mxu0  ;;  %v601_v53 = vpop.f32.mrf.mxu1 }
 0x12a   : > { %v1106_v54 = vpack.c.bf16 %v697_v46, %v696_v40  ;;  %v1122_v55 = vpack.c.bf16 %v729_v47, %v728_v41  ;;  %v635_v56 = vmax.f32 %v520_v48, 0.0  ;;  %v667_v57 = vmax.f32 %v600_v49, 0.0 }
 0x12b   : > { %v698_v58 = vmin.f32 %v634_v50, 6.0  ;;  %v730_v59 = vmin.f32 %v666_v51, 6.0  ;;  %v522_v60 = vadd.f32 %v521_v52, %v1318_v38  ;;  %v602_v61 = vadd.f32 %v601_v53, %v1318_v38  ;;  %v523_v62 = vpop.f32.mrf.mxu0  ;;  %v603_v63 = vpop.f32.mrf.mxu1 }
 0x12c   : > { %939 = vst [vmem:[%s1334_s16 + $0x68] sm:$0xff] %v1106_v54  ;;  %955 = vst [vmem:[%s1334_s16 + $0xe8] sm:$0xff] %v1122_v55  ;;  %v699_v0 = vmin.f32 %v635_v56, 6.0  ;;  %v731_v1 = vmin.f32 %v667_v57, 6.0  ;;  %v524_v2 = vadd.f32 %v523_v62, %v1320_v39  ;;  %v604_v3 = vadd.f32 %v603_v63, %v1320_v39 }
 0x12d   : > { %v636_v4 = vmax.f32 %v522_v60, 0.0  ;;  %v668_v5 = vmax.f32 %v602_v61, 0.0 }
 0x12e   : > { %v1107_v6 = vpack.c.bf16 %v699_v0, %v698_v58  ;;  %v1123_v7 = vpack.c.bf16 %v731_v1, %v730_v59  ;;  %v637_v8 = vmax.f32 %v524_v2, 0.0  ;;  %v669_v9 = vmax.f32 %v604_v3, 0.0 }
 0x12f   : > { %v700_v38 = vmin.f32 %v636_v4, 6.0  ;;  %v732_v10 = vmin.f32 %v668_v5, 6.0 }
 0x130   : > { %940 = vst [vmem:[%s1334_s16 + $0x70] sm:$0xff] %v1107_v6  ;;  %956 = vst [vmem:[%s1334_s16 + $0xf0] sm:$0xff] %v1123_v7  ;;  %v701_v11 = vmin.f32 %v637_v8, 6.0  ;;  %v733_v12 = vmin.f32 %v669_v9, 6.0 }
 0x132   : > { %v1108_v13 = vpack.c.bf16 %v701_v11, %v700_v38  ;;  %v1124_v14 = vpack.c.bf16 %v733_v12, %v732_v10 }
 0x134   : > { %941 = vst [vmem:[%s1334_s16 + $0x78] sm:$0xff] %v1108_v13  ;;  %957 = vst [vmem:[%s1334_s16 + $0xf8] sm:$0xff] %v1124_v14 }
 0x135 PF: > { %s13_s12 = sadd.s32 1, %s1196_s12  }
 0x136   : > { %p10_p4 = scmp.ge.s32.totalorder %s13_s12, 4  }
 0x138   :  { %12 = sbr.rel (!%p10_p4) target bundleno = 1 (0x1), region = 62 }

// kernel: inception_v3_module_e.10
= control target key start
LH: loop header
LB: loop body
LE: loop exit
PB: predicated region body
PF: predicated region fallthrough
CT: control target
= control target key end

     0   :  { %s2270_s12 = smov 0   ;;  %s2272_s13 = smov 0   ;;  %s2696_s0 = inlined_call_operand.vmem [shape: bf16[98,1152], index: 0, kind: input, shape index: {}]   ;;  %s2697_s1 = inlined_call_operand.vmem [shape: bf16[1152,128], index: 1, kind: input, shape index: {}]   ;;  %s2698_s2 = inlined_call_operand.vmem [shape: f32[1,128], index: 2, kind: input, shape index: {}]   ;;  %s2699_s3 = inlined_call_operand.vmem [shape: f32[98,128], index: 3, kind: output, shape index: {}]  }
   0x1   :  { %s2274_s14 = smov 0  }
   0x2 LB: > { %s2283_s15 = sadd.s32 4294967295, %s2216_s14   ;;  %s2285_s16 = sadd.s32 1, %s2216_s14   ;;  %s2216_s14 = sphi %s2274_s14, %s2714_s14   ;;  %s2212_s13 = sphi %s2272_s13, %s2713_s13   ;;  %s2208_s12 = sphi %s2270_s12, %s2712_s12  }
   0x3   : > { %s85_s17 = ssub.s32 %s2216_s14, %s2285_s16  ;;  %s88_s18 = sadd.s32 1, %s2212_s13 }
   0x4   : > { %p86_p0 = scmp.eq.s32.totalorder %s85_s17, 0  ;;  %p98_p1 = scmp.ne.s32.totalorder %s2212_s13, %s2208_s12 }
   0x5   : > { %p99_p2 = scmp.eq.s32.totalorder %s2283_s15, 1  ;;  %p1604_p3 = scmp.ge.s32.totalorder %s2216_s14, 1 }
   0x6   : > { %s2293_s19 = scalar_select %p86_p0, %s2212_s13, %s88_s18  }
   0x7   : > { %p2295_p4 = por %p99_p2, %p98_p1  ;;  %p149_p5 = scmp.lt.s32.totalorder %s2216_s14, 3 }
   0x9   : > { %p150_p6 = pnand %p1604_p3, %p149_p5 }
   0xb   : > { %153 = sbr.rel (%p150_p6) target bundleno = 361 (0x169), region = 32 }
  0x10   : > { %v2038_v0 = vld [vmem:[%s2697_s1 + $0x78] sm:$0xff]   ;;  %v2042_v4 = vld [vmem:[%s2697_s1 + $0x70] sm:$0xff]   ;;  %v2046_v8 = vld [vmem:[%s2697_s1 + $0x68] sm:$0xff]   ;;  %s2345_s30 = sshll.u32 %s2283_s15, 3  ;;  %s175_s8 = sand.u32 1, %s2208_s12  }
  0x11   : > { %v2039_v1 = vld [vmem:[%s2697_s1 + $0xf8] sm:$0xff]   ;;  %1737 = vmatprep.subr.bf16.mxu0 %v2038_v0  ;;  %v2043_v5 = vld [vmem:[%s2697_s1 + $0xf0] sm:$0xff]   ;;  %v2047_v9 = vld [vmem:[%s2697_s1 + $0xe8] sm:$0xff]   ;;  %p184_p7 = scmp.lt.s32.totalorder %s2345_s30, 12  ;;  %s1605_s9 = sshll.u32 %s175_s8, 6 }
  0x12   : > { %v2040_v2 = vld [vmem:[%s2697_s1 + $0x38] sm:$0xff]   ;;  %1777 = vmatprep.subr.bf16.mxu1 %v2039_v1  ;;  %v2044_v6 = vld [vmem:[%s2697_s1 + $0x30] sm:$0xff]   ;;  %v2048_v10 = vld [vmem:[%s2697_s1 + $0x28] sm:$0xff]   ;;  %s2625_s12 = scalar_lea.vmem [#allocation2], %s1605_s9   ;;  %s1365_s10 = ssub.s32 (%p2295_p4), 13, %s2345_s30 }
  0x13   : > { %v2041_v3 = vld [vmem:[%s2697_s1 + $0xb8] sm:$0xff]   ;;  %1738 = vmatpush3.bf16.msra.mxu0 %v2040_v2  ;;  %v2045_v7 = vld [vmem:[%s2697_s1 + $0xb0] sm:$0xff]   ;;  %v2049_v11 = vld [vmem:[%s2697_s1 + $0xa8] sm:$0xff]   ;;  %s185_s24 = scalar_select %p184_p7, %s2345_s30, 12 }
  0x14   : > { %1778 = vmatpush3.bf16.msra.mxu1 %v2041_v3  ;;  %1739 = vmatprep.subr.bf16.mxu0 %v2042_v4  ;;  %v2050_v12 = vld [vmem:[%s2697_s1 + $0x60] sm:$0xff]   ;;  %v2054_v16 = vld [vmem:[%s2697_s1 + $0x58] sm:$0xff]   ;;  %v2058_v20 = vld [vmem:[%s2697_s1 + $0x50] sm:$0xff]   ;;  %s1734_s11 = sshll.u32 (%p2295_p4), %s2283_s15, 6  ;;  %p1366_p8 = scmp.lt.s32.totalorder (%p2295_p4), %s1365_s10, 8 }
  0x15   : > { %1779 = vmatprep.subr.bf16.mxu1 %v2043_v5  ;;  %v2051_v13 = vld [vmem:[%s2697_s1 + $0xe0] sm:$0xff]   ;;  %v2055_v17 = vld [vmem:[%s2697_s1 + $0xd8] sm:$0xff]   ;;  %v2059_v21 = vld [vmem:[%s2697_s1 + $0xd0] sm:$0xff]   ;;  %s1949_s7 = smul.u32 36, %s185_s24  ;;  %s2642_s18 = scalar_lea.vmem (%p2295_p4), %s2699_s3, %s1734_s11  }
  0x16   : > { %v2052_v14 = vld [vmem:[%s2697_s1 + $0x20] sm:$0xff]   ;;  %v2056_v18 = vld [vmem:[%s2697_s1 + $0x18] sm:$0xff]   ;;  %v2060_v22 = vld [vmem:[%s2697_s1 + $0x10] sm:$0xff]  }
  0x17   : > { %1740 = vmatpush3.bf16.msra.mxu0 %v2044_v6  ;;  %v2053_v15 = vld [vmem:[%s2697_s1 + $0xa0] sm:$0xff]   ;;  %v2057_v19 = vld [vmem:[%s2697_s1 + $0x98] sm:$0xff]   ;;  %v2061_v23 = vld [vmem:[%s2697_s1 + $0x90] sm:$0xff]   ;;  %s2397_s24 = scalar_lea.vmem %s2696_s0, %s1949_s7 }
  0x18   : > { %1780 = vmatpush3.bf16.msra.mxu1 %v2045_v7  ;;  %1741 = vmatprep.subr.bf16.mxu0 %v2046_v8  ;;  %v2062_v24 = vld [vmem:[%s2697_s1 + $0x48] sm:$0xff]   ;;  %v2066_v28 = vld [vmem:[%s2697_s1 + $0x40] sm:$0xff]   ;;  %v2076_v36 = vld [vmem:[%s2697_s1 + $0x178] sm:$0xff]  }
  0x19   : > { %1781 = vmatprep.subr.bf16.mxu1 %v2047_v9  ;;  %v2063_v25 = vld [vmem:[%s2697_s1 + $0xc8] sm:$0xff]   ;;  %v2067_v29 = vld [vmem:[%s2697_s1 + $0xc0] sm:$0xff]   ;;  %v2077_v37 = vld [vmem:[%s2697_s1 + $0x1f8] sm:$0xff]  }
  0x1a   : > { %v2064_v26 = vld [vmem:[%s2697_s1 + $0x8] sm:$0xff]   ;;  %v2068_v30 = vld [vmem:[%s2697_s1] sm:$0xff]   ;;  %v2078_v38 = vld [vmem:[%s2697_s1 + $0x138] sm:$0xff]  }
  0x1b   : > { %1742 = vmatpush3.bf16.msra.mxu0 %v2048_v10  ;;  %v2065_v27 = vld [vmem:[%s2697_s1 + $0x88] sm:$0xff]   ;;  %v2069_v31 = vld [vmem:[%s2697_s1 + $0x80] sm:$0xff]   ;;  %v2079_v39 = vld [vmem:[%s2697_s1 + $0x1b8] sm:$0xff]  }
  0x1c   : > { %1782 = vmatpush3.bf16.msra.mxu1 %v2049_v11  ;;  %1743 = vmatprep.subr.bf16.mxu0 %v2050_v12  ;;  %v2070_v32 = vld [vmem:[%s2397_s24] ss:$36 sps:$4 sm:$0xff]   ;;  %v2073_v34 = vld [vmem:[%s2397_s24 + $0x8] ss:$36 sps:$4 sm:$0xff]   ;;  %v2080_v40 = vld [vmem:[%s2697_s1 + $0x170] sm:$0xff]  }
  0x1d   : > { %1783 = vmatprep.subr.bf16.mxu1 %v2051_v13  ;;  %v2072_v33 = vld [vmem:[%s2397_s24 + $0x4] ss:$36 sps:$4 sm:$0xff]   ;;  %v2075_v35 = vld [vmem:[%s2397_s24 + $0xc] ss:$36 sps:$4 sm:$0xff]   ;;  %v2086_v45 = vld [vmem:[%s2397_s24 + $0x54] ss:$36 sps:$4 sm:$0xff]  }
  0x1e   : > { %1040 = vmatprep.mubr.bf16.mxu0 %v2072_v33  ;;  %1105 = vmatprep.mubr.bf16.mxu1 %v2075_v35  ;;  %v2081_v41 = vld [vmem:[%s2697_s1 + $0x1f0] sm:$0xff]   ;;  %v2088_v46 = vld [vmem:[%s2397_s24 + $0x48] ss:$36 sps:$4 sm:$0xff]   ;;  %v2094_v52 = vld [vmem:[%s2697_s1 + $0x160] sm:$0xff]  }
  0x1f   : > { %1744 = vmatpush3.bf16.msra.mxu0 %v2052_v14  ;;  %v2082_v42 = vld [vmem:[%s2697_s1 + $0x130] sm:$0xff]   ;;  %v2090_v48 = vld [vmem:[%s2697_s1 + $0x168] sm:$0xff]   ;;  %v2095_v53 = vld [vmem:[%s2697_s1 + $0x1e0] sm:$0xff]  }
  0x20   : > { %1784 = vmatpush3.bf16.msra.mxu1 %v2053_v15  ;;  %1745 = vmatprep.subr.bf16.mxu0 %v2054_v16  ;;  %v2083_v43 = vld [vmem:[%s2697_s1 + $0x1b0] sm:$0xff]   ;;  %v2091_v49 = vld [vmem:[%s2697_s1 + $0x1e8] sm:$0xff]   ;;  %v2096_v54 = vld [vmem:[%s2697_s1 + $0x120] sm:$0xff]  }
  0x21   : > { %1785 = vmatprep.subr.bf16.mxu1 %v2055_v17  ;;  %v2084_v44 = vld [vmem:[%s2397_s24 + $0x4c] ss:$36 sps:$4 sm:$0xff]   ;;  %v2097_v55 = vld [vmem:[%s2697_s1 + $0x1a0] sm:$0xff]   ;;  %v2098_v56 = vld [vmem:[%s2397_s24 + $0x94] ss:$36 sps:$4 sm:$0xff]  }
  0x22   : > { %v2089_v47 = vld [vmem:[%s2397_s24 + $0x50] ss:$36 sps:$4 sm:$0xff]   ;;  %v2092_v50 = vld [vmem:[%s2697_s1 + $0x128] sm:$0xff]   ;;  %v2100_v57 = vld [vmem:[%s2397_s24 + $0x9c] ss:$36 sps:$4 sm:$0xff]  }
  0x23   : > { %1746 = vmatpush3.bf16.msra.mxu0 %v2056_v18  ;;  %v2093_v51 = vld [vmem:[%s2697_s1 + $0x1a8] sm:$0xff]   ;;  %v2102_v58 = vld [vmem:[%s2397_s24 + $0x90] ss:$36 sps:$4 sm:$0xff]   ;;  %v2103_v59 = vld [vmem:[%s2397_s24 + $0x98] ss:$36 sps:$4 sm:$0xff]  }
  0x24   : > { %1786 = vmatpush3.bf16.msra.mxu1 %v2057_v19  ;;  %1747 = vmatprep.subr.bf16.mxu0 %v2058_v20  ;;  %v2104_v60 = vld [vmem:[%s2697_s1 + $0x158] sm:$0xff]   ;;  %v2108_v0 = vld [vmem:[%s2697_s1 + $0x150] sm:$0xff]   ;;  %v2114_v5 = vld [vmem:[%s2397_s24 + $0xe4] ss:$36 sps:$4 sm:$0xff]  }
  0x25   : > { %1787 = vmatprep.subr.bf16.mxu1 %v2059_v21  ;;  %v2105_v61 = vld [vmem:[%s2697_s1 + $0x1d8] sm:$0xff]   ;;  %v2109_v1 = vld [vmem:[%s2697_s1 + $0x1d0] sm:$0xff]   ;;  %v2117_v7 = vld [vmem:[%s2397_s24 + $0xe0] ss:$36 sps:$4 sm:$0xff]  }
  0x26   : > { %v2106_v62 = vld [vmem:[%s2697_s1 + $0x118] sm:$0xff]   ;;  %v2110_v2 = vld [vmem:[%s2697_s1 + $0x110] sm:$0xff]   ;;  %v2118_v8 = vld [vmem:[%s2697_s1 + $0x148] sm:$0xff]  }
  0x27   : > { %1748 = vmatpush3.bf16.msra.mxu0 %v2060_v22  ;;  %v2107_v63 = vld [vmem:[%s2697_s1 + $0x198] sm:$0xff]   ;;  %v2111_v3 = vld [vmem:[%s2697_s1 + $0x190] sm:$0xff]   ;;  %v2119_v9 = vld [vmem:[%s2697_s1 + $0x1c8] sm:$0xff]  }
  0x28   : > { %1788 = vmatpush3.bf16.msra.mxu1 %v2061_v23  ;;  %1749 = vmatprep.subr.bf16.mxu0 %v2062_v24  ;;  %v2112_v4 = vld [vmem:[%s2397_s24 + $0xdc] ss:$36 sps:$4 sm:$0xff]   ;;  %v2120_v10 = vld [vmem:[%s2697_s1 + $0x108] sm:$0xff]   ;;  %v2126_v16 = vld [vmem:[%s2397_s24 + $0x10] ss:$36 sps:$4 sm:$0xff]  }
  0x29   : > { %1789 = vmatprep.subr.bf16.mxu1 %v2063_v25  ;;  %v2116_v6 = vld [vmem:[%s2397_s24 + $0xd8] ss:$36 sps:$4 sm:$0xff]   ;;  %v2121_v11 = vld [vmem:[%s2697_s1 + $0x188] sm:$0xff]   ;;  %v2122_v12 = vld [vmem:[%s2697_s1 + $0x140] sm:$0xff]  }
  0x2a   : > { %v2123_v13 = vld [vmem:[%s2697_s1 + $0x1c0] sm:$0xff]   ;;  %v2128_v17 = vld [vmem:[%s2397_s24 + $0x14] ss:$36 sps:$4 sm:$0xff]   ;;  %v2150_v33 = vld [vmem:[%s2397_s24 + $0xec] ss:$36 sps:$4 sm:$0xff]  }
  0x2b   : > { %1750 = vmatpush3.bf16.msra.mxu0 %v2064_v26  ;;  %v2124_v14 = vld [vmem:[%s2697_s1 + $0x100] sm:$0xff]   ;;  %v2129_v18 = vld [vmem:[%s2397_s24 + $0x18] ss:$36 sps:$4 sm:$0xff]   ;;  %v2133_v21 = vld [vmem:[%s2697_s1 + $0x230] sm:$0xff]  }
  0x2c   : > { %1790 = vmatpush3.bf16.msra.mxu1 %v2065_v27  ;;  %1751 = vmatprep.subr.bf16.mxu0 %v2066_v28  ;;  %v2125_v15 = vld [vmem:[%s2697_s1 + $0x180] sm:$0xff]   ;;  %v2132_v20 = vld [vmem:[%s2697_s1 + $0x238] sm:$0xff]   ;;  %v2140_v26 = vld [vmem:[%s2697_s1 + $0x228] sm:$0xff]  }
  0x2d   : > { %1791 = vmatprep.subr.bf16.mxu1 %v2067_v29  ;;  %v2131_v19 = vld [vmem:[%s2397_s24 + $0x1c] ss:$36 sps:$4 sm:$0xff]   ;;  %v2136_v23 = vld [vmem:[%s2397_s24 + $0x64] ss:$36 sps:$4 sm:$0xff]   ;;  %v2144_v28 = vld [vmem:[%s2397_s24 + $0xac] ss:$36 sps:$4 sm:$0xff]  }
  0x2e   : > { %v2134_v22 = vld [vmem:[%s2397_s24 + $0x5c] ss:$36 sps:$4 sm:$0xff]   ;;  %v2142_v27 = vld [vmem:[%s2397_s24 + $0xa4] ss:$36 sps:$4 sm:$0xff]   ;;  %v2149_v35 = vld [vmem:[%s2697_s1 + $0x210] sm:$0xff]  }
  0x2f   : > { %1752 = vmatpush3.bf16.msra.mxu0 %v2068_v30  ;;  %v2138_v24 = vld [vmem:[%s2397_s24 + $0x58] ss:$36 sps:$4 sm:$0xff]   ;;  %v2139_v25 = vld [vmem:[%s2397_s24 + $0x60] ss:$36 sps:$4 sm:$0xff]  }
  0x30   : > { %1792 = vmatpush3.bf16.msra.mxu1 %v2069_v31  ;;  %1817 = vmatprep.subr.bf16.mxu0 %v2076_v36  ;;  %v2141_v29 = vld [vmem:[%s2697_s1 + $0x220] sm:$0xff]   ;;  %v2147_v31 = vld [vmem:[%s2397_s24 + $0xa8] ss:$36 sps:$4 sm:$0xff]  }
  0x31   : > { %1857 = vmatprep.subr.bf16.mxu1 %v2077_v37  ;;  %v2146_v30 = vld [vmem:[%s2397_s24 + $0xa0] ss:$36 sps:$4 sm:$0xff]   ;;  %v2154_v36 = vld [vmem:[%s2397_s24 + $0xe8] ss:$36 sps:$4 sm:$0xff]  }
  0x32   : > { %1041 = vmatmul.mubr.bf16.vlgmr.msra.gmra.mxu0 %v2070_v32  ;;  %v2148_v32 = vld [vmem:[%s2697_s1 + $0x218] sm:$0xff]   ;;  %v2156_v37 = vld [vmem:[%s2697_s1 + $0x208] sm:$0xff]  }
  0x33   : > { %1106 = vmatmul.mubr.bf16.vlgmr.msra.gmra.mxu1 %v2073_v34  ;;  %1818 = vmatpush3.bf16.msra.mxu0 %v2078_v38  ;;  %v2152_v34 = vld [vmem:[%s2397_s24 + $0xf4] ss:$36 sps:$4 sm:$0xff]  }
  0x34   : > { %1858 = vmatpush3.bf16.msra.mxu1 %v2079_v39  ;;  %1819 = vmatprep.subr.bf16.mxu0 %v2080_v40  ;;  %v2155_v38 = vld [vmem:[%s2397_s24 + $0xf0] ss:$36 sps:$4 sm:$0xff]   ;;  %v2158_v39 = vld [vmem:[%s2397_s24 + $0x20] ss:$36 sps:$4 sm:$0xff]  }
  0x35   : > { %1859 = vmatprep.subr.bf16.mxu1 %v2081_v41  ;;  %1048 = vmatprep.mubr.bf16.mxu0 %v2084_v44  ;;  %v2159_v40 = vld [vmem:[%s2397_s24 + $0xb0] ss:$36 sps:$4 sm:$0xff]   ;;  %v2157_v41 = vld [vmem:[%s2697_s1 + $0x200] sm:$0xff]  }
  0x36   : > { %1113 = vmatprep.mubr.bf16.mxu1 %v2086_v45 }
  0x37   : > { %1820 = vmatpush3.bf16.msra.mxu0 %v2082_v42  ;;  %v2160_v42 = vld [vmem:[%s2397_s24 + $0x68] ss:$36 sps:$4 sm:$0xff]  }
  0x38   : > { %1860 = vmatpush3.bf16.msra.mxu1 %v2083_v43  ;;  %1821 = vmatprep.subr.bf16.mxu0 %v2090_v48  ;;  %v2161_v43 = vld [vmem:[%s2397_s24 + $0xf8] ss:$36 sps:$4 sm:$0xff]  }
  0x39   : > { %1861 = vmatprep.subr.bf16.mxu1 %v2091_v49 }
  0x3a   : > { %1049 = vmatmul.mubr.bf16.gmra.mxu0 %v2088_v46 }
  0x3b   : > { %1114 = vmatmul.mubr.bf16.gmra.mxu1 %v2089_v47  ;;  %1822 = vmatpush3.bf16.msra.mxu0 %v2092_v50 }
  0x3c   : > { %1862 = vmatpush3.bf16.msra.mxu1 %v2093_v51  ;;  %1823 = vmatprep.subr.bf16.mxu0 %v2094_v52 }
  0x3d   : > { %1863 = vmatprep.subr.bf16.mxu1 %v2095_v53  ;;  %1056 = vmatprep.mubr.bf16.mxu0 %v2098_v56 }
  0x3e   : > { %1121 = vmatprep.mubr.bf16.mxu1 %v2100_v57 }
  0x3f   : > { %1824 = vmatpush3.bf16.msra.mxu0 %v2096_v54 }
  0x40   : > { %1864 = vmatpush3.bf16.msra.mxu1 %v2097_v55  ;;  %1825 = vmatprep.subr.bf16.mxu0 %v2104_v60 }
  0x41   : > { %1865 = vmatprep.subr.bf16.mxu1 %v2105_v61 }
  0x42   : > { %1057 = vmatmul.mubr.bf16.gmra.mxu0 %v2102_v58 }
  0x43   : > { %1122 = vmatmul.mubr.bf16.gmra.mxu1 %v2103_v59  ;;  %1826 = vmatpush3.bf16.msra.mxu0 %v2106_v62 }
  0x44   : > { %1866 = vmatpush3.bf16.msra.mxu1 %v2107_v63  ;;  %1827 = vmatprep.subr.bf16.mxu0 %v2108_v0 }
  0x45   : > { %1867 = vmatprep.subr.bf16.mxu1 %v2109_v1  ;;  %1064 = vmatprep.mubr.bf16.mxu0 %v2112_v4 }
  0x46   : > { %1129 = vmatprep.mubr.bf16.mxu1 %v2114_v5 }
  0x47   : > { %1828 = vmatpush3.bf16.msra.mxu0 %v2110_v2 }
  0x48   : > { %1868 = vmatpush3.bf16.msra.mxu1 %v2111_v3  ;;  %1829 = vmatprep.subr.bf16.mxu0 %v2118_v8 }
  0x49   : > { %1869 = vmatprep.subr.bf16.mxu1 %v2119_v9 }
  0x4a   : > { %1065 = vmatmul.mubr.bf16.gmra.mxu0 %v2116_v6 }
  0x4b   : > { %1130 = vmatmul.mubr.bf16.gmra.mxu1 %v2117_v7  ;;  %1830 = vmatpush3.bf16.msra.mxu0 %v2120_v10 }
  0x4c   : > { %1870 = vmatpush3.bf16.msra.mxu1 %v2121_v11  ;;  %1831 = vmatprep.subr.bf16.mxu0 %v2122_v12 }
  0x4d   : > { %1871 = vmatprep.subr.bf16.mxu1 %v2123_v13  ;;  %1170 = vmatprep.mubr.bf16.mxu0 %v2128_v17 }
  0x4e   : > { %1235 = vmatprep.mubr.bf16.mxu1 %v2131_v19 }
  0x4f   : > { %1832 = vmatpush3.bf16.msra.mxu0 %v2124_v14 }
  0x50   : > { %1872 = vmatpush3.bf16.msra.mxu1 %v2125_v15  ;;  %1909 = vmatprep.subr.bf16.mxu0 %v2132_v20 }
  0x51   : > { %1933 = vmatprep.subr.bf16.mxu1 %v2132_v20 }
  0x52   : > { %1171 = vmatmul.mubr.bf16.vlgmr.msra.gmra.mxu0 %v2126_v16 }
  0x53   : > { %1236 = vmatmul.mubr.bf16.vlgmr.msra.gmra.mxu1 %v2129_v18  ;;  %1910 = vmatpush3.bf16.msra.mxu0 %v2132_v20 }
  0x54   : > { %1941 = vmatpush3.bf16.msra.mxu1 %v2132_v20  ;;  %1911 = vmatprep.subr.bf16.mxu0 %v2133_v21 }
  0x55   : > { %1934 = vmatprep.subr.bf16.mxu1 %v2133_v21  ;;  %1178 = vmatprep.mubr.bf16.mxu0 %v2134_v22 }
  0x56   : > { %1243 = vmatprep.mubr.bf16.mxu1 %v2136_v23 }
  0x57   : > { %1912 = vmatpush3.bf16.msra.mxu0 %v2133_v21 }
  0x58   : > { %1942 = vmatpush3.bf16.msra.mxu1 %v2133_v21  ;;  %1913 = vmatprep.subr.bf16.mxu0 %v2140_v26 }
  0x59   : > { %1935 = vmatprep.subr.bf16.mxu1 %v2140_v26 }
  0x5a   : > { %1179 = vmatmul.mubr.bf16.gmra.mxu0 %v2138_v24 }
  0x5b   : > { %1244 = vmatmul.mubr.bf16.gmra.mxu1 %v2139_v25  ;;  %1186 = vmatprep.mubr.bf16.mxu0 %v2142_v27 }
  0x5c   : > { %1914 = vmatpush3.bf16.msra.mxu0 %v2140_v26  ;;  %1251 = vmatprep.mubr.bf16.mxu1 %v2144_v28 }
  0x5d   : > { %1943 = vmatpush3.bf16.msra.mxu1 %v2140_v26  ;;  %1915 = vmatprep.subr.bf16.mxu0 %v2141_v29 }
  0x5e   : > { %1936 = vmatprep.subr.bf16.mxu1 %v2141_v29 }
  0x60   : > { %1916 = vmatpush3.bf16.msra.mxu0 %v2141_v29 }
  0x61   : > { %1944 = vmatpush3.bf16.msra.mxu1 %v2141_v29  ;;  %1917 = vmatprep.subr.bf16.mxu0 %v2148_v32 }
  0x62   : > { %1187 = vmatmul.mubr.bf16.gmra.mxu0 %v2146_v30  ;;  %1937 = vmatprep.subr.bf16.mxu1 %v2148_v32  ;;  %v1608_v30 = vld [vmem:[%s2698_s2] ss:$0 sm:$0xff] }
  0x63   : > { %1252 = vmatmul.mubr.bf16.gmra.mxu1 %v2147_v31  ;;  %1194 = vmatprep.mubr.bf16.mxu0 %v2150_v33 }
  0x64   : > { %1918 = vmatpush3.bf16.msra.mxu0 %v2148_v32  ;;  %1259 = vmatprep.mubr.bf16.mxu1 %v2152_v34 }
  0x65   : > { %1945 = vmatpush3.bf16.msra.mxu1 %v2148_v32  ;;  %1919 = vmatprep.subr.bf16.mxu0 %v2149_v35 }
  0x66   : > { %1938 = vmatprep.subr.bf16.mxu1 %v2149_v35 }
  0x68   : > { %1920 = vmatpush3.bf16.msra.mxu0 %v2149_v35 }
  0x69   : > { %1946 = vmatpush3.bf16.msra.mxu1 %v2149_v35  ;;  %1921 = vmatprep.subr.bf16.mxu0 %v2156_v37 }
  0x6a   : > { %1195 = vmatmul.mubr.bf16.gmra.mxu0 %v2154_v36  ;;  %1939 = vmatprep.subr.bf16.mxu1 %v2156_v37 }
  0x6b   : > { %1260 = vmatmul.mubr.bf16.gmra.mxu1 %v2155_v38  ;;  %1925 = vmatprep.mubr.bf16.mxu0 %v2158_v39 }
  0x6c   : > { %1922 = vmatpush3.bf16.msra.mxu0 %v2156_v37  ;;  %1929 = vmatprep.mubr.bf16.mxu1 %v2159_v40 }
  0x6d   : > { %1947 = vmatpush3.bf16.msra.mxu1 %v2156_v37  ;;  %1923 = vmatprep.subr.bf16.mxu0 %v2157_v41 }
  0x6e   : > { %1940 = vmatprep.subr.bf16.mxu1 %v2157_v41 }
  0x70   : > { %1924 = vmatpush3.bf16.msra.mxu0 %v2157_v41 }
  0x71   : > { %1948 = vmatpush3.bf16.msra.mxu1 %v2157_v41 }
  0x73   : > { %1926 = vmatmul.mubr.bf16.vlgmr.msra.gmra.mxu0 %v2160_v42 }
  0x74   : > { %1930 = vmatmul.mubr.bf16.vlgmr.msra.gmra.mxu1 %v2161_v43 }
  0xf2   : > { %v1753_v44 = vpop.f32.mrf.mxu0 }
  0xf3   : > { %v1793_v45 = vpop.f32.mrf.mxu1 }
  0xf4   : > { %v1754_v46 = vpop.f32.mrf.mxu0 }
  0xf5   : > { %v1794_v47 = vpop.f32.mrf.mxu1  ;;  %v1755_v27 = vadd.f32 %v1754_v46, %v1753_v44 }
  0xf6   : > { %v1756_v48 = vpop.f32.mrf.mxu0  ;;  %v1795_v40 = vadd.f32 %v1794_v47, %v1793_v45 }
  0xf7   : > { %v2561_v49 = vpop.f32.mrf.mxu1  ;;  %v1043_v35 = vadd.f32 %v1755_v27, %v1608_v30 }
  0xf8   : > { %v1757_v50 = vpop.f32.mrf.mxu0 }
  0xf9   : > { %v2563_v51 = vpop.f32.mrf.mxu1  ;;  %v1758_v36 = vadd.f32 %v1757_v50, %v1756_v48 }
  0xfa   : > { %v1759_v52 = vpop.f32.mrf.mxu0  ;;  %v1798_v48 = vadd.f32 %v2563_v51, %v2561_v49 }
  0xfb   : > { %v1799_v53 = vpop.f32.mrf.mxu1 }
  0xfc   : > { %v1760_v54 = vpop.f32.mrf.mxu0 }
  0xfd   : > { %v1800_v55 = vpop.f32.mrf.mxu1  ;;  %v1761_v31 = vadd.f32 %v1760_v54, %v1759_v52 }
  0xfe   : > { %v1762_v56 = vpop.f32.mrf.mxu0  ;;  %v1801_v52 = vadd.f32 %v1800_v55, %v1799_v53 }
  0xff   : > { %v2565_v57 = vpop.f32.mrf.mxu1  ;;  %v1051_v41 = vadd.f32 %v1761_v31, %v1608_v30 }
 0x100   : > { %v1763_v58 = vpop.f32.mrf.mxu0 }
 0x101   : > { %v2567_v59 = vpop.f32.mrf.mxu1  ;;  %v1764_v39 = vadd.f32 %v1763_v58, %v1762_v56  ;;  %v1116_v45 = vadd.f32 %v1801_v52, %v1051_v41 }
 0x102   : > { %v1765_v60 = vpop.f32.mrf.mxu0 }
 0x103   : > { %v2569_v61 = vpop.f32.mrf.mxu1  ;;  %v1054_v50 = vadd.f32 %v1764_v39, %v1608_v30 }
 0x104   : > { %v1766_v62 = vpop.f32.mrf.mxu0 }
 0x105   : > { %v2571_v63 = vpop.f32.mrf.mxu1  ;;  %v1767_v42 = vadd.f32 %v1766_v62, %v1765_v60 }
 0x106   : > { %v1768_v0 = vpop.f32.mrf.mxu0  ;;  %v1807_v31 = vadd.f32 %v2571_v63, %v2569_v61 }
 0x107   : > { %v2573_v1 = vpop.f32.mrf.mxu1  ;;  %v1059_v47 = vadd.f32 %v1767_v42, %v1608_v30 }
 0x108   : > { %v1769_v2 = vpop.f32.mrf.mxu0 }
 0x109   : > { %v2575_v3 = vpop.f32.mrf.mxu1  ;;  %v1770_v58 = vadd.f32 %v1769_v2, %v1768_v0 }
 0x10a   : > { %v1771_v4 = vpop.f32.mrf.mxu0 }
 0x10b   : > { %v1811_v5 = vpop.f32.mrf.mxu1 }
 0x10c   : > { %v1772_v6 = vpop.f32.mrf.mxu0 }
 0x10d   : > { %v1812_v7 = vpop.f32.mrf.mxu1  ;;  %v1773_v34 = vadd.f32 %v1772_v6, %v1771_v4 }
 0x10e   : > { %v1774_v8 = vpop.f32.mrf.mxu0  ;;  %v1813_v4 = vadd.f32 %v1812_v7, %v1811_v5 }
 0x10f   : > { %v1814_v9 = vpop.f32.mrf.mxu1 }
 0x110   : > { %v1775_v10 = vpop.f32.mrf.mxu0 }
 0x111   : > { %v1815_v11 = vpop.f32.mrf.mxu1  ;;  %v1776_v43 = vadd.f32 %v1775_v10, %v1774_v8  ;;  %v1804_v8 = vadd.f32 %v2567_v59, %v2565_v57 }
 0x112   : > { %v1833_v12 = vpop.f32.mrf.mxu0  ;;  %v1816_v49 = vadd.f32 %v1815_v11, %v1814_v9  ;;  %v1810_v9 = vadd.f32 %v2575_v3, %v2573_v1 }
 0x113   : > { %v2577_v13 = vpop.f32.mrf.mxu1  ;;  %v1070_v60 = vadd.f32 %v1776_v43, %v1608_v30 }
 0x114   : > { %v1834_v14 = vpop.f32.mrf.mxu0 }
 0x115   : > { %v2579_v15 = vpop.f32.mrf.mxu1  ;;  %v1835_v53 = vadd.f32 %v1834_v14, %v1833_v12 }
 0x116   : > { %v2581_v16 = vpop.f32.mrf.mxu0 }
 0x117   : > { %v2583_v17 = vpop.f32.mrf.mxu1 }
 0x118   : > { %2701 = vst [vmem:[#allocation3_spill] sm:$0xff] %v2583_v17  ;;  %v2585_v18 = vpop.f32.mrf.mxu0  ;;  %v1108_v17 = vadd.f32 %v1795_v40, %v1043_v35  ;;  %v1062_v35 = vadd.f32 %v1770_v58, %v1608_v30 }
 0x119   : > { %v2587_v19 = vpop.f32.mrf.mxu1 }
 0x11a   : > { %2702 = vst [vmem:[#allocation4_spill] sm:$0xff] %v2587_v19  ;;  %v1839_v20 = vpop.f32.mrf.mxu0  ;;  %v1067_v19 = vadd.f32 %v1773_v34, %v1608_v30  ;;  %v1124_v34 = vadd.f32 %v1807_v31, %v1059_v47  ;;  %v1173_v14 = vadd.f32 %v1835_v53, %v1108_v17 }
 0x11b   : > { %v2589_v21 = vpop.f32.mrf.mxu1 }
 0x11c   : > { %v1840_v22 = vpop.f32.mrf.mxu0  ;;  %v1132_v10 = vadd.f32 %v1813_v4, %v1067_v19  ;;  %v1838_v19 = vadd.f32 %v2585_v18, %v2581_v16 }
 0x11d   : > { %v1880_v23 = vpop.f32.mrf.mxu1  ;;  %v1841_v56 = vadd.f32 %v1840_v22, %v1839_v20  ;;  %v1119_v20 = vadd.f32 %v1804_v8, %v1054_v50 }
 0x11e   : > { %v1842_v24 = vpop.f32.mrf.mxu0  ;;  %v1881_v61 = vadd.f32 %v1880_v23, %v2589_v21 }
 0x11f   : > { %v2591_v25 = vpop.f32.mrf.mxu1  ;;  %v1181_v22 = vadd.f32 %v1841_v56, %v1116_v45  ;;  %v2707_v52 = vld [vmem:[#allocation3_spill] sm:$0xff] }
 0x120   : > { %2703 = vst [vmem:[#allocation5_spill] sm:$0xff] %v2591_v25  ;;  %v1843_v26 = vpop.f32.mrf.mxu0 }
 0x121   : > { %v2593_v28 = vpop.f32.mrf.mxu1  ;;  %v1844_v0 = vadd.f32 %v1843_v26, %v1842_v24  ;;  %v1246_v17 = vadd.f32 %v1881_v61, %v1181_v22 }
 0x122   : > { %2704 = vst [vmem:[#allocation6_spill] sm:$0xff] %v2593_v28  ;;  %v1845_v29 = vpop.f32.mrf.mxu0  ;;  %v1046_v28 = vadd.f32 %v1758_v36, %v1608_v30  ;;  %v1135_v36 = vadd.f32 %v1816_v49, %v1070_v60 }
 0x123   : > { %v2598_v32 = vpop.f32.mrf.mxu1 }
 0x124   : > { %v1846_v33 = vpop.f32.mrf.mxu0  ;;  %v1111_v27 = vadd.f32 %v1798_v48, %v1046_v28  ;;  %v1875_v28 = vadd.f32 %v2579_v15, %v2577_v13  ;;  %v2708_v48 = vld [vmem:[#allocation4_spill] sm:$0xff] }
 0x125   : > { %v1886_v37 = vpop.f32.mrf.mxu1  ;;  %v1847_v51 = vadd.f32 %v1846_v33, %v1845_v29  ;;  %v1184_v29 = vadd.f32 %v1844_v0, %v1119_v20  ;;  %v1127_v33 = vadd.f32 %v1810_v9, %v1062_v35  ;;  %v1878_v50 = vadd.f32 %v2708_v48, %v2707_v52 }
 0x126   : > { %v1848_v38 = vpop.f32.mrf.mxu0  ;;  %v1887_v16 = vadd.f32 %v1886_v37, %v2598_v32  ;;  %v1176_v23 = vadd.f32 %v1838_v19, %v1111_v27  ;;  %v1238_v41 = vadd.f32 %v1875_v28, %v1173_v14 }
 0x127   : > { %v2600_v44 = vpop.f32.mrf.mxu1  ;;  %v1189_v11 = vadd.f32 %v1847_v51, %v1124_v34  ;;  %v2705_v39 = vld [vmem:[#allocation5_spill] sm:$0xff] }
 0x128   : > { %v1849_v46 = vpop.f32.mrf.mxu0  ;;  %v1241_v53 = vadd.f32 %v1878_v50, %v1176_v23 }
 0x129   : > { %v2602_v54 = vpop.f32.mrf.mxu1  ;;  %v1850_v24 = vadd.f32 %v1849_v46, %v1848_v38  ;;  %v2706_v40 = vld [vmem:[#allocation6_spill] sm:$0xff]  ;;  %v1254_v13 = vadd.f32 %v1887_v16, %v1189_v11 }
 0x12a   : > { %v1851_v25 = vpop.f32.mrf.mxu0  ;;  %v1884_v1 = vadd.f32 %v2706_v40, %v2705_v39  ;;  %v1890_v45 = vadd.f32 %v2602_v54, %v2600_v44 }
 0x12b   : > { %v1891_v62 = vpop.f32.mrf.mxu1  ;;  %v1192_v42 = vadd.f32 %v1850_v24, %v1127_v33 }
 0x12c   : > { %v1852_v6 = vpop.f32.mrf.mxu0  ;;  %v1249_v56 = vadd.f32 %v1884_v1, %v1184_v29 }
 0x12d   : > { %v1853_v55 = vadd.f32 %v1852_v6, %v1851_v25  ;;  %v1892_v5 = vpop.f32.mrf.mxu1  ;;  %v1257_v51 = vadd.f32 %v1890_v45, %v1192_v42 }
 0x12e   : > { %v1854_v7 = vpop.f32.mrf.mxu0  ;;  %v1893_v57 = vadd.f32 %v1892_v5, %v1891_v62 }
 0x12f   : > { %v1197_v2 = vadd.f32 %v1853_v55, %v1132_v10  ;;  %v1894_v59 = vpop.f32.mrf.mxu1 }
 0x130   : > { %v1855_v12 = vpop.f32.mrf.mxu0 }
 0x131   : > { %v1856_v63 = vadd.f32 %v1855_v12, %v1854_v7  ;;  %v1895_v25 = vpop.f32.mrf.mxu1  ;;  %v1262_v26 = vadd.f32 %v1893_v57, %v1197_v2 }
 0x132   : > { %v1896_v18 = vadd.f32 %v1895_v25, %v1894_v59 }
 0x133   : > { %v1200_v30 = vadd.f32 %v1856_v63, %v1135_v36  ;;  %v1927_v21 = vpop.f32.mrf.mxu0 }
 0x134   : > { %v1311_v3 = vadd.f32 %v1927_v21, %v1246_v17  ;;  %v1931_v38 = vpop.f32.mrf.mxu1 }
 0x135   : > { %v1327_v43 = vadd.f32 %v1931_v38, %v1262_v26  ;;  %v1302_v46 = vpop.f32.mrf.mxu0  ;;  %v1265_v15 = vadd.f32 %v1896_v18, %v1200_v30 }
 0x136   : > { %v1335_v4 = vmax.f32 %v1311_v3, 0.0  ;;  %v1303_v32 = vadd.f32 %v1302_v46, %v1238_v41  ;;  %v1318_v37 = vpop.f32.mrf.mxu1 }
 0x137   : > { %v1339_v47 = vmax.f32 %v1327_v43, 0.0  ;;  %v1319_v58 = vadd.f32 %v1318_v37, %v1254_v13  ;;  %v1928_v60 = vpop.f32.mrf.mxu0 }
 0x138   : > { %v1343_v62 = vmin.f32 %v1335_v4, 6.0  ;;  %v1333_v6 = vmax.f32 %v1303_v32, 0.0  ;;  %v1314_v8 = vadd.f32 %v1928_v60, %v1249_v56  ;;  %v1932_v10 = vpop.f32.mrf.mxu1 }
 0x139   : > { %v1347_v55 = vmin.f32 %v1339_v47, 6.0  ;;  %v1337_v27 = vmax.f32 %v1319_v58, 0.0  ;;  %v1330_v31 = vadd.f32 %v1932_v10, %v1265_v15  ;;  %v1305_v49 = vpop.f32.mrf.mxu0 }
 0x13a   : > { %1351 = vst [vmem:[%s2625_s12 + $0x10] sm:$0xff] %v1343_v62  ;;  %v1341_v44 = vmin.f32 %v1333_v6, 6.0  ;;  %v1336_v54 = vmax.f32 %v1314_v8, 0.0  ;;  %v1306_v5 = vadd.f32 %v1305_v49, %v1241_v53  ;;  %v1321_v7 = vpop.f32.mrf.mxu1 }
 0x13b   : > { %1355 = vst [vmem:[%s2625_s12 + $0x30] sm:$0xff] %v1347_v55  ;;  %v1345_v20 = vmin.f32 %v1337_v27, 6.0  ;;  %v1340_v22 = vmax.f32 %v1330_v31, 0.0  ;;  %v1322_v0 = vadd.f32 %v1321_v7, %v1257_v51 }
 0x13c   : > { %1349 = vst [vmem:[%s2625_s12] sm:$0xff] %v1341_v44  ;;  %v1344_v2 = vmin.f32 %v1336_v54, 6.0  ;;  %v1334_v34 = vmax.f32 %v1306_v5, 0.0 }
 0x13d   : > { %1353 = vst [vmem:[%s2625_s12 + $0x20] sm:$0xff] %v1345_v20  ;;  %v1348_v35 = vmin.f32 %v1340_v22, 6.0  ;;  %v1338_v36 = vmax.f32 %v1322_v0, 0.0  ;;  %1363 = sbr.rel (!%p2295_p4) target bundleno = 361 (0x169), region = 36 }
 0x13e   : > { %1352 = vst [vmem:[%s2625_s12 + $0x18] sm:$0xff] %v1344_v2  ;;  %v1342_v57 = vmin.f32 %v1334_v34, 6.0 }
 0x13f   : > { %1356 = vst [vmem:[%s2625_s12 + $0x38] sm:$0xff] %v1348_v35  ;;  %v1346_v59 = vmin.f32 %v1338_v36, 6.0 }
 0x140   : > { %1350 = vst [vmem:[%s2625_s12 + $0x8] sm:$0xff] %v1342_v57 }
 0x141   : > { %1354 = vst [vmem:[%s2625_s12 + $0x28] sm:$0xff] %v1346_v59 }
 0x142   : > { %s2716_s10 = smov (!%p1366_p8, %s1365_s10), 8 }
 0x143   : > { %s1719_s21 = sshll.u32 %s2716_s10, 7 }
 0x144   : > { %p1722_p9 = scmp.eq.s32.totalorder %s1719_s21, 0 }
 0x145   : > { %s2648_s22 = sshrl.u32 (!%p1722_p9), %s2716_s10, 3 }
 0x146   : > { %1374 = sbr.rel (%p1722_p9) target bundleno = 361 (0x169), region = 40  ;;  %p1723_p10 = scmp.le.s32.totalorder (!%p1722_p9), %s2648_s22, 0 }
 0x14b   : > { %1557 = sbr.rel (%p1723_p10) target bundleno = 344 (0x158), region = 116  ;;  %s2709_s15 = smov (!%p1723_p10), %s2642_s18 }
 0x14c   : > { %s2710_s20 = smov (!%p1723_p10), %s2625_s12  ;;  %s2657_s30 = smov (!%p1723_p10), 0  }
 0x14d   : > { %s2659_s23 = smov (!%p1723_p10), 0  }
 0x150 LB: >> { %v1451_v12 = vld [vmem:[%s2224_s20] sm:$0xff]  ;;  %v1453_v14 = vld [vmem:[%s2224_s20 + $0x8] sm:$0xff]  ;;  %v1455_v19 = vld [vmem:[%s2224_s20 + $0x10] sm:$0xff]  ;;  %s1467_s25 = sadd.s32 1, %s2228_s30  ;;  %s1445_s23 = sadd.s32 1, %s2232_s23   ;;  %s2232_s23 = sphi %s2659_s23, %s1445_s23   ;;  %s2228_s30 = sphi %s2657_s30, %s2711_s30   ;;  %s2224_s20 = sphi %s2710_s20, %s1472_s20   ;;  %s2220_s15 = sphi %s2709_s15, %s1473_s15  }
 0x151   : >> { %1452 = vst [vmem:[%s2220_s15] sm:$0xff] %v1451_v12  ;;  %1454 = vst [vmem:[%s2220_s15 + $0x8] sm:$0xff] %v1453_v14  ;;  %v1457_v61 = vld [vmem:[%s2224_s20 + $0x18] sm:$0xff]  ;;  %v1459_v63 = vld [vmem:[%s2224_s20 + $0x20] sm:$0xff]  ;;  %p1468_p11 = scmp.ge.s32.totalorder %s1467_s25, %s2648_s22  ;;  %p1444_p12 = scmp.ge.s32.totalorder %s1445_s23, %s2648_s22 }
 0x152   : >> { %1456 = vst [vmem:[%s2220_s15 + $0x10] sm:$0xff] %v1455_v19  ;;  %v1461_v9 = vld [vmem:[%s2224_s20 + $0x28] sm:$0xff]  ;;  %1458 = vst [vmem:[%s2220_s15 + $0x18] sm:$0xff] %v1457_v61  ;;  %v1463_v11 = vld [vmem:[%s2224_s20 + $0x30] sm:$0xff] }
 0x153   : >> { %1460 = vst [vmem:[%s2220_s15 + $0x20] sm:$0xff] %v1459_v63  ;;  %1462 = vst [vmem:[%s2220_s15 + $0x28] sm:$0xff] %v1461_v9  ;;  %v1465_v24 = vld [vmem:[%s2224_s20 + $0x38] sm:$0xff]  ;;  %s2718_s25 = smov (%p1468_p11, %s1467_s25), 0  ;;  %1447 = sbr.rel (!%p1444_p12) target bundleno = 336 (0x150), region = 122 }
 0x154   : >> { %1464 = vst [vmem:[%s2220_s15 + $0x30] sm:$0xff] %v1463_v11  ;;  %1466 = vst [vmem:[%s2220_s15 + $0x38] sm:$0xff] %v1465_v24  ;;  %s1724_s26 = sshll.u32 %s2718_s25, 6  ;;  %s2711_s30 = smov %s2718_s25 }
 0x155   : >> { %s1472_s20 = scalar_lea.vmem %s2625_s12, %s1724_s26 [#allocation2]   ;;  %s1473_s15 = scalar_lea.vmem %s2642_s18, %s1724_s26  }
 0x158 PF: > { %s2678_s27 = sand.u32 7, %s2716_s10   ;;  %s1735_s28 = sshll.u32 %s2648_s22, 6 }
 0x159   : > { %s1478_s29 = scalar_lea.vmem %s2625_s12, %s1735_s28 [#allocation2]   ;;  %s1480_s4 = scalar_lea.vmem %s2642_s18, %s1735_s28  }
 0x15a   : > { %p1729_p13 = scmp.le.s32.totalorder %s2678_s27, 0 }
 0x15b   : > { %s2234_s5 = smov (!%p1729_p13), %s1480_s4   ;;  %s2238_s6 = smov (!%p1729_p13), %s1478_s29  }
 0x15c   : > { %1571 = sbr.rel (%p1729_p13) target bundleno = 361 (0x169), region = 127  ;;  %s2242_s24 = smov (!%p1729_p13), 0  }
 0x15d   : > { %s2246_s7 = smov (!%p1729_p13), 0  }
 0x161 LB: >> { %v1490_v25 = vld [vmem:[%s2240_s6] sm:$0xff]  ;;  %s1492_s8 = sadd.s32 1, %s2244_s24  ;;  %s1484_s7 = sadd.s32 1, %s2248_s7   ;;  %s2248_s7 = sphi %s2246_s7, %s1484_s7   ;;  %s2244_s24 = sphi %s2242_s24, %s2243_s24   ;;  %s2240_s6 = sphi %s2238_s6, %s1497_s6   ;;  %s2236_s5 = sphi %s2234_s5, %s1498_s5  }
 0x162   : >> { %1491 = vst [vmem:[%s2236_s5] sm:$0xff] %v1490_v25  ;;  %p1493_p0 = scmp.ge.s32.totalorder %s1492_s8, %s2678_s27  ;;  %p1483_p1 = scmp.ge.s32.totalorder %s1484_s7, %s2678_s27 }
 0x164   : >> { %s2720_s8 = smov (%p1493_p0, %s1492_s8), 0  ;;  %1486 = sbr.rel (!%p1483_p1) target bundleno = 353 (0x161), region = 133 }
 0x165   : >> { %s1730_s9 = sshll.u32 %s2720_s8, 3  ;;  %s2243_s24 = smov %s2720_s8  }
 0x166   : >> { %s1497_s6 = scalar_lea.vmem %s1478_s29, %s1730_s9 [#allocation2]   ;;  %s1498_s5 = scalar_lea.vmem %s1480_s4, %s1730_s9  }
 0x169 PF: > { %p10_p2 = scmp.ge.s32.totalorder %s2285_s16, 4   ;;  %s2712_s12 = smov %s2212_s13 }
 0x16a   : > { %s2713_s13 = smov %s2293_s19  ;;  %s2714_s14 = smov %s2285_s16 }
 0x16b   :  { %12 = sbr.rel (!%p10_p2) target bundleno = 2 (0x2), region = 144 }

// kernel: inception_v3_module_e.8
= control target key start
LH: loop header
LB: loop body
LE: loop exit
PB: predicated region body
PF: predicated region fallthrough
CT: control target
= control target key end

     0   :  { %s4137_s12 = smov 0   ;;  %s4831_s0 = inlined_call_operand.vmem [shape: bf16[2,352,128], index: 0, kind: input, shape index: {}]   ;;  %s4832_s1 = inlined_call_operand.vmem [shape: bf16[7,128,128], index: 1, kind: input, shape index: {}]   ;;  %s4833_s2 = inlined_call_operand.vmem [shape: f32[1,128], index: 2, kind: input, shape index: {}]   ;;  %s4834_s3 = inlined_call_operand.vmem [shape: bf16[2,256,128], index: 3, kind: output, shape index: {}]  }
   0x1 LB: > { %s3007_s13 = sadd.s32 4294967295, %s4115_s12   ;;  %p3011_p0 = scmp.ge.s32.totalorder %s4115_s12, 1  ;;  %s4115_s12 = sphi %s4137_s12, %s13_s12  }
   0x2   : > { %p137_p1 = scmp.lt.s32.totalorder %s4115_s12, 3 }
   0x4   : > { %p138_p2 = pnand %p3011_p0, %p137_p1 }
   0x6   : > { %141 = sbr.rel (%p138_p2) target bundleno = 472 (0x1d8), region = 32 }
   0xb   : > { %v3956_v0 = vld [vmem:[%s4832_s1 + $0x78] sm:$0xff]   ;;  %p161_p3 = scmp.lt.s32.totalorder %s3007_s13, 1  ;;  %v3957_v1 = vld [vmem:[%s4832_s1 + $0x70] sm:$0xff]   ;;  %v3958_v2 = vld [vmem:[%s4832_s1 + $0x68] sm:$0xff]  }
   0xc   : > { %3595 = vmatprep.subr.bf16.mxu0 %v3956_v0  ;;  %3931 = vmatprep.subr.bf16.mxu1 %v3956_v0  ;;  %v3959_v3 = vld [vmem:[%s4832_s1 + $0x60] sm:$0xff]   ;;  %v3960_v6 = vld [vmem:[%s4832_s1 + $0x58] sm:$0xff]   ;;  %v3961_v7 = vld [vmem:[%s4832_s1 + $0x50] sm:$0xff]  }
   0xd   : > { %s4866_s13 = smov (!%p161_p3, %s3007_s13), 1  ;;  %3596 = vmatpush3.bf16.msra.mxu0 %v3956_v0  ;;  %3939 = vmatpush3.bf16.msra.mxu1 %v3956_v0  ;;  %v3962_v8 = vld [vmem:[%s4832_s1 + $0x48] sm:$0xff]   ;;  %v3963_v9 = vld [vmem:[%s4832_s1 + $0x40] sm:$0xff]   ;;  %v3968_v10 = vld [vmem:[%s4832_s1 + $0x38] sm:$0xff]  }
   0xe   : > { %3597 = vmatprep.subr.bf16.mxu0 %v3957_v1  ;;  %3932 = vmatprep.subr.bf16.mxu1 %v3957_v1  ;;  %s3947_s20 = smul.u32 176, %s4866_s13  ;;  %v3969_v12 = vld [vmem:[%s4832_s1 + $0xb8] sm:$0xff]   ;;  %v3970_v14 = vld [vmem:[%s4832_s1 + $0x30] sm:$0xff]   ;;  %v3976_v18 = vld [vmem:[%s4832_s1 + $0x28] sm:$0xff]   ;;  %s3299_s8 = sshll.u32 %s4866_s13, 7 }
   0xf   : > { %v3971_v15 = vld [vmem:[%s4832_s1 + $0xb0] sm:$0xff]   ;;  %v3977_v20 = vld [vmem:[%s4832_s1 + $0xa8] sm:$0xff]   ;;  %v3978_v22 = vld [vmem:[%s4832_s1 + $0x20] sm:$0xff]   ;;  %s4736_s10 = scalar_lea.vmem %s4834_s3, %s3299_s8 }
  0x10   : > { %s4160_s23 = scalar_lea.vmem %s4831_s0, %s3947_s20  ;;  %v3979_v23 = vld [vmem:[%s4832_s1 + $0xa0] sm:$0xff]   ;;  %v3984_v26 = vld [vmem:[%s4832_s1 + $0x18] sm:$0xff]   ;;  %v3986_v30 = vld [vmem:[%s4832_s1 + $0x10] sm:$0xff]  }
  0x11   : > { %3598 = vmatpush3.bf16.msra.mxu0 %v3957_v1  ;;  %3940 = vmatpush3.bf16.msra.mxu1 %v3957_v1  ;;  %v4166_v4 = vld [vmem:[%s4160_s23 + $0x8] sm:$0xff]   ;;  %v4189_v11 = vld [vmem:[%s4160_s23 + $0x10] sm:$0xff]   ;;  %v4204_v16 = vld [vmem:[%s4160_s23 + $0x18] sm:$0xff]  }
  0x12   : > { %3599 = vmatprep.subr.bf16.mxu0 %v3958_v2  ;;  %3933 = vmatprep.subr.bf16.mxu1 %v3958_v2  ;;  %v4169_v5 = vld [vmem:[%s4160_s23 + $0x48] sm:$0xff]   ;;  %v4195_v13 = vld [vmem:[%s4160_s23 + $0x50] sm:$0xff]   ;;  %v4207_v17 = vld [vmem:[%s4160_s23 + $0x58] sm:$0xff]  }
  0x13   : > { %3611 = vmatprep.mubr.bf16.mxu0 %v4166_v4  ;;  %3627 = vmatprep.mubr.bf16.mxu1 %v4169_v5  ;;  %v4215_v19 = vld [vmem:[%s4160_s23 + $0x20] sm:$0xff]   ;;  %v4232_v24 = vld [vmem:[%s4160_s23 + $0x28] sm:$0xff]   ;;  %v4243_v27 = vld [vmem:[%s4160_s23 + $0x30] sm:$0xff]  }
  0x14   : > { %v4223_v21 = vld [vmem:[%s4160_s23 + $0x60] sm:$0xff]   ;;  %v4235_v25 = vld [vmem:[%s4160_s23 + $0x68] sm:$0xff]   ;;  %v3985_v28 = vld [vmem:[%s4832_s1 + $0x98] sm:$0xff]  }
  0x15   : > { %3600 = vmatpush3.bf16.msra.mxu0 %v3958_v2  ;;  %3941 = vmatpush3.bf16.msra.mxu1 %v3958_v2  ;;  %v4251_v29 = vld [vmem:[%s4160_s23 + $0x70] sm:$0xff]   ;;  %v4260_v32 = vld [vmem:[%s4160_s23 + $0x38] sm:$0xff]   ;;  %v3992_v34 = vld [vmem:[%s4832_s1 + $0x8] sm:$0xff]  }
  0x16   : > { %3601 = vmatprep.subr.bf16.mxu0 %v3959_v3  ;;  %3934 = vmatprep.subr.bf16.mxu1 %v3959_v3  ;;  %v3987_v31 = vld [vmem:[%s4832_s1 + $0x90] sm:$0xff]   ;;  %v4263_v33 = vld [vmem:[%s4160_s23 + $0x78] sm:$0xff]   ;;  %v4271_v35 = vld [vmem:[%s4160_s23 + $0x40] sm:$0xff]  }
  0x17   : > { %v3993_v36 = vld [vmem:[%s4832_s1 + $0x88] sm:$0xff]   ;;  %v3991_v37 = vld [vmem:[%s4160_s23 + $0x80] sm:$0xff]   ;;  %v3997_v41 = vld [vmem:[%s4160_s23 + $0x10] sm:$0xff]  }
  0x18   : > { %v3994_v38 = vld [vmem:[%s4832_s1] sm:$0xff]   ;;  %v3999_v42 = vld [vmem:[%s4832_s1 + $0xf8] sm:$0xff]   ;;  %v4003_v46 = vld [vmem:[%s4832_s1 + $0xf0] sm:$0xff]  }
  0x19   : > { %3602 = vmatpush3.bf16.msra.mxu0 %v3959_v3  ;;  %3942 = vmatpush3.bf16.msra.mxu1 %v3959_v3  ;;  %v3995_v39 = vld [vmem:[%s4832_s1 + $0x80] sm:$0xff]   ;;  %v4000_v43 = vld [vmem:[%s4832_s1 + $0x138] sm:$0xff]   ;;  %v4004_v47 = vld [vmem:[%s4832_s1 + $0x130] sm:$0xff]  }
  0x1a   : > { %3603 = vmatprep.subr.bf16.mxu0 %v3960_v6  ;;  %3935 = vmatprep.subr.bf16.mxu1 %v3960_v6  ;;  %v3996_v40 = vld [vmem:[%s4160_s23] sm:$0xff]   ;;  %v3998_v44 = vld [vmem:[%s4160_s23 + $0x18] sm:$0xff]   ;;  %v4007_v48 = vld [vmem:[%s4832_s1 + $0xe8] sm:$0xff]  }
  0x1b   : > { %v4001_v45 = vld [vmem:[%s4160_s23 + $0x20] sm:$0xff]   ;;  %v4008_v49 = vld [vmem:[%s4832_s1 + $0x128] sm:$0xff]   ;;  %v4005_v51 = vld [vmem:[%s4160_s23 + $0x30] sm:$0xff]  }
  0x1c   : > { %v4002_v50 = vld [vmem:[%s4160_s23 + $0x28] sm:$0xff]   ;;  %v4011_v52 = vld [vmem:[%s4832_s1 + $0xe0] sm:$0xff]   ;;  %v4015_v54 = vld [vmem:[%s4832_s1 + $0xd8] sm:$0xff]  }
  0x1d   : > { %3604 = vmatpush3.bf16.msra.mxu0 %v3960_v6  ;;  %3943 = vmatpush3.bf16.msra.mxu1 %v3960_v6  ;;  %v4012_v53 = vld [vmem:[%s4832_s1 + $0x120] sm:$0xff]   ;;  %v4016_v55 = vld [vmem:[%s4832_s1 + $0x118] sm:$0xff]   ;;  %v4019_v58 = vld [vmem:[%s4832_s1 + $0xd0] sm:$0xff]  }
  0x1e   : > { %3605 = vmatprep.subr.bf16.mxu0 %v3961_v7  ;;  %3936 = vmatprep.subr.bf16.mxu1 %v3961_v7  ;;  %v4006_v56 = vld [vmem:[%s4160_s23 + $0x38] sm:$0xff]   ;;  %v4009_v57 = vld [vmem:[%s4160_s23 + $0x40] sm:$0xff]   ;;  %v4020_v59 = vld [vmem:[%s4832_s1 + $0x110] sm:$0xff]  }
  0x1f   : > { %v4023_v60 = vld [vmem:[%s4832_s1 + $0xc8] sm:$0xff]   ;;  %v4013_v63 = vld [vmem:[%s4160_s23 + $0x50] sm:$0xff]   ;;  %v4027_v0 = vld [vmem:[%s4832_s1 + $0xc0] sm:$0xff]  }
  0x20   : > { %v4024_v61 = vld [vmem:[%s4832_s1 + $0x108] sm:$0xff]   ;;  %v4028_v1 = vld [vmem:[%s4832_s1 + $0x100] sm:$0xff]   ;;  %v4033_v2 = vld [vmem:[%s4832_s1 + $0x178] sm:$0xff]  }
  0x21   : > { %3606 = vmatpush3.bf16.msra.mxu0 %v3961_v7  ;;  %3944 = vmatpush3.bf16.msra.mxu1 %v3961_v7  ;;  %v4010_v62 = vld [vmem:[%s4160_s23 + $0x48] sm:$0xff]   ;;  %v4034_v3 = vld [vmem:[%s4832_s1 + $0x1b8] sm:$0xff]   ;;  %v4017_v6 = vld [vmem:[%s4160_s23 + $0x60] sm:$0xff]  }
  0x22   : > { %3607 = vmatprep.subr.bf16.mxu0 %v3962_v8  ;;  %3937 = vmatprep.subr.bf16.mxu1 %v3962_v8  ;;  %v4018_v7 = vld [vmem:[%s4160_s23 + $0x68] sm:$0xff]  }
  0x25   : > { %3608 = vmatpush3.bf16.msra.mxu0 %v3962_v8  ;;  %3945 = vmatpush3.bf16.msra.mxu1 %v3962_v8  ;;  %v4021_v8 = vld [vmem:[%s4160_s23 + $0x70] sm:$0xff]  }
  0x26   : > { %3609 = vmatprep.subr.bf16.mxu0 %v3963_v9  ;;  %3938 = vmatprep.subr.bf16.mxu1 %v3963_v9 }
  0x29   : > { %3610 = vmatpush3.bf16.msra.mxu0 %v3963_v9  ;;  %3946 = vmatpush3.bf16.msra.mxu1 %v3963_v9  ;;  %v4022_v9 = vld [vmem:[%s4160_s23 + $0x78] sm:$0xff]  }
  0x2a   : > { %3643 = vmatprep.subr.bf16.mxu1 %v3968_v10  ;;  %3691 = vmatprep.subr.bf16.mxu0 %v3969_v12 }
  0x2c   : > { %3612 = vmatmul.mubr.bf16.vlgmr.msra.gmra.mxu0 %v4189_v11  ;;  %3628 = vmatmul.mubr.bf16.vlgmr.msra.gmra.mxu1 %v4195_v13 }
  0x2d   : > { %3644 = vmatpush3.bf16.msra.mxu1 %v3968_v10  ;;  %3692 = vmatpush3.bf16.msra.mxu0 %v3969_v12  ;;  %v4026_v10 = vld [vmem:[%s4160_s23 + $0x88] sm:$0xff]   ;;  %v4030_v12 = vld [vmem:[%s4160_s23 + $0x20] sm:$0xff]  }
  0x2e   : > { %3645 = vmatprep.subr.bf16.mxu1 %v3970_v14  ;;  %3693 = vmatprep.subr.bf16.mxu0 %v3971_v15 }
  0x2f   : > { %3615 = vmatprep.mubr.bf16.mxu0 %v4204_v16  ;;  %3631 = vmatprep.mubr.bf16.mxu1 %v4207_v17 }
  0x31   : > { %3646 = vmatpush3.bf16.msra.mxu1 %v3970_v14  ;;  %3694 = vmatpush3.bf16.msra.mxu0 %v3971_v15  ;;  %v4032_v14 = vld [vmem:[%s4160_s23 + $0x28] sm:$0xff]  }
  0x32   : > { %3647 = vmatprep.subr.bf16.mxu1 %v3976_v18  ;;  %3695 = vmatprep.subr.bf16.mxu0 %v3977_v20  ;;  %v4035_v15 = vld [vmem:[%s4160_s23 + $0x28] sm:$0xff]  }
  0x34   : > { %3616 = vmatmul.mubr.bf16.gmra.mxu0 %v4215_v19  ;;  %3632 = vmatmul.mubr.bf16.gmra.mxu1 %v4223_v21 }
  0x35   : > { %3648 = vmatpush3.bf16.msra.mxu1 %v3976_v18  ;;  %3696 = vmatpush3.bf16.msra.mxu0 %v3977_v20  ;;  %v4040_v18 = vld [vmem:[%s4832_s1 + $0x1b0] sm:$0xff]  }
  0x36   : > { %3649 = vmatprep.subr.bf16.mxu1 %v3978_v22  ;;  %3697 = vmatprep.subr.bf16.mxu0 %v3979_v23  ;;  %v4037_v20 = vld [vmem:[%s4160_s23 + $0x30] sm:$0xff]  }
  0x37   : > { %3619 = vmatprep.mubr.bf16.mxu0 %v4232_v24  ;;  %3635 = vmatprep.mubr.bf16.mxu1 %v4235_v25 }
  0x39   : > { %3650 = vmatpush3.bf16.msra.mxu1 %v3978_v22  ;;  %3698 = vmatpush3.bf16.msra.mxu0 %v3979_v23  ;;  %v4038_v22 = vld [vmem:[%s4160_s23 + $0x38] sm:$0xff]  }
  0x3a   : > { %3651 = vmatprep.subr.bf16.mxu1 %v3984_v26  ;;  %3699 = vmatprep.subr.bf16.mxu0 %v3985_v28  ;;  %v4041_v23 = vld [vmem:[%s4160_s23 + $0x38] sm:$0xff]  }
  0x3c   : > { %3620 = vmatmul.mubr.bf16.gmra.mxu0 %v4243_v27  ;;  %3636 = vmatmul.mubr.bf16.gmra.mxu1 %v4251_v29 }
  0x3d   : > { %3652 = vmatpush3.bf16.msra.mxu1 %v3984_v26  ;;  %3700 = vmatpush3.bf16.msra.mxu0 %v3985_v28  ;;  %v4052_v26 = vld [vmem:[%s4832_s1 + $0x1a0] sm:$0xff]   ;;  %v4044_v28 = vld [vmem:[%s4160_s23 + $0x48] sm:$0xff]  }
  0x3e   : > { %3653 = vmatprep.subr.bf16.mxu1 %v3986_v30  ;;  %3701 = vmatprep.subr.bf16.mxu0 %v3987_v31 }
  0x3f   : > { %3623 = vmatprep.mubr.bf16.mxu0 %v4260_v32  ;;  %3639 = vmatprep.mubr.bf16.mxu1 %v4263_v33 }
  0x41   : > { %3654 = vmatpush3.bf16.msra.mxu1 %v3986_v30  ;;  %3702 = vmatpush3.bf16.msra.mxu0 %v3987_v31  ;;  %v4058_v30 = vld [vmem:[%s4832_s1 + $0x198] sm:$0xff]   ;;  %v4047_v31 = vld [vmem:[%s4160_s23 + $0x48] sm:$0xff]  }
  0x42   : > { %3655 = vmatprep.subr.bf16.mxu1 %v3992_v34  ;;  %3703 = vmatprep.subr.bf16.mxu0 %v3993_v36 }
  0x44   : > { %3624 = vmatmul.mubr.bf16.gmra.mxu0 %v4271_v35  ;;  %3640 = vmatmul.mubr.bf16.gmra.mxu1 %v3991_v37  ;;  %v4069_v37 = vld [vmem:[%s4832_s1 + $0x148] sm:$0xff]  }
  0x45   : > { %3656 = vmatpush3.bf16.msra.mxu1 %v3992_v34  ;;  %3704 = vmatpush3.bf16.msra.mxu0 %v3993_v36  ;;  %v4064_v34 = vld [vmem:[%s4832_s1 + $0x190] sm:$0xff]   ;;  %v4050_v36 = vld [vmem:[%s4160_s23 + $0x58] sm:$0xff]  }
  0x46   : > { %3657 = vmatprep.subr.bf16.mxu1 %v3994_v38  ;;  %3705 = vmatprep.subr.bf16.mxu0 %v3995_v39 }
  0x47   : > { %3659 = vmatprep.mubr.bf16.mxu1 %v3996_v40  ;;  %3707 = vmatprep.mubr.bf16.mxu0 %v3997_v41  ;;  %v4054_v40 = vld [vmem:[%s4160_s23 + $0x60] sm:$0xff]  }
  0x48   : > { %v4075_v41 = vld [vmem:[%s4832_s1 + $0x140] sm:$0xff]  }
  0x49   : > { %3658 = vmatpush3.bf16.msra.mxu1 %v3994_v38  ;;  %3706 = vmatpush3.bf16.msra.mxu0 %v3995_v39  ;;  %v4070_v38 = vld [vmem:[%s4832_s1 + $0x188] sm:$0xff]   ;;  %v4053_v39 = vld [vmem:[%s4160_s23 + $0x58] sm:$0xff]  }
  0x4a   : > { %3739 = vmatprep.subr.bf16.mxu1 %v3999_v42  ;;  %3787 = vmatprep.subr.bf16.mxu0 %v4000_v43 }
  0x4c   : > { %3660 = vmatmul.mubr.bf16.vlgmr.msra.gmra.mxu1 %v4166_v4  ;;  %3708 = vmatmul.mubr.bf16.vlgmr.msra.gmra.mxu0 %v3998_v44  ;;  %v4014_v4 = vld [vmem:[%s4160_s23 + $0x58] sm:$0xff]   ;;  %v4056_v44 = vld [vmem:[%s4160_s23 + $0x68] sm:$0xff]  }
  0x4d   : > { %3740 = vmatpush3.bf16.msra.mxu1 %v3999_v42  ;;  %3788 = vmatpush3.bf16.msra.mxu0 %v4000_v43  ;;  %v4076_v42 = vld [vmem:[%s4832_s1 + $0x180] sm:$0xff]  }
  0x4e   : > { %3663 = vmatprep.mubr.bf16.mxu1 %v4189_v11  ;;  %3711 = vmatprep.mubr.bf16.mxu0 %v4001_v45  ;;  %v4029_v11 = vld [vmem:[%s4160_s23 + $0x18] sm:$0xff]   ;;  %v4055_v43 = vld [vmem:[%s4160_s23 + $0x60] sm:$0xff]   ;;  %v4059_v45 = vld [vmem:[%s4160_s23 + $0x68] sm:$0xff]  }
  0x4f   : > { %3741 = vmatprep.subr.bf16.mxu1 %v4003_v46  ;;  %3789 = vmatprep.subr.bf16.mxu0 %v4004_v47 }
  0x51   : > { %3742 = vmatpush3.bf16.msra.mxu1 %v4003_v46  ;;  %3790 = vmatpush3.bf16.msra.mxu0 %v4004_v47  ;;  %v4060_v46 = vld [vmem:[%s4160_s23 + $0x70] sm:$0xff]  }
  0x52   : > { %3743 = vmatprep.subr.bf16.mxu1 %v4007_v48  ;;  %3791 = vmatprep.subr.bf16.mxu0 %v4008_v49  ;;  %v4061_v47 = vld [vmem:[%s4160_s23 + $0x70] sm:$0xff]  }
  0x54   : > { %3664 = vmatmul.mubr.bf16.gmra.mxu1 %v4204_v16  ;;  %3712 = vmatmul.mubr.bf16.gmra.mxu0 %v4002_v50  ;;  %v4036_v16 = vld [vmem:[%s4160_s23 + $0x30] sm:$0xff]   ;;  %v4066_v50 = vld [vmem:[%s4160_s23 + $0x80] sm:$0xff]  }
  0x55   : > { %3667 = vmatprep.mubr.bf16.mxu1 %v4215_v19  ;;  %3715 = vmatprep.mubr.bf16.mxu0 %v4005_v51  ;;  %v4045_v19 = vld [vmem:[%s4832_s1 + $0x168] sm:$0xff]   ;;  %v4067_v51 = vld [vmem:[%s4160_s23 + $0x80] sm:$0xff]  }
  0x56   : > { %3744 = vmatpush3.bf16.msra.mxu1 %v4007_v48  ;;  %3792 = vmatpush3.bf16.msra.mxu0 %v4008_v49  ;;  %v4062_v48 = vld [vmem:[%s4160_s23 + $0x78] sm:$0xff]  }
  0x57   : > { %3745 = vmatprep.subr.bf16.mxu1 %v4011_v52  ;;  %3793 = vmatprep.subr.bf16.mxu0 %v4012_v53  ;;  %v4065_v49 = vld [vmem:[%s4160_s23 + $0x78] sm:$0xff]  }
  0x5a   : > { %3746 = vmatpush3.bf16.msra.mxu1 %v4011_v52  ;;  %3794 = vmatpush3.bf16.msra.mxu0 %v4012_v53  ;;  %v4068_v52 = vld [vmem:[%s4160_s23 + $0x88] sm:$0xff]  }
  0x5b   : > { %3747 = vmatprep.subr.bf16.mxu1 %v4015_v54  ;;  %3795 = vmatprep.subr.bf16.mxu0 %v4016_v55  ;;  %v4071_v53 = vld [vmem:[%s4160_s23 + $0x88] sm:$0xff]  }
  0x5c   : > { %3668 = vmatmul.mubr.bf16.gmra.mxu1 %v4232_v24  ;;  %3716 = vmatmul.mubr.bf16.gmra.mxu0 %v4006_v56  ;;  %v4042_v24 = vld [vmem:[%s4160_s23 + $0x40] sm:$0xff]   ;;  %v4074_v56 = vld [vmem:[%s4160_s23 + $0x98] sm:$0xff]  }
  0x5d   : > { %3671 = vmatprep.mubr.bf16.mxu1 %v4243_v27  ;;  %3719 = vmatprep.mubr.bf16.mxu0 %v4009_v57  ;;  %v4043_v27 = vld [vmem:[%s4160_s23 + $0x40] sm:$0xff]   ;;  %v4077_v57 = vld [vmem:[%s4160_s23 + $0x28] sm:$0xff]  }
  0x5e   : > { %3748 = vmatpush3.bf16.msra.mxu1 %v4015_v54  ;;  %3796 = vmatpush3.bf16.msra.mxu0 %v4016_v55  ;;  %v4072_v54 = vld [vmem:[%s4160_s23 + $0x90] sm:$0xff]  }
  0x5f   : > { %3749 = vmatprep.subr.bf16.mxu1 %v4019_v58  ;;  %3797 = vmatprep.subr.bf16.mxu0 %v4020_v59  ;;  %v4073_v55 = vld [vmem:[%s4160_s23 + $0x90] sm:$0xff]  }
  0x62   : > { %3750 = vmatpush3.bf16.msra.mxu1 %v4019_v58  ;;  %3798 = vmatpush3.bf16.msra.mxu0 %v4020_v59  ;;  %v4078_v58 = vld [vmem:[%s4160_s23 + $0x30] sm:$0xff]  }
  0x63   : > { %3751 = vmatprep.subr.bf16.mxu1 %v4023_v60  ;;  %3799 = vmatprep.subr.bf16.mxu0 %v4024_v61  ;;  %v4079_v59 = vld [vmem:[%s4160_s23 + $0x30] sm:$0xff]  }
  0x64   : > { %3672 = vmatmul.mubr.bf16.gmra.mxu1 %v4260_v32  ;;  %3720 = vmatmul.mubr.bf16.gmra.mxu0 %v4010_v62  ;;  %v4048_v32 = vld [vmem:[%s4160_s23 + $0x50] sm:$0xff]   ;;  %v4082_v62 = vld [vmem:[%s4160_s23 + $0x40] sm:$0xff]  }
  0x65   : > { %3675 = vmatprep.mubr.bf16.mxu1 %v4271_v35  ;;  %3723 = vmatprep.mubr.bf16.mxu0 %v4013_v63  ;;  %v4049_v35 = vld [vmem:[%s4160_s23 + $0x50] sm:$0xff]   ;;  %v4083_v63 = vld [vmem:[%s4160_s23 + $0x40] sm:$0xff]  }
  0x66   : > { %3752 = vmatpush3.bf16.msra.mxu1 %v4023_v60  ;;  %3800 = vmatpush3.bf16.msra.mxu0 %v4024_v61  ;;  %v4080_v60 = vld [vmem:[%s4160_s23 + $0x38] sm:$0xff]  }
  0x67   : > { %3753 = vmatprep.subr.bf16.mxu1 %v4027_v0  ;;  %3801 = vmatprep.subr.bf16.mxu0 %v4028_v1  ;;  %v4081_v61 = vld [vmem:[%s4160_s23 + $0x38] sm:$0xff]  }
  0x6a   : > { %3754 = vmatpush3.bf16.msra.mxu1 %v4027_v0  ;;  %3802 = vmatpush3.bf16.msra.mxu0 %v4028_v1  ;;  %v4084_v0 = vld [vmem:[%s4160_s23 + $0x48] sm:$0xff]  }
  0x6b   : > { %3835 = vmatprep.subr.bf16.mxu1 %v4033_v2  ;;  %3883 = vmatprep.subr.bf16.mxu0 %v4034_v3  ;;  %v4085_v1 = vld [vmem:[%s4160_s23 + $0x48] sm:$0xff]  }
  0x6c   : > { %3676 = vmatmul.mubr.bf16.gmra.mxu1 %v4169_v5  ;;  %3724 = vmatmul.mubr.bf16.gmra.mxu0 %v4014_v4  ;;  %v4025_v5 = vld [vmem:[%s4160_s23 + $0x80] sm:$0xff]   ;;  %v4088_v4 = vld [vmem:[%s4160_s23 + $0x58] sm:$0xff]  }
  0x6d   : > { %3679 = vmatprep.mubr.bf16.mxu1 %v4195_v13  ;;  %3727 = vmatprep.mubr.bf16.mxu0 %v4017_v6  ;;  %v4031_v13 = vld [vmem:[%s4160_s23 + $0x20] sm:$0xff]   ;;  %v4089_v6 = vld [vmem:[%s4160_s23 + $0x58] sm:$0xff]  }
  0x74   : > { %3680 = vmatmul.mubr.bf16.gmra.mxu1 %v4207_v17  ;;  %3728 = vmatmul.mubr.bf16.gmra.mxu0 %v4018_v7  ;;  %v4039_v17 = vld [vmem:[%s4832_s1 + $0x170] sm:$0xff]   ;;  %v4090_v7 = vld [vmem:[%s4160_s23 + $0x60] sm:$0xff]  }
  0x75   : > { %3683 = vmatprep.mubr.bf16.mxu1 %v4223_v21  ;;  %3731 = vmatprep.mubr.bf16.mxu0 %v4021_v8  ;;  %v4046_v21 = vld [vmem:[%s4832_s1 + $0x1a8] sm:$0xff]   ;;  %v4091_v8 = vld [vmem:[%s4160_s23 + $0x60] sm:$0xff]  }
  0x7c   : > { %3684 = vmatmul.mubr.bf16.gmra.mxu1 %v4235_v25  ;;  %3732 = vmatmul.mubr.bf16.gmra.mxu0 %v4022_v9  ;;  %v4051_v25 = vld [vmem:[%s4832_s1 + $0x160] sm:$0xff]   ;;  %v4092_v9 = vld [vmem:[%s4160_s23 + $0x68] sm:$0xff]  }
  0x7d   : > { %3687 = vmatprep.mubr.bf16.mxu1 %v4251_v29  ;;  %3735 = vmatprep.mubr.bf16.mxu0 %v4025_v5  ;;  %v4057_v29 = vld [vmem:[%s4832_s1 + $0x158] sm:$0xff]   ;;  %v4093_v5 = vld [vmem:[%s4160_s23 + $0x68] sm:$0xff]  }
  0x84   : > { %3688 = vmatmul.mubr.bf16.gmra.mxu1 %v4263_v33  ;;  %3736 = vmatmul.mubr.bf16.gmra.mxu0 %v4026_v10  ;;  %v4063_v33 = vld [vmem:[%s4832_s1 + $0x150] sm:$0xff]  }
  0x85   : > { %3755 = vmatprep.mubr.bf16.mxu1 %v4029_v11  ;;  %3803 = vmatprep.mubr.bf16.mxu0 %v4030_v12  ;;  %v4094_v10 = vld [vmem:[%s4160_s23 + $0x70] sm:$0xff]   ;;  %v4096_v12 = vld [vmem:[%s4160_s23 + $0x78] sm:$0xff]  }
  0x86   : > { %v4095_v11 = vld [vmem:[%s4160_s23 + $0x70] sm:$0xff]  }
  0x8c   : > { %3756 = vmatmul.mubr.bf16.vlgmr.msra.gmra.mxu1 %v4031_v13  ;;  %3804 = vmatmul.mubr.bf16.vlgmr.msra.gmra.mxu0 %v4032_v14  ;;  %v4097_v13 = vld [vmem:[%s4160_s23 + $0x78] sm:$0xff]   ;;  %v4098_v14 = vld [vmem:[%s4160_s23 + $0x80] sm:$0xff]  }
  0x8d   : > { %3836 = vmatpush3.bf16.msra.mxu1 %v4033_v2  ;;  %3884 = vmatpush3.bf16.msra.mxu0 %v4034_v3  ;;  %v4086_v2 = vld [vmem:[%s4160_s23 + $0x50] sm:$0xff]  }
  0x8e   : > { %3759 = vmatprep.mubr.bf16.mxu1 %v4035_v15  ;;  %3807 = vmatprep.mubr.bf16.mxu0 %v4036_v16  ;;  %v4087_v3 = vld [vmem:[%s4160_s23 + $0x50] sm:$0xff]  }
  0x8f   : > { %3837 = vmatprep.subr.bf16.mxu1 %v4039_v17  ;;  %3885 = vmatprep.subr.bf16.mxu0 %v4040_v18 }
  0x91   : > { %3838 = vmatpush3.bf16.msra.mxu1 %v4039_v17  ;;  %3886 = vmatpush3.bf16.msra.mxu0 %v4040_v18 }
  0x92   : > { %3839 = vmatprep.subr.bf16.mxu1 %v4045_v19  ;;  %3887 = vmatprep.subr.bf16.mxu0 %v4046_v21 }
  0x94   : > { %3760 = vmatmul.mubr.bf16.gmra.mxu1 %v4037_v20  ;;  %3808 = vmatmul.mubr.bf16.gmra.mxu0 %v4038_v22  ;;  %v4100_v22 = vld [vmem:[%s4160_s23 + $0x88] sm:$0xff]  }
  0x95   : > { %3763 = vmatprep.mubr.bf16.mxu1 %v4041_v23  ;;  %3811 = vmatprep.mubr.bf16.mxu0 %v4042_v24  ;;  %v4101_v23 = vld [vmem:[%s4160_s23 + $0x88] sm:$0xff]   ;;  %v4102_v24 = vld [vmem:[%s4160_s23 + $0x90] sm:$0xff]  }
  0x96   : > { %3840 = vmatpush3.bf16.msra.mxu1 %v4045_v19  ;;  %3888 = vmatpush3.bf16.msra.mxu0 %v4046_v21  ;;  %v4099_v21 = vld [vmem:[%s4160_s23 + $0x80] sm:$0xff]  }
  0x97   : > { %3841 = vmatprep.subr.bf16.mxu1 %v4051_v25  ;;  %3889 = vmatprep.subr.bf16.mxu0 %v4052_v26 }
  0x9a   : > { %3842 = vmatpush3.bf16.msra.mxu1 %v4051_v25  ;;  %3890 = vmatpush3.bf16.msra.mxu0 %v4052_v26 }
  0x9b   : > { %3843 = vmatprep.subr.bf16.mxu1 %v4057_v29  ;;  %3891 = vmatprep.subr.bf16.mxu0 %v4058_v30 }
  0x9c   : > { %3764 = vmatmul.mubr.bf16.gmra.mxu1 %v4043_v27  ;;  %3812 = vmatmul.mubr.bf16.gmra.mxu0 %v4044_v28 }
  0x9d   : > { %3767 = vmatprep.mubr.bf16.mxu1 %v4047_v31  ;;  %3815 = vmatprep.mubr.bf16.mxu0 %v4048_v32 }
  0x9e   : > { %3844 = vmatpush3.bf16.msra.mxu1 %v4057_v29  ;;  %3892 = vmatpush3.bf16.msra.mxu0 %v4058_v30 }
  0x9f   : > { %3845 = vmatprep.subr.bf16.mxu1 %v4063_v33  ;;  %3893 = vmatprep.subr.bf16.mxu0 %v4064_v34 }
  0xa2   : > { %3846 = vmatpush3.bf16.msra.mxu1 %v4063_v33  ;;  %3894 = vmatpush3.bf16.msra.mxu0 %v4064_v34  ;;  %v4103_v33 = vld [vmem:[%s4160_s23 + $0x90] sm:$0xff]   ;;  %v4104_v34 = vld [vmem:[%s4160_s23 + $0x98] sm:$0xff]  }
  0xa3   : > { %3847 = vmatprep.subr.bf16.mxu1 %v4069_v37  ;;  %3895 = vmatprep.subr.bf16.mxu0 %v4070_v38 }
  0xa4   : > { %3768 = vmatmul.mubr.bf16.gmra.mxu1 %v4049_v35  ;;  %3816 = vmatmul.mubr.bf16.gmra.mxu0 %v4050_v36  ;;  %v4105_v35 = vld [vmem:[%s4160_s23 + $0x98] sm:$0xff]   ;;  %v4106_v36 = vld [vmem:[%s4160_s23 + $0xa0] sm:$0xff]  }
  0xa5   : > { %3771 = vmatprep.mubr.bf16.mxu1 %v4053_v39  ;;  %3819 = vmatprep.mubr.bf16.mxu0 %v4054_v40 }
  0xa6   : > { %3848 = vmatpush3.bf16.msra.mxu1 %v4069_v37  ;;  %3896 = vmatpush3.bf16.msra.mxu0 %v4070_v38 }
  0xa7   : > { %3849 = vmatprep.subr.bf16.mxu1 %v4075_v41  ;;  %3897 = vmatprep.subr.bf16.mxu0 %v4076_v42 }
  0xaa   : > { %3850 = vmatpush3.bf16.msra.mxu1 %v4075_v41  ;;  %3898 = vmatpush3.bf16.msra.mxu0 %v4076_v42 }
  0xac   : > { %3772 = vmatmul.mubr.bf16.gmra.mxu1 %v4055_v43  ;;  %3820 = vmatmul.mubr.bf16.gmra.mxu0 %v4056_v44 }
  0xad   : > { %3775 = vmatprep.mubr.bf16.mxu1 %v4059_v45  ;;  %3823 = vmatprep.mubr.bf16.mxu0 %v4060_v46  ;;  %v4107_v45 = vld [vmem:[%s4160_s23 + $0xa0] sm:$0xff]   ;;  %v4108_v46 = vld [vmem:[%s4160_s23 + $0xa8] sm:$0xff]  }
  0xb4   : > { %3776 = vmatmul.mubr.bf16.gmra.mxu1 %v4061_v47  ;;  %3824 = vmatmul.mubr.bf16.gmra.mxu0 %v4062_v48 }
  0xb5   : > { %3779 = vmatprep.mubr.bf16.mxu1 %v4065_v49  ;;  %3827 = vmatprep.mubr.bf16.mxu0 %v4066_v50 }
  0xbc   : > { %3780 = vmatmul.mubr.bf16.gmra.mxu1 %v4067_v51  ;;  %3828 = vmatmul.mubr.bf16.gmra.mxu0 %v4068_v52 }
  0xbd   : > { %3783 = vmatprep.mubr.bf16.mxu1 %v4071_v53  ;;  %3831 = vmatprep.mubr.bf16.mxu0 %v4072_v54 }
  0xc4   : > { %3784 = vmatmul.mubr.bf16.gmra.mxu1 %v4073_v55  ;;  %3832 = vmatmul.mubr.bf16.gmra.mxu0 %v4074_v56 }
  0xc5   : > { %3851 = vmatprep.mubr.bf16.mxu1 %v4077_v57  ;;  %3899 = vmatprep.mubr.bf16.mxu0 %v4078_v58 }
  0xcc   : > { %3852 = vmatmul.mubr.bf16.vlgmr.msra.gmra.mxu1 %v4079_v59  ;;  %3900 = vmatmul.mubr.bf16.vlgmr.msra.gmra.mxu0 %v4080_v60 }
  0xcd   : > { %3855 = vmatprep.mubr.bf16.mxu1 %v4081_v61  ;;  %3903 = vmatprep.mubr.bf16.mxu0 %v4082_v62 }
  0xd4   : > { %3856 = vmatmul.mubr.bf16.gmra.mxu1 %v4083_v63  ;;  %3904 = vmatmul.mubr.bf16.gmra.mxu0 %v4084_v0 }
  0xd5   : > { %3859 = vmatprep.mubr.bf16.mxu1 %v4085_v1  ;;  %3907 = vmatprep.mubr.bf16.mxu0 %v4086_v2 }
  0xdc   : > { %3860 = vmatmul.mubr.bf16.gmra.mxu1 %v4087_v3  ;;  %3908 = vmatmul.mubr.bf16.gmra.mxu0 %v4088_v4 }
  0xdd   : > { %3863 = vmatprep.mubr.bf16.mxu1 %v4089_v6  ;;  %3911 = vmatprep.mubr.bf16.mxu0 %v4090_v7 }
  0xe4   : > { %3864 = vmatmul.mubr.bf16.gmra.mxu1 %v4091_v8  ;;  %3912 = vmatmul.mubr.bf16.gmra.mxu0 %v4092_v9 }
  0xe5   : > { %3867 = vmatprep.mubr.bf16.mxu1 %v4093_v5  ;;  %3915 = vmatprep.mubr.bf16.mxu0 %v4094_v10 }
  0xec   : > { %v3613_v15 = vpop.f32.mrf.mxu0  ;;  %v4468_v16 = vpop.f32.mrf.mxu1  ;;  %3868 = vmatmul.mubr.bf16.gmra.mxu1 %v4095_v11  ;;  %3916 = vmatmul.mubr.bf16.gmra.mxu0 %v4096_v12 }
  0xed   : > { %3871 = vmatprep.mubr.bf16.mxu1 %v4097_v13  ;;  %3919 = vmatprep.mubr.bf16.mxu0 %v4098_v14 }
  0xee   : > { %v417_v17 = vpop.f32.mrf.mxu0  ;;  %v4470_v18 = vpop.f32.mrf.mxu1 }
  0xf0   : > { %v3614_v19 = vpop.f32.mrf.mxu0  ;;  %v4472_v20 = vpop.f32.mrf.mxu1 }
  0xf2   : > { %v420_v25 = vpop.f32.mrf.mxu0  ;;  %v4478_v26 = vpop.f32.mrf.mxu1 }
  0xf4   : > { %v3617_v27 = vpop.f32.mrf.mxu0  ;;  %v4480_v28 = vpop.f32.mrf.mxu1  ;;  %3872 = vmatmul.mubr.bf16.gmra.mxu1 %v4099_v21  ;;  %3920 = vmatmul.mubr.bf16.gmra.mxu0 %v4100_v22 }
  0xf5   : > { %3875 = vmatprep.mubr.bf16.mxu1 %v4101_v23  ;;  %3923 = vmatprep.mubr.bf16.mxu0 %v4102_v24 }
  0xf6   : > { %v433_v29 = vpop.f32.mrf.mxu0  ;;  %v4482_v30 = vpop.f32.mrf.mxu1 }
  0xf8   : > { %v3618_v31 = vpop.f32.mrf.mxu0  ;;  %v4484_v32 = vpop.f32.mrf.mxu1 }
  0xfa   : > { %v436_v37 = vpop.f32.mrf.mxu0  ;;  %v4490_v38 = vpop.f32.mrf.mxu1 }
  0xfc   : > { %v3621_v39 = vpop.f32.mrf.mxu0  ;;  %v4492_v40 = vpop.f32.mrf.mxu1  ;;  %3876 = vmatmul.mubr.bf16.gmra.mxu1 %v4103_v33  ;;  %3924 = vmatmul.mubr.bf16.gmra.mxu0 %v4104_v34 }
  0xfd   : > { %3879 = vmatprep.mubr.bf16.mxu1 %v4105_v35  ;;  %3927 = vmatprep.mubr.bf16.mxu0 %v4106_v36 }
  0xfe   : > { %v449_v41 = vpop.f32.mrf.mxu0  ;;  %v4494_v42 = vpop.f32.mrf.mxu1 }
 0x100   : > { %v3622_v43 = vpop.f32.mrf.mxu0  ;;  %v4496_v44 = vpop.f32.mrf.mxu1 }
 0x102   : > { %v452_v47 = vpop.f32.mrf.mxu0  ;;  %v4500_v48 = vpop.f32.mrf.mxu1 }
 0x104   : > { %v3625_v49 = vpop.f32.mrf.mxu0  ;;  %v4502_v50 = vpop.f32.mrf.mxu1  ;;  %3880 = vmatmul.mubr.bf16.gmra.mxu1 %v4107_v45  ;;  %3928 = vmatmul.mubr.bf16.gmra.mxu0 %v4108_v46 }
 0x106   : > { %v465_v51 = vpop.f32.mrf.mxu0  ;;  %v4504_v52 = vpop.f32.mrf.mxu1 }
 0x108   : > { %v3626_v53 = vpop.f32.mrf.mxu0  ;;  %v4506_v54 = vpop.f32.mrf.mxu1 }
 0x10a   : > { %v4508_v55 = vpop.f32.mrf.mxu0  ;;  %v4510_v56 = vpop.f32.mrf.mxu1 }
 0x10c   : > { %v3661_v57 = vpop.f32.mrf.mxu1  ;;  %v3709_v58 = vpop.f32.mrf.mxu0 }
 0x10d   : > { %v641_v59 = vadd.f32 %v3661_v57, %v3613_v15 }
 0x10e   : > { %v632_v60 = vpop.f32.mrf.mxu1  ;;  %v986_v61 = vpop.f32.mrf.mxu0 }
 0x10f   : > { %v4512_v62 = vadd.f32 %v3709_v58, %v641_v59  ;;  %v633_v63 = vadd.f32 %v632_v60, %v417_v17 }
 0x110   : > { %v3662_v0 = vpop.f32.mrf.mxu1  ;;  %v3710_v1 = vpop.f32.mrf.mxu0 }
 0x111   : > { %v4514_v2 = vadd.f32 %v986_v61, %v633_v63  ;;  %v644_v3 = vadd.f32 %v3662_v0, %v3614_v19 }
 0x112   : > { %v635_v4 = vpop.f32.mrf.mxu1  ;;  %v989_v6 = vpop.f32.mrf.mxu0 }
 0x113   : > { %v4516_v7 = vadd.f32 %v3710_v1, %v644_v3  ;;  %v636_v8 = vadd.f32 %v635_v4, %v420_v25 }
 0x114   : > { %v3665_v9 = vpop.f32.mrf.mxu1  ;;  %v3713_v5 = vpop.f32.mrf.mxu0 }
 0x115   : > { %v4518_v10 = vadd.f32 %v989_v6, %v636_v8  ;;  %v657_v11 = vadd.f32 %v3665_v9, %v3617_v27 }
 0x116   : > { %v648_v12 = vpop.f32.mrf.mxu1  ;;  %v1002_v13 = vpop.f32.mrf.mxu0 }
 0x117   : > { %v4520_v14 = vadd.f32 %v3713_v5, %v657_v11  ;;  %v649_v15 = vadd.f32 %v648_v12, %v433_v29 }
 0x118   : > { %v3666_v17 = vpop.f32.mrf.mxu1  ;;  %v3714_v21 = vpop.f32.mrf.mxu0 }
 0x119   : > { %v4522_v22 = vadd.f32 %v1002_v13, %v649_v15  ;;  %v660_v19 = vadd.f32 %v3666_v17, %v3618_v31 }
 0x11a   : > { %v651_v23 = vpop.f32.mrf.mxu1  ;;  %v1005_v24 = vpop.f32.mrf.mxu0 }
 0x11b   : > { %v4524_v33 = vadd.f32 %v3714_v21, %v660_v19  ;;  %v652_v25 = vadd.f32 %v651_v23, %v436_v37 }
 0x11c   : > { %v3669_v34 = vpop.f32.mrf.mxu1  ;;  %v3717_v35 = vpop.f32.mrf.mxu0 }
 0x11d   : > { %v4526_v36 = vadd.f32 %v1005_v24, %v652_v25  ;;  %v673_v27 = vadd.f32 %v3669_v34, %v3621_v39 }
 0x11e   : > { %v664_v45 = vpop.f32.mrf.mxu1  ;;  %v1018_v46 = vpop.f32.mrf.mxu0 }
 0x11f   : > { %v4528_v57 = vadd.f32 %v3717_v35, %v673_v27  ;;  %v665_v29 = vadd.f32 %v664_v45, %v449_v41 }
 0x120   : > { %v3670_v58 = vpop.f32.mrf.mxu1  ;;  %v3718_v59 = vpop.f32.mrf.mxu0 }
 0x121   : > { %v4530_v60 = vadd.f32 %v1018_v46, %v665_v29  ;;  %v676_v31 = vadd.f32 %v3670_v58, %v3622_v43 }
 0x122   : > { %v667_v61 = vpop.f32.mrf.mxu1  ;;  %v1021_v63 = vpop.f32.mrf.mxu0 }
 0x123   : > { %v4532_v0 = vadd.f32 %v3718_v59, %v676_v31  ;;  %v668_v37 = vadd.f32 %v667_v61, %v452_v47 }
 0x124   : > { %v3673_v1 = vpop.f32.mrf.mxu1  ;;  %v3721_v3 = vpop.f32.mrf.mxu0 }
 0x125   : > { %v4534_v4 = vadd.f32 %v1021_v63, %v668_v37  ;;  %v689_v39 = vadd.f32 %v3673_v1, %v3625_v49 }
 0x126   : > { %v680_v6 = vpop.f32.mrf.mxu1  ;;  %v1034_v8 = vpop.f32.mrf.mxu0 }
 0x127   : > { %v4536_v9 = vadd.f32 %v3721_v3, %v689_v39  ;;  %v681_v41 = vadd.f32 %v680_v6, %v465_v51 }
 0x128   : > { %v3674_v5 = vpop.f32.mrf.mxu1  ;;  %v3722_v11 = vpop.f32.mrf.mxu0 }
 0x129   : > { %v4538_v12 = vadd.f32 %v1034_v8, %v681_v41  ;;  %v692_v43 = vadd.f32 %v3674_v5, %v3626_v53 }
 0x12a   : > { %v683_v13 = vpop.f32.mrf.mxu1  ;;  %v1037_v15 = vpop.f32.mrf.mxu0 }
 0x12b   : > { %v4540_v17 = vadd.f32 %v3722_v11, %v692_v43  ;;  %v684_v47 = vadd.f32 %v683_v13, %v4508_v55 }
 0x12c   : > { %v3677_v21 = vpop.f32.mrf.mxu1  ;;  %v3725_v19 = vpop.f32.mrf.mxu0 }
 0x12d   : > { %v4543_v23 = vadd.f32 %v1037_v15, %v684_v47  ;;  %v705_v49 = vadd.f32 %v3677_v21, %v4468_v16 }
 0x12e   : > { %v696_v24 = vpop.f32.mrf.mxu1  ;;  %v1050_v25 = vpop.f32.mrf.mxu0 }
 0x12f   : > { %v4546_v51 = vadd.f32 %v3725_v19, %v705_v49  ;;  %v697_v34 = vadd.f32 %v696_v24, %v4470_v18 }
 0x130   : > { %v3678_v35 = vpop.f32.mrf.mxu1  ;;  %v3726_v53 = vpop.f32.mrf.mxu0 }
 0x131   : > { %v4549_v27 = vadd.f32 %v1050_v25, %v697_v34  ;;  %v708_v45 = vadd.f32 %v3678_v35, %v4472_v20 }
 0x132   : > { %v699_v46 = vpop.f32.mrf.mxu1  ;;  %v1053_v55 = vpop.f32.mrf.mxu0 }
 0x133   : > { %v4552_v29 = vadd.f32 %v3726_v53, %v708_v45  ;;  %v700_v58 = vadd.f32 %v699_v46, %v4478_v26 }
 0x134   : > { %v3681_v59 = vpop.f32.mrf.mxu1  ;;  %v3729_v16 = vpop.f32.mrf.mxu0 }
 0x135   : > { %v4555_v31 = vadd.f32 %v1053_v55, %v700_v58  ;;  %v721_v61 = vadd.f32 %v3681_v59, %v4480_v28 }
 0x136   : > { %v712_v63 = vpop.f32.mrf.mxu1  ;;  %v1066_v18 = vpop.f32.mrf.mxu0 }
 0x137   : > { %v4558_v37 = vadd.f32 %v3729_v16, %v721_v61  ;;  %v713_v1 = vadd.f32 %v712_v63, %v4482_v30 }
 0x138   : > { %v3682_v3 = vpop.f32.mrf.mxu1  ;;  %v3730_v20 = vpop.f32.mrf.mxu0 }
 0x139   : > { %v4561_v39 = vadd.f32 %v1066_v18, %v713_v1  ;;  %v724_v6 = vadd.f32 %v3682_v3, %v4484_v32 }
 0x13a   : > { %v715_v8 = vpop.f32.mrf.mxu1  ;;  %v1069_v26 = vpop.f32.mrf.mxu0 }
 0x13b   : > { %v4564_v41 = vadd.f32 %v3730_v20, %v724_v6  ;;  %v716_v5 = vadd.f32 %v715_v8, %v4490_v38 }
 0x13c   : > { %v3685_v11 = vpop.f32.mrf.mxu1  ;;  %v3733_v28 = vpop.f32.mrf.mxu0 }
 0x13d   : > { %v4567_v43 = vadd.f32 %v1069_v26, %v716_v5  ;;  %v737_v13 = vadd.f32 %v3685_v11, %v4492_v40 }
 0x13e   : > { %v728_v15 = vpop.f32.mrf.mxu1  ;;  %v1082_v30 = vpop.f32.mrf.mxu0 }
 0x13f   : > { %v4570_v47 = vadd.f32 %v3733_v28, %v737_v13  ;;  %v729_v21 = vadd.f32 %v728_v15, %v4494_v42 }
 0x140   : > { %v3686_v19 = vpop.f32.mrf.mxu1  ;;  %v3734_v32 = vpop.f32.mrf.mxu0 }
 0x141   : > { %v4573_v49 = vadd.f32 %v1082_v30, %v729_v21  ;;  %v740_v24 = vadd.f32 %v3686_v19, %v4496_v44 }
 0x142   : > { %v731_v25 = vpop.f32.mrf.mxu1  ;;  %v1085_v38 = vpop.f32.mrf.mxu0 }
 0x143   : > { %v4576_v34 = vadd.f32 %v3734_v32, %v740_v24  ;;  %v732_v35 = vadd.f32 %v731_v25, %v4500_v48 }
 0x144   : > { %v3689_v53 = vpop.f32.mrf.mxu1  ;;  %v3737_v40 = vpop.f32.mrf.mxu0 }
 0x145   : > { %4835 = vst [vmem:[#allocation2_spill] sm:$0xff] %v4576_v34  ;;  %v4579_v45 = vadd.f32 %v1085_v38, %v732_v35  ;;  %v753_v46 = vadd.f32 %v3689_v53, %v4502_v50 }
 0x146   : > { %v744_v55 = vpop.f32.mrf.mxu1  ;;  %v1098_v42 = vpop.f32.mrf.mxu0 }
 0x147   : > { %4836 = vst [vmem:[#allocation3_spill] sm:$0xff] %v4579_v45  ;;  %v4582_v58 = vadd.f32 %v3737_v40, %v753_v46  ;;  %v745_v59 = vadd.f32 %v744_v55, %v4504_v52 }
 0x148   : > { %v3690_v16 = vpop.f32.mrf.mxu1  ;;  %v3738_v44 = vpop.f32.mrf.mxu0 }
 0x149   : > { %v4585_v61 = vadd.f32 %v1098_v42, %v745_v59  ;;  %v756_v63 = vadd.f32 %v3690_v16, %v4506_v54 }
 0x14a   : > { %v747_v18 = vpop.f32.mrf.mxu1  ;;  %v1101_v48 = vpop.f32.mrf.mxu0 }
 0x14b   : > { %v4588_v1 = vadd.f32 %v3738_v44, %v756_v63  ;;  %v748_v3 = vadd.f32 %v747_v18, %v4510_v56 }
 0x14c   : > { %v3757_v20 = vpop.f32.mrf.mxu1  ;;  %v3805_v50 = vpop.f32.mrf.mxu0 }
 0x14d   : > { %4837 = vst [vmem:[#allocation4_spill] sm:$0xff] %v4588_v1  ;;  %v4591_v6 = vadd.f32 %v1101_v48, %v748_v3  ;;  %v1501_v8 = vadd.f32 %v3757_v20, %v4512_v62 }
 0x14e   : > { %v1372_v26 = vpop.f32.mrf.mxu1  ;;  %v1758_v52 = vpop.f32.mrf.mxu0 }
 0x14f   : > { %4838 = vst [vmem:[#allocation5_spill] sm:$0xff] %v4591_v6  ;;  %v4594_v5 = vadd.f32 %v3805_v50, %v1501_v8  ;;  %v1499_v11 = vadd.f32 %v1372_v26, %v4514_v2 }
 0x150   : > { %v4597_v28 = vpop.f32.mrf.mxu1  ;;  %v4599_v54 = vpop.f32.mrf.mxu0 }
 0x151   : > { %v4601_v13 = vadd.f32 %v1758_v52, %v1499_v11 }
 0x152   : > { %v4603_v15 = vpop.f32.mrf.mxu1  ;;  %v4605_v56 = vpop.f32.mrf.mxu0 }
 0x154   : > { %v3761_v30 = vpop.f32.mrf.mxu1  ;;  %v3809_v21 = vpop.f32.mrf.mxu0 }
 0x155   : > { %v1505_v62 = vadd.f32 %v3761_v30, %v4520_v14 }
 0x156   : > { %v1388_v19 = vpop.f32.mrf.mxu1  ;;  %v1774_v32 = vpop.f32.mrf.mxu0 }
 0x157   : > { %v4608_v24 = vadd.f32 %v3809_v21, %v1505_v62  ;;  %v1503_v2 = vadd.f32 %v1388_v19, %v4522_v22 }
 0x158   : > { %v4611_v25 = vpop.f32.mrf.mxu1  ;;  %v4613_v38 = vpop.f32.mrf.mxu0 }
 0x159   : > { %v4615_v35 = vadd.f32 %v1774_v32, %v1503_v2 }
 0x15a   : > { %v4617_v53 = vpop.f32.mrf.mxu1  ;;  %v4619_v40 = vpop.f32.mrf.mxu0 }
 0x15c   : > { %v3765_v46 = vpop.f32.mrf.mxu1  ;;  %v3813_v55 = vpop.f32.mrf.mxu0 }
 0x15d   : > { %v1509_v14 = vadd.f32 %v3765_v46, %v4528_v57 }
 0x15e   : > { %v1404_v42 = vpop.f32.mrf.mxu1  ;;  %v1790_v59 = vpop.f32.mrf.mxu0 }
 0x15f   : > { %v4622_v16 = vadd.f32 %v3813_v55, %v1509_v14  ;;  %v1507_v22 = vadd.f32 %v1404_v42, %v4530_v60 }
 0x160   : > { %v4625_v44 = vpop.f32.mrf.mxu1  ;;  %v4627_v63 = vpop.f32.mrf.mxu0 }
 0x161   : > { %v4629_v18 = vadd.f32 %v1790_v59, %v1507_v22 }
 0x162   : > { %v4631_v48 = vpop.f32.mrf.mxu1  ;;  %v4633_v3 = vpop.f32.mrf.mxu0 }
 0x164   : > { %v3769_v20 = vpop.f32.mrf.mxu1  ;;  %v3817_v50 = vpop.f32.mrf.mxu0 }
 0x165   : > { %v1513_v57 = vadd.f32 %v3769_v20, %v4536_v9 }
 0x166   : > { %v1420_v8 = vpop.f32.mrf.mxu1  ;;  %v1806_v26 = vpop.f32.mrf.mxu0 }
 0x167   : > { %v4636_v52 = vadd.f32 %v3817_v50, %v1513_v57  ;;  %v1511_v60 = vadd.f32 %v1420_v8, %v4538_v12 }
 0x168   : > { %v4639_v11 = vpop.f32.mrf.mxu1  ;;  %v4641_v30 = vpop.f32.mrf.mxu0 }
 0x169   : > { %v4643_v21 = vadd.f32 %v1806_v26, %v1511_v60 }
 0x16a   : > { %v4645_v62 = vpop.f32.mrf.mxu1  ;;  %v4647_v19 = vpop.f32.mrf.mxu0 }
 0x16c   : > { %v3773_v32 = vpop.f32.mrf.mxu1  ;;  %v3821_v2 = vpop.f32.mrf.mxu0 }
 0x16d   : > { %v1517_v9 = vadd.f32 %v3773_v32, %v4546_v51 }
 0x16e   : > { %v1436_v46 = vpop.f32.mrf.mxu1  ;;  %v1822_v55 = vpop.f32.mrf.mxu0 }
 0x16f   : > { %v4650_v14 = vadd.f32 %v3821_v2, %v1517_v9  ;;  %v1515_v12 = vadd.f32 %v1436_v46, %v4549_v27 }
 0x170   : > { %v4653_v42 = vpop.f32.mrf.mxu1  ;;  %v4655_v59 = vpop.f32.mrf.mxu0 }
 0x171   : > { %v4657_v22 = vadd.f32 %v1822_v55, %v1515_v12 }
 0x172   : > { %v4659_v20 = vpop.f32.mrf.mxu1  ;;  %v4661_v50 = vpop.f32.mrf.mxu0 }
 0x174   : > { %v3777_v57 = vpop.f32.mrf.mxu1  ;;  %v3825_v8 = vpop.f32.mrf.mxu0 }
 0x175   : > { %v1521_v51 = vadd.f32 %v3777_v57, %v4558_v37 }
 0x176   : > { %v1452_v26 = vpop.f32.mrf.mxu1  ;;  %v1838_v60 = vpop.f32.mrf.mxu0 }
 0x177   : > { %v4664_v32 = vadd.f32 %v3825_v8, %v1521_v51  ;;  %v1519_v27 = vadd.f32 %v1452_v26, %v4561_v39 }
 0x178   : > { %v4667_v2 = vpop.f32.mrf.mxu1  ;;  %v4669_v9 = vpop.f32.mrf.mxu0 }
 0x179   : > { %4839 = vst [vmem:[#allocation6_spill] sm:$0xff] %v4669_v9  ;;  %v4671_v46 = vadd.f32 %v1838_v60, %v1519_v27 }
 0x17a   : > { %v4673_v55 = vpop.f32.mrf.mxu1  ;;  %v4675_v12 = vpop.f32.mrf.mxu0 }
 0x17b   : > { %4840 = vst [vmem:[#allocation7_spill] sm:$0xff] %v4671_v46  ;;  %4841 = vst [vmem:[#allocation8_spill] sm:$0xff] %v4675_v12 }
 0x17c   : > { %v3781_v6 = vpop.f32.mrf.mxu1  ;;  %v3829_v1 = vpop.f32.mrf.mxu0 }
 0x17d   : > { %v1525_v37 = vadd.f32 %v3781_v6, %v4570_v47 }
 0x17e   : > { %v1468_v57 = vpop.f32.mrf.mxu1  ;;  %v1854_v45 = vpop.f32.mrf.mxu0 }
 0x17f   : > { %v4678_v8 = vadd.f32 %v3829_v1, %v1525_v37  ;;  %v1523_v39 = vadd.f32 %v1468_v57, %v4573_v49 }
 0x180   : > { %v4681_v51 = vpop.f32.mrf.mxu1  ;;  %v4683_v26 = vpop.f32.mrf.mxu0 }
 0x181   : > { %v4685_v60 = vadd.f32 %v1854_v45, %v1523_v39 }
 0x182   : > { %v4687_v27 = vpop.f32.mrf.mxu1  ;;  %v4689_v34 = vpop.f32.mrf.mxu0 }
 0x183   : > { %4842 = vst [vmem:[#allocation9_spill] sm:$0xff] %v4685_v60  ;;  %4843 = vst [vmem:[#allocation10_spill] sm:$0xff] %v4689_v34  ;;  %v1502_v34 = vadd.f32 %v4597_v28, %v4516_v7 }
 0x184   : > { %v3785_v12 = vpop.f32.mrf.mxu1  ;;  %v3833_v46 = vpop.f32.mrf.mxu0 }
 0x185   : > { %v1529_v47 = vadd.f32 %v3785_v12, %v4582_v58 }
 0x186   : > { %v1484_v6 = vpop.f32.mrf.mxu1  ;;  %v1870_v9 = vpop.f32.mrf.mxu0 }
 0x187   : > { %v4692_v1 = vadd.f32 %v3833_v46, %v1529_v47  ;;  %v1527_v49 = vadd.f32 %v1484_v6, %v4585_v61  ;;  %v1500_v46 = vadd.f32 %v4603_v15, %v4518_v10  ;;  %v4713_v47 = vld [vmem:[%s4833_s2] ss:$0 sm:$0xff] }
 0x188   : > { %v4695_v37 = vpop.f32.mrf.mxu1  ;;  %v4697_v57 = vpop.f32.mrf.mxu0 }
 0x189   : > { %4844 = vst [vmem:[#allocation11_spill] sm:$0xff] %v4692_v1  ;;  %4845 = vst [vmem:[#allocation12_spill] sm:$0xff] %v4695_v37  ;;  %v4699_v45 = vadd.f32 %v1870_v9, %v1527_v49  ;;  %v1888_v49 = vadd.f32 %v4599_v54, %v1502_v34  ;;  %v1506_v1 = vadd.f32 %v4611_v25, %v4524_v33 }
 0x18a   : > { %4846 = vst [vmem:[#allocation13_spill] sm:$0xff] %v4697_v57  ;;  %v4701_v39 = vpop.f32.mrf.mxu1  ;;  %v4703_v60 = vpop.f32.mrf.mxu0  ;;  %v1886_v57 = vadd.f32 %v4605_v56, %v1500_v46 }
 0x18b   : > { %4847 = vst [vmem:[#allocation14_spill] sm:$0xff] %v4699_v45  ;;  %4848 = vst [vmem:[#allocation15_spill] sm:$0xff] %v4701_v39  ;;  %v1892_v33 = vadd.f32 %v4613_v38, %v1506_v1 }
 0x18c   : > { %4849 = vst [vmem:[#allocation16_spill] sm:$0xff] %v4703_v60  ;;  %v3853_v58 = vpop.f32.mrf.mxu1  ;;  %v3901_v12 = vpop.f32.mrf.mxu0 }
 0x18d   : > { %v2273_v61 = vadd.f32 %v3853_v58, %v4594_v5 }
 0x18e   : > { %v2144_v9 = vpop.f32.mrf.mxu1  ;;  %v2530_v6 = vpop.f32.mrf.mxu0 }
 0x18f   : > { %v2659_v60 = vadd.f32 %v3901_v12, %v2273_v61  ;;  %v2271_v45 = vadd.f32 %v2144_v9, %v4601_v13 }
 0x190   : > { %v3854_v7 = vpop.f32.mrf.mxu1  ;;  %v3902_v28 = vpop.f32.mrf.mxu0 }
 0x191   : > { %v2698_v10 = vadd.f32 %v4713_v47, %v2659_v60  ;;  %v2657_v15 = vadd.f32 %v2530_v6, %v2271_v45  ;;  %v2274_v5 = vadd.f32 %v3854_v7, %v1888_v49  ;;  %v1504_v60 = vadd.f32 %v4617_v53, %v4526_v36 }
 0x192   : > { %v2147_v58 = vpop.f32.mrf.mxu1  ;;  %v2533_v39 = vpop.f32.mrf.mxu0 }
 0x193   : > { %v2696_v37 = vadd.f32 %v4713_v47, %v2657_v15  ;;  %v2660_v34 = vadd.f32 %v3902_v28, %v2274_v5  ;;  %v2272_v54 = vadd.f32 %v2147_v58, %v1886_v57  ;;  %v2730_v12 = vmax.f32 %v2698_v10, 0.0 }
 0x194   : > { %v3857_v13 = vpop.f32.mrf.mxu1  ;;  %v3905_v61 = vpop.f32.mrf.mxu0 }
 0x195   : > { %v2699_v9 = vadd.f32 %v4713_v47, %v2660_v34  ;;  %v2658_v56 = vadd.f32 %v2533_v39, %v2272_v54  ;;  %v2728_v45 = vmax.f32 %v2696_v37, 0.0  ;;  %v2277_v46 = vadd.f32 %v3857_v13, %v4608_v24 }
 0x196   : > { %v2160_v6 = vpop.f32.mrf.mxu1  ;;  %v2546_v49 = vpop.f32.mrf.mxu0  ;;  %v2762_v28 = vmin.f32 %v2730_v12, 6.0  ;;  %v1890_v24 = vadd.f32 %v4619_v40, %v1504_v60  ;;  %v1510_v37 = vadd.f32 %v4625_v44, %v4532_v0 }
 0x197   : > { %v2731_v25 = vmax.f32 %v2699_v9, 0.0  ;;  %v2697_v57 = vadd.f32 %v4713_v47, %v2658_v56  ;;  %v2275_v7 = vadd.f32 %v2160_v6, %v4615_v35  ;;  %v2663_v10 = vadd.f32 %v3905_v61, %v2277_v46 }
 0x198   : > { %v3858_v15 = vpop.f32.mrf.mxu1  ;;  %v3906_v39 = vpop.f32.mrf.mxu0  ;;  %v2760_v38 = vmin.f32 %v2728_v45, 6.0  ;;  %v1896_v46 = vadd.f32 %v4627_v63, %v1510_v37  ;;  %v1508_v6 = vadd.f32 %v4631_v48, %v4534_v4 }
 0x199   : > { %v2763_v5 = vmin.f32 %v2731_v25, 6.0  ;;  %v2729_v58 = vmax.f32 %v2697_v57, 0.0  ;;  %v2661_v36 = vadd.f32 %v2546_v49, %v2275_v7  ;;  %v2278_v53 = vadd.f32 %v3858_v15, %v1892_v33 }
 0x19a   : > { %v2702_v35 = vadd.f32 %v4713_v47, %v2663_v10  ;;  %v2163_v1 = vpop.f32.mrf.mxu1  ;;  %v2549_v34 = vpop.f32.mrf.mxu0  ;;  %v1894_v48 = vadd.f32 %v4633_v3, %v1508_v6 }
 0x19b   : > { %v3340_v54 = vpack.c.bf16 %v2763_v5, %v2762_v28  ;;  %v2761_v12 = vmin.f32 %v2729_v58, 6.0  ;;  %v2700_v13 = vadd.f32 %v4713_v47, %v2661_v36  ;;  %v2664_v40 = vadd.f32 %v3906_v39, %v2278_v53 }
 0x19c   : > { %v2734_v61 = vmax.f32 %v2702_v35, 0.0  ;;  %v2276_v9 = vadd.f32 %v2163_v1, %v1890_v24  ;;  %v3861_v0 = vpop.f32.mrf.mxu1  ;;  %v3909_v44 = vpop.f32.mrf.mxu0 }
 0x19d   : > { %3412 = vst [vmem:[%s4736_s10 + $0x8] sm:$0xff] %v3340_v54   ;;  %v3335_v56 = vpack.c.bf16 %v2761_v12, %v2760_v38  ;;  %v2703_v60 = vadd.f32 %v4713_v47, %v2664_v40  ;;  %v2281_v45 = vadd.f32 %v3861_v0, %v4622_v16  ;;  %v2732_v57 = vmax.f32 %v2700_v13, 0.0 }
 0x19e   : > { %v2662_v49 = vadd.f32 %v2549_v34, %v2276_v9  ;;  %v2176_v33 = vpop.f32.mrf.mxu1  ;;  %v2562_v25 = vpop.f32.mrf.mxu0  ;;  %v2766_v15 = vmin.f32 %v2734_v61, 6.0  ;;  %v1514_v38 = vadd.f32 %v4639_v11, %v4540_v17  ;;  %v1512_v0 = vadd.f32 %v4645_v62, %v4543_v23 }
 0x19f   : > { %3336 = vst [vmem:[%s4736_s10] sm:$0xff] %v3335_v56   ;;  %v2735_v7 = vmax.f32 %v2703_v60, 0.0  ;;  %v2667_v28 = vadd.f32 %v3909_v44, %v2281_v45  ;;  %v2279_v10 = vadd.f32 %v2176_v33, %v4629_v18  ;;  %v2764_v18 = vmin.f32 %v2732_v57, 6.0 }
 0x1a0   : > { %v2701_v39 = vadd.f32 %v4713_v47, %v2662_v49  ;;  %v3862_v5 = vpop.f32.mrf.mxu1  ;;  %v3910_v58 = vpop.f32.mrf.mxu0  ;;  %v1900_v60 = vadd.f32 %v4641_v30, %v1514_v38  ;;  %v1518_v30 = vadd.f32 %v4653_v42, %v4552_v29  ;;  %v1516_v42 = vadd.f32 %v4659_v20, %v4555_v31 }
 0x1a1   : > { %v2767_v16 = vmin.f32 %v2735_v7, 6.0  ;;  %v2706_v63 = vadd.f32 %v4713_v47, %v2667_v28  ;;  %v2665_v36 = vadd.f32 %v2562_v25, %v2279_v10  ;;  %v2282_v4 = vadd.f32 %v3862_v5, %v1896_v46 }
 0x1a2   : > { %v2733_v53 = vmax.f32 %v2701_v39, 0.0  ;;  %v2179_v24 = vpop.f32.mrf.mxu1  ;;  %v2565_v37 = vpop.f32.mrf.mxu0  ;;  %v1898_v10 = vadd.f32 %v4647_v19, %v1512_v0  ;;  %v1904_v29 = vadd.f32 %v4655_v59, %v1518_v30  ;;  %v1902_v20 = vadd.f32 %v4661_v50, %v1516_v42 }
 0x1a3   : > { %v3350_v35 = vpack.c.bf16 %v2767_v16, %v2766_v15  ;;  %v2668_v1 = vadd.f32 %v3910_v58, %v2282_v4  ;;  %v2738_v54 = vmax.f32 %v2706_v63, 0.0  ;;  %v2704_v12 = vadd.f32 %v4713_v47, %v2665_v36 }
 0x1a4   : > { %v2765_v34 = vmin.f32 %v2733_v53, 6.0  ;;  %v2280_v13 = vadd.f32 %v2179_v24, %v1894_v48  ;;  %v3865_v40 = vpop.f32.mrf.mxu1  ;;  %v3913_v61 = vpop.f32.mrf.mxu0 }
 0x1a5   : > { %3414 = vst [vmem:[%s4736_s10 + $0x18] sm:$0xff] %v3350_v35   ;;  %v2707_v3 = vadd.f32 %v4713_v47, %v2668_v1  ;;  %v2285_v9 = vadd.f32 %v3865_v40, %v4636_v52  ;;  %v2770_v49 = vmin.f32 %v2738_v54, 6.0  ;;  %v2736_v33 = vmax.f32 %v2704_v12, 0.0 }
 0x1a6   : > { %v3345_v17 = vpack.c.bf16 %v2765_v34, %v2764_v18  ;;  %v2666_v11 = vadd.f32 %v2565_v37, %v2280_v13  ;;  %v2192_v44 = vpop.f32.mrf.mxu1  ;;  %v2578_v56 = vpop.f32.mrf.mxu0 }
 0x1a7   : > { %v2739_v45 = vmax.f32 %v2707_v3, 0.0  ;;  %v2671_v46 = vadd.f32 %v3913_v61, %v2285_v9  ;;  %v2283_v6 = vadd.f32 %v2192_v44, %v4643_v21  ;;  %v2768_v63 = vmin.f32 %v2736_v33, 6.0 }
 0x1a8   : > { %3413 = vst [vmem:[%s4736_s10 + $0x10] sm:$0xff] %v3345_v17   ;;  %v2705_v25 = vadd.f32 %v4713_v47, %v2666_v11  ;;  %v3866_v57 = vpop.f32.mrf.mxu1  ;;  %v3914_v52 = vpop.f32.mrf.mxu0 }
 0x1a9   : > { %v2771_v7 = vmin.f32 %v2739_v45, 6.0  ;;  %v2710_v23 = vadd.f32 %v4713_v47, %v2671_v46  ;;  %v2669_v62 = vadd.f32 %v2578_v56, %v2283_v6  ;;  %v2286_v28 = vadd.f32 %v3866_v57, %v1900_v60 }
 0x1aa   : > { %v2737_v15 = vmax.f32 %v2705_v25, 0.0  ;;  %v2195_v21 = vpop.f32.mrf.mxu1  ;;  %v2581_v39 = vpop.f32.mrf.mxu0 }
 0x1ab   : > { %v3360_v5 = vpack.c.bf16 %v2771_v7, %v2770_v49  ;;  %v2708_v58 = vadd.f32 %v4713_v47, %v2669_v62  ;;  %v2672_v16 = vadd.f32 %v3914_v52, %v2286_v28  ;;  %v2742_v4 = vmax.f32 %v2710_v23, 0.0  ;;  %v4850_v28 = vld [vmem:[#allocation6_spill] sm:$0xff] }
 0x1ac   : > { %v2769_v36 = vmin.f32 %v2737_v15, 6.0  ;;  %v2284_v48 = vadd.f32 %v2195_v21, %v1898_v10  ;;  %v3869_v53 = vpop.f32.mrf.mxu1  ;;  %v3917_v24 = vpop.f32.mrf.mxu0  ;;  %v1520_v7 = vadd.f32 %v4673_v55, %v4567_v43  ;;  %v4851_v21 = vld [vmem:[#allocation7_spill] sm:$0xff] }
 0x1ad   : > { %3416 = vst [vmem:[%s4736_s10 + $0x28] sm:$0xff] %v3360_v5   ;;  %v2711_v19 = vadd.f32 %v4713_v47, %v2672_v16  ;;  %v2289_v37 = vadd.f32 %v3869_v53, %v4650_v14  ;;  %v2740_v34 = vmax.f32 %v2708_v58, 0.0  ;;  %v2774_v40 = vmin.f32 %v2742_v4, 6.0 }
 0x1ae   : > { %v3355_v38 = vpack.c.bf16 %v2769_v36, %v2768_v63  ;;  %v2670_v18 = vadd.f32 %v2581_v39, %v2284_v48  ;;  %v2208_v35 = vpop.f32.mrf.mxu1  ;;  %v2594_v1 = vpop.f32.mrf.mxu0  ;;  %v4852_v48 = vld [vmem:[#allocation8_spill] sm:$0xff] }
 0x1af   : > { %v2743_v54 = vmax.f32 %v2711_v19, 0.0  ;;  %v2675_v12 = vadd.f32 %v3917_v24, %v2289_v37  ;;  %v2287_v13 = vadd.f32 %v2208_v35, %v4657_v22  ;;  %v1522_v22 = vadd.f32 %v4667_v2, %v4564_v41  ;;  %v4853_v24 = vld [vmem:[#allocation2_spill] sm:$0xff] }
 0x1b0   : > { %3415 = vst [vmem:[%s4736_s10 + $0x20] sm:$0xff] %v3355_v38   ;;  %v2709_v61 = vadd.f32 %v4713_v47, %v2670_v18  ;;  %v3870_v3 = vpop.f32.mrf.mxu1  ;;  %v3918_v14 = vpop.f32.mrf.mxu0  ;;  %v2772_v56 = vmin.f32 %v2740_v34, 6.0  ;;  %v1906_v53 = vadd.f32 %v4852_v48, %v1520_v7  ;;  %v1526_v19 = vadd.f32 %v4681_v51, %v4853_v24  ;;  %v4857_v7 = vld [vmem:[#allocation4_spill] sm:$0xff]  ;;  %v4862_v24 = vld [vmem:[#allocation13_spill] sm:$0xff] }
 0x1b1   : > { %v2775_v9 = vmin.f32 %v2743_v54, 6.0  ;;  %v2714_v59 = vadd.f32 %v4713_v47, %v2675_v12  ;;  %v2673_v0 = vadd.f32 %v2594_v1, %v2287_v13  ;;  %v2290_v31 = vadd.f32 %v3870_v3, %v1904_v29 }
 0x1b2   : > { %v2741_v17 = vmax.f32 %v2709_v61, 0.0  ;;  %v2211_v11 = vpop.f32.mrf.mxu1  ;;  %v2597_v44 = vpop.f32.mrf.mxu0  ;;  %v1908_v10 = vadd.f32 %v4850_v28, %v1522_v22  ;;  %v1912_v51 = vadd.f32 %v4683_v26, %v1526_v19  ;;  %v4855_v22 = vld [vmem:[#allocation9_spill] sm:$0xff] }
 0x1b3   : > { %v3370_v60 = vpack.c.bf16 %v2775_v9, %v2774_v40  ;;  %v2676_v45 = vadd.f32 %v3918_v14, %v2290_v31  ;;  %v2746_v6 = vmax.f32 %v2714_v59, 0.0  ;;  %v2712_v49 = vadd.f32 %v4713_v47, %v2673_v0  ;;  %v4854_v14 = vld [vmem:[#allocation3_spill] sm:$0xff] }
 0x1b4   : > { %v2773_v46 = vmin.f32 %v2741_v17, 6.0  ;;  %v2288_v33 = vadd.f32 %v2211_v11, %v1902_v20  ;;  %v3873_v25 = vpop.f32.mrf.mxu1  ;;  %v3921_v57 = vpop.f32.mrf.mxu0  ;;  %v1524_v9 = vadd.f32 %v4687_v27, %v4854_v14 }
 0x1b5   : > { %3418 = vst [vmem:[%s4736_s10 + $0x38] sm:$0xff] %v3370_v60   ;;  %v2715_v50 = vadd.f32 %v4713_v47, %v2676_v45  ;;  %v2293_v52 = vadd.f32 %v3873_v25, %v4664_v32  ;;  %v2778_v5 = vmin.f32 %v2746_v6, 6.0  ;;  %v2744_v58 = vmax.f32 %v2712_v49, 0.0 }
 0x1b6   : > { %v3365_v41 = vpack.c.bf16 %v2773_v46, %v2772_v56  ;;  %v2674_v2 = vadd.f32 %v2597_v44, %v2288_v33  ;;  %v2224_v23 = vpop.f32.mrf.mxu1  ;;  %v2610_v62 = vpop.f32.mrf.mxu0  ;;  %v4856_v33 = vld [vmem:[#allocation10_spill] sm:$0xff] }
 0x1b7   : > { %v2747_v30 = vmax.f32 %v2715_v50, 0.0  ;;  %v2679_v15 = vadd.f32 %v3921_v57, %v2293_v52  ;;  %v2291_v39 = vadd.f32 %v2224_v23, %v4851_v21  ;;  %v2776_v1 = vmin.f32 %v2744_v58, 6.0 }
 0x1b8   : > { %3417 = vst [vmem:[%s4736_s10 + $0x30] sm:$0xff] %v3365_v41   ;;  %v2713_v16 = vadd.f32 %v4713_v47, %v2674_v2  ;;  %v3874_v63 = vpop.f32.mrf.mxu1  ;;  %v3922_v32 = vpop.f32.mrf.mxu0  ;;  %v1910_v25 = vadd.f32 %v4856_v33, %v1524_v9  ;;  %v4858_v41 = vld [vmem:[#allocation12_spill] sm:$0xff] }
 0x1b9   : > { %v2779_v36 = vmin.f32 %v2747_v30, 6.0  ;;  %v2718_v43 = vadd.f32 %v4713_v47, %v2679_v15  ;;  %v2677_v55 = vadd.f32 %v2610_v62, %v2291_v39  ;;  %v2294_v4 = vadd.f32 %v3874_v63, %v1908_v10 }
 0x1ba   : > { %v2745_v37 = vmax.f32 %v2713_v16, 0.0  ;;  %v2227_v29 = vpop.f32.mrf.mxu1  ;;  %v2613_v42 = vpop.f32.mrf.mxu0  ;;  %v1530_v2 = vadd.f32 %v4858_v41, %v4857_v7  ;;  %v4859_v16 = vld [vmem:[#allocation11_spill] sm:$0xff] }
 0x1bb   : > { %v3380_v38 = vpack.c.bf16 %v2779_v36, %v2778_v5  ;;  %v2716_v18 = vadd.f32 %v4713_v47, %v2677_v55  ;;  %v2680_v35 = vadd.f32 %v3922_v32, %v2294_v4  ;;  %v2750_v54 = vmax.f32 %v2718_v43, 0.0  ;;  %v4860_v32 = vld [vmem:[#allocation5_spill] sm:$0xff]  ;;  %v4861_v36 = vld [vmem:[#allocation15_spill] sm:$0xff] }
 0x1bc   : > { %v2777_v34 = vmin.f32 %v2745_v37, 6.0  ;;  %v2292_v12 = vadd.f32 %v2227_v29, %v1906_v53  ;;  %v3877_v13 = vpop.f32.mrf.mxu1  ;;  %v3925_v40 = vpop.f32.mrf.mxu0  ;;  %v1528_v43 = vadd.f32 %v4861_v36, %v4860_v32  ;;  %v1916_v19 = vadd.f32 %v4862_v24, %v1530_v2 }
 0x1bd   : > { %3420 = vst [vmem:[%s4736_s10 + $0x48] sm:$0xff] %v3380_v38   ;;  %v2719_v61 = vadd.f32 %v4713_v47, %v2680_v35  ;;  %v2297_v3 = vadd.f32 %v3877_v13, %v4678_v8  ;;  %v2748_v17 = vmax.f32 %v2716_v18, 0.0  ;;  %v2782_v60 = vmin.f32 %v2750_v54, 6.0 }
 0x1be   : > { %v3375_v59 = vpack.c.bf16 %v2777_v34, %v2776_v1  ;;  %v2678_v0 = vadd.f32 %v2613_v42, %v2292_v12  ;;  %v2240_v31 = vpop.f32.mrf.mxu1  ;;  %v2626_v20 = vpop.f32.mrf.mxu0  ;;  %v4863_v42 = vld [vmem:[#allocation14_spill] sm:$0xff] }
 0x1bf   : > { %v2751_v11 = vmax.f32 %v2719_v61, 0.0  ;;  %v2683_v44 = vadd.f32 %v3925_v40, %v2297_v3  ;;  %v2295_v56 = vadd.f32 %v2240_v31, %v4855_v22  ;;  %v2780_v23 = vmin.f32 %v2748_v17, 6.0  ;;  %v4864_v3 = vld [vmem:[#allocation16_spill] sm:$0xff] }
 0x1c0   : > { %3419 = vst [vmem:[%s4736_s10 + $0x40] sm:$0xff] %v3375_v59   ;;  %v2717_v45 = vadd.f32 %v4713_v47, %v2678_v0  ;;  %v3878_v46 = vpop.f32.mrf.mxu1  ;;  %v3926_v8 = vpop.f32.mrf.mxu0 }
 0x1c1   : > { %v2783_v6 = vmin.f32 %v2751_v11, 6.0  ;;  %v2722_v26 = vadd.f32 %v4713_v47, %v2683_v44  ;;  %v2681_v49 = vadd.f32 %v2626_v20, %v2295_v56  ;;  %v2298_v27 = vadd.f32 %v3878_v46, %v1912_v51 }
 0x1c2   : > { %v2749_v57 = vmax.f32 %v2717_v45, 0.0  ;;  %v2243_v50 = vpop.f32.mrf.mxu1  ;;  %v2629_v52 = vpop.f32.mrf.mxu0  ;;  %v1914_v51 = vadd.f32 %v4864_v3, %v1528_v43 }
 0x1c3   : > { %v3390_v62 = vpack.c.bf16 %v2783_v6, %v2782_v60  ;;  %v2684_v28 = vadd.f32 %v3926_v8, %v2298_v27  ;;  %v2754_v30 = vmax.f32 %v2722_v26, 0.0  ;;  %v2720_v15 = vadd.f32 %v4713_v47, %v2681_v49 }
 0x1c4   : > { %v2781_v10 = vmin.f32 %v2749_v57, 6.0  ;;  %v2296_v21 = vadd.f32 %v2243_v50, %v1910_v25  ;;  %v3881_v39 = vpop.f32.mrf.mxu1  ;;  %v3929_v5 = vpop.f32.mrf.mxu0 }
 0x1c5   : > { %3422 = vst [vmem:[%s4736_s10 + $0x58] sm:$0xff] %v3390_v62   ;;  %v2723_v58 = vadd.f32 %v4713_v47, %v2684_v28  ;;  %v2301_v63 = vadd.f32 %v3881_v39, %v4859_v16  ;;  %v2786_v18 = vmin.f32 %v2754_v30, 6.0  ;;  %v2752_v35 = vmax.f32 %v2720_v15, 0.0 }
 0x1c6   : > { %v3385_v55 = vpack.c.bf16 %v2781_v10, %v2780_v23  ;;  %v2682_v4 = vadd.f32 %v2629_v52, %v2296_v21  ;;  %v2256_v48 = vpop.f32.mrf.mxu1  ;;  %v2642_v53 = vpop.f32.mrf.mxu0 }
 0x1c7   : > { %v2755_v37 = vmax.f32 %v2723_v58, 0.0  ;;  %v2687_v29 = vadd.f32 %v3929_v5, %v2301_v63  ;;  %v2299_v38 = vadd.f32 %v2256_v48, %v4863_v42  ;;  %v2784_v31 = vmin.f32 %v2752_v35, 6.0 }
 0x1c8   : > { %3421 = vst [vmem:[%s4736_s10 + $0x50] sm:$0xff] %v3385_v55   ;;  %v2721_v1 = vadd.f32 %v4713_v47, %v2682_v4  ;;  %v3882_v34 = vpop.f32.mrf.mxu1  ;;  %v3930_v61 = vpop.f32.mrf.mxu0 }
 0x1c9   : > { %v2787_v54 = vmin.f32 %v2755_v37, 6.0  ;;  %v2726_v12 = vadd.f32 %v4713_v47, %v2687_v29  ;;  %v2685_v13 = vadd.f32 %v2642_v53, %v2299_v38  ;;  %v2302_v40 = vadd.f32 %v3882_v34, %v1916_v19 }
 0x1ca   : > { %v2753_v14 = vmax.f32 %v2721_v1, 0.0  ;;  %v2259_v9 = vpop.f32.mrf.mxu1  ;;  %v2645_v56 = vpop.f32.mrf.mxu0 }
 0x1cb   : > { %v3400_v59 = vpack.c.bf16 %v2787_v54, %v2786_v18  ;;  %v2688_v0 = vadd.f32 %v3930_v61, %v2302_v40  ;;  %v2724_v17 = vadd.f32 %v4713_v47, %v2685_v13  ;;  %v2300_v11 = vadd.f32 %v2259_v9, %v1914_v51 }
 0x1cc   : > { %v2785_v20 = vmin.f32 %v2753_v14, 6.0  ;;  %v2758_v44 = vmax.f32 %v2726_v12, 0.0 }
 0x1cd   : > { %3424 = vst [vmem:[%s4736_s10 + $0x68] sm:$0xff] %v3400_v59   ;;  %v2727_v22 = vadd.f32 %v4713_v47, %v2688_v0  ;;  %v2686_v45 = vadd.f32 %v2645_v56, %v2300_v11  ;;  %v2756_v8 = vmax.f32 %v2724_v17, 0.0 }
 0x1ce   : > { %v3395_v60 = vpack.c.bf16 %v2785_v20, %v2784_v31  ;;  %v2790_v26 = vmin.f32 %v2758_v44, 6.0 }
 0x1cf   : > { %v2759_v46 = vmax.f32 %v2727_v22, 0.0  ;;  %v2725_v6 = vadd.f32 %v4713_v47, %v2686_v45  ;;  %v2788_v25 = vmin.f32 %v2756_v8, 6.0 }
 0x1d0   : > { %3423 = vst [vmem:[%s4736_s10 + $0x60] sm:$0xff] %v3395_v60  }
 0x1d1   : > { %v2791_v49 = vmin.f32 %v2759_v46, 6.0  ;;  %v2757_v27 = vmax.f32 %v2725_v6, 0.0 }
 0x1d3   : > { %v3410_v33 = vpack.c.bf16 %v2791_v49, %v2790_v26  ;;  %v2789_v57 = vmin.f32 %v2757_v27, 6.0 }
 0x1d5   : > { %3426 = vst [vmem:[%s4736_s10 + $0x78] sm:$0xff] %v3410_v33   ;;  %v3405_v50 = vpack.c.bf16 %v2789_v57, %v2788_v25 }
 0x1d7   : > { %3425 = vst [vmem:[%s4736_s10 + $0x70] sm:$0xff] %v3405_v50  }
 0x1d8 PF: > { %s13_s12 = sadd.s32 1, %s4115_s12  }
 0x1d9   : > { %p10_p4 = scmp.ge.s32.totalorder %s13_s12, 4  }
 0x1db   :  { %12 = sbr.rel (!%p10_p4) target bundleno = 1 (0x1), region = 68 }

</bundles_post_ra>
